<compile_context>
chip_gen: v6e
topology: v6e:2x2x1
jax: 0.10.0
libtpu: 0.0.40
codegen_flags: <defaults>
</compile_context>

<pallas_src>
import functools

import jax
import jax.numpy as jnp
from jax.experimental import pallas as pl
from jax.experimental.pallas import tpu as pltpu

# ---------------------------------------------------------------------------
# Configuration (small, deterministic "synthetic checkpoint")
# ---------------------------------------------------------------------------
HIDDEN = 32                 # bert_output_dim
BERT_HEADS = 2              # utterance encoder attention heads
BERT_LAYERS = 2             # utterance encoder hidden layers
BERT_INTER = 64             # utterance encoder intermediate size
NBT_HEADS = 2               # args.attn_head
NBT_LAYERS = 1              # args.num_layers
NBT_INTER = 64              # args.intermediate_size
VOCAB = 50
MAX_POS = 32
TYPE_VOCAB = 2
LN_EPS = 1e-12

MAX_SEQ = 8                 # args.max_seq_length
MAX_SLOT_LEN = 4            # args.max_slot_length
NUM_LABELS = (5, 6, 4)      # num_labels per slot
NUM_SLOTS = len(NUM_LABELS)
MAX_VALUE_NUM = max(NUM_LABELS)

DS = 2                      # dialogs
TS = 2                      # turns


def _round_up(n, m):
    return ((n + m - 1) // m) * m


NV_PAD = _round_up(MAX_VALUE_NUM, 8)        # per-slot padded value-column block
HEAD_DIM_OUT = NUM_SLOTS * NV_PAD + 3       # [folded product-similarity | classifier]


def _ln(x, g, b, eps=LN_EPS):
    """LayerNorm math; usable both inside Pallas kernels and in plain jnp."""
    mu = jnp.mean(x, axis=-1, keepdims=True)
    var = jnp.mean(jnp.square(x - mu), axis=-1, keepdims=True)
    return (x - mu) * jax.lax.rsqrt(var + eps) * g + b


# ---------------------------------------------------------------------------
# Fused stacked-layers encoder kernel (optionally with fused classifier head)
# ---------------------------------------------------------------------------
def _stacked_encoder_kernel(*refs, num_heads, eps, with_head):
    if with_head:
        (x_ref, m_ref, qw, qb, kw, kb, vw, vb, aow, aob, alng, alnb,
         iw, ib, ow, ob, olng, olnb, hw, hb, out_ref, act_ref) = refs
    else:
        (x_ref, m_ref, qw, qb, kw, kb, vw, vb, aow, aob, alng, alnb,
         iw, ib, ow, ob, olng, olnb, out_ref, act_ref) = refs
        hw = hb = None

    layer = pl.program_id(0)

    @pl.when(layer == 0)
    def _():
        act_ref[...] = x_ref[...].astype(jnp.float32)

    x = act_ref[...]                       # (M, D) activations, resident across layers
    mask = m_ref[...]                      # (M, M) additive block-diagonal mask
    M, D = x.shape
    dh = D // num_heads
    scale = 1.0 / float(dh) ** 0.5

    # --- self-attention: one block-diagonal (M, M) score matmul per head.  Per-head
    #     weights come from the leading ref axis, so no lane-offset slicing of vregs. ---
    attn = jnp.zeros((M, D), jnp.float32)
    for h in range(num_heads):
        q = (jnp.dot(x, qw[h], preferred_element_type=jnp.float32) + qb[h]) * scale
        k = jnp.dot(x, kw[h], preferred_element_type=jnp.float32) + kb[h]
        v = jnp.dot(x, vw[h], preferred_element_type=jnp.float32) + vb[h]
        s = jax.lax.dot_general(q, k, (((1,), (1,)), ((), ())),
                                preferred_element_type=jnp.float32) + mask
        s = s - jnp.max(s, axis=-1, keepdims=True)
        p = jnp.exp(s)
        p = p / jnp.sum(p, axis=-1, keepdims=True)
        ctx = jnp.dot(p, v, preferred_element_type=jnp.float32)           # (M, dh)
        attn = attn + jnp.dot(ctx, aow[h], preferred_element_type=jnp.float32)

    h1 = _ln(attn + aob[...] + x, alng[...], alnb[...], eps)

    # TODO(synk): HF BERT default is exact erf-GELU; tanh approximation used here for
    # guaranteed Mosaic lowering (difference ~1e-3).
    inter = jax.nn.gelu(
        jnp.dot(h1, iw[...], preferred_element_type=jnp.float32) + ib[...],
        approximate=True)
    ffn = jnp.dot(inter, ow[...], preferred_element_type=jnp.float32) + ob[...]
    h2 = _ln(ffn + h1, olng[...], olnb[...], eps)

    act_ref[...] = h2

    @pl.when(layer == pl.num_programs(0) - 1)
    def _():
        if with_head:
            # classifier + hidden_output + product similarity, one matmul.
            out_ref[...] = (jnp.dot(h2, hw[...], preferred_element_type=jnp.float32)
                            + hb[...]).astype(out_ref.dtype)
        else:
            out_ref[...] = h2.astype(out_ref.dtype)


def fused_encoder(x2, mask, stack, num_heads, head_w=None, head_b=None):
    """Run all stacked transformer layers (and optional fused head) in one pallas_call.

    x2   : (M, D) activations
    mask : (M, M) additive block-diagonal attention mask
    stack: dict of per-layer-stacked weights (leading axis = num_layers)
    """
    M, D = x2.shape
    n_layers = stack["qw"].shape[0]
    H = num_heads
    dh = D // H
    inter = stack["iw"].shape[-1]

    def const_spec(shape):
        return pl.BlockSpec(shape, lambda l, _n=len(shape): (0,) * _n)

    def layer_spec(shape):   # `shape` excludes the stacked layer axis (squeezed away)
        return pl.BlockSpec((None,) + shape,
                            lambda l, _n=len(shape): (l,) + (0,) * _n)

    in_specs = [
        const_spec((M, D)), const_spec((M, M)),
        layer_spec((H, D, dh)), layer_spec((H, 1, dh)),
        layer_spec((H, D, dh)), layer_spec((H, 1, dh)),
        layer_spec((H, D, dh)), layer_spec((H, 1, dh)),
        layer_spec((H, dh, D)), layer_spec((1, D)),
        layer_spec((1, D)), layer_spec((1, D)),
        layer_spec((D, inter)), layer_spec((1, inter)),
        layer_spec((inter, D)), layer_spec((1, D)),
        layer_spec((1, D)), layer_spec((1, D)),
    ]
    args = [x2, mask,
            stack["qw"], stack["qb"], stack["kw"], stack["kb"],
            stack["vw"], stack["vb"], stack["aow"], stack["aob"],
            stack["aln_g"], stack["aln_b"], stack["iw"], stack["ib"],
            stack["ow"], stack["ob"], stack["oln_g"], stack["oln_b"]]

    with_head = head_w is not None
    if with_head:
        out_dim = head_w.shape[1]
        in_specs += [const_spec((D, out_dim)), const_spec((1, out_dim))]
        args += [head_w, head_b]
    else:
        out_dim = D

    return pl.pallas_call(
        functools.partial(_stacked_encoder_kernel, num_heads=num_heads,
                          eps=LN_EPS, with_head=with_head),
        out_shape=jax.ShapeDtypeStruct((M, out_dim), x2.dtype),
        grid=(n_layers,),
        in_specs=in_specs,
        out_specs=const_spec((M, out_dim)),
        scratch_shapes=[pltpu.VMEM((M, D), jnp.float32)],
        compiler_params=pltpu.CompilerParams(dimension_semantics=("arbitrary",)),
    )(*args)


# ---------------------------------------------------------------------------
# Wrapper-side helpers (plain JAX under jit)
# ---------------------------------------------------------------------------
def _block_diag_mask(per_seq_mask):
    """(B, L, L) additive mask -> (B*L, B*L) with cross-sequence blocks fully masked."""
    B, L, _ = per_seq_mask.shape
    eye = jnp.eye(B, dtype=jnp.float32)
    big = (per_seq_mask[:, :, None, :] * eye[:, None, :, None]
           + (-10000.0) * (1.0 - eye)[:, None, :, None])
    return big.reshape(B * L, B * L)


# ---------------------------------------------------------------------------
# BeliefTracker forward (labels=None path -> returns _dist, answer_type_logits)
# ---------------------------------------------------------------------------
def belief_tracker_forward(fparams, buffers, input_ids, token_type_ids,
                           attention_mask):
    ds, ts, L_seq = input_ids.shape
    bs = ds * ts
    slot_dim = NUM_SLOTS
    L_slot = slot_dim * MAX_SLOT_LEN
    L = L_seq + L_slot
    L_pad = _round_up(L, 8)
    pad = L_pad - L
    D = HIDDEN

    # ---- flat [utterance ; slot tokens] additive attention mask, padded ----
    att = attention_mask.reshape(bs, 1, L_seq).astype(jnp.int32)
    flat = jnp.broadcast_to(att, (bs, L_seq, L_seq))
    flat = jnp.concatenate(
        [flat, jnp.broadcast_to(buffers["seq_to_slot_mask"][None],
                                (bs, L_seq, L_slot))], axis=-1)
    slot_flat = jnp.concatenate(
        [jnp.broadcast_to(att, (bs, L_slot, L_seq)),
         jnp.broadcast_to(buffers["slot_to_slot_mask"][None],
                          (bs, L_slot, L_slot))], axis=-1)
    mask3d = jnp.concatenate([flat, slot_flat], axis=1).astype(jnp.float32)
    mask3d = jnp.pad(mask3d, ((0, 0), (0, pad), (0, pad)))    # pad cols masked
    ext_mask = (1.0 - mask3d) * -10000.0                      # (bs, L_pad, L_pad)
    utt_mask = _block_diag_mask(ext_mask)                     # (bs*L_pad, bs*L_pad)

    flat_ids = jnp.concatenate(
        [input_ids.reshape(bs, L_seq),
         jnp.broadcast_to(buffers["slot_ids"].reshape(1, L_slot), (bs, L_slot))],
        axis=1)
    flat_types = jnp.concatenate(
        [token_type_ids.reshape(bs, L_seq),
         jnp.broadcast_to(buffers["slot_token_type_ids"].reshape(1, L_slot),
                          (bs, L_slot))], axis=1)
    flat_ids = jnp.pad(flat_ids, ((0, 0), (0, pad)))
    flat_types = jnp.pad(flat_types, ((0, 0), (0, pad)))
    pos = jnp.broadcast_to(jnp.pad(buffers["pos_ids"], (0, pad))[None],
                           (bs, L_pad))

    # ---- utterance encoder: embeddings + LN in plain jnp, one fused-layers kernel ----
    emb = fparams["embeddings"]
    e = (emb["word_emb"][flat_ids] + emb["pos_emb"][pos]
         + emb["type_emb"][flat_types])
    h = _ln(e, emb["emb_ln_g"], emb["emb_ln_b"])              # (bs, L_pad, D)
    h2 = fused_encoder(h.reshape(bs * L_pad, D), utt_mask,
                       fparams["utt_stack"], BERT_HEADS)
    h = h2.reshape(bs, L_pad, D)

    slot_hidden = h[:, L_seq:L_seq + L_slot]
    slot_hidden = slot_hidden.reshape(bs, slot_dim, MAX_SLOT_LEN, D)[:, :, 0]
    slot_h = (slot_hidden.reshape(ds, ts, slot_dim, D)
              .transpose(0, 2, 1, 3).reshape(ds * slot_dim, ts, D))

    # ---- turn-level transformer (causal) + fused head, one kernel ----
    ts_pad = _round_up(ts, 8)
    slot_h = jnp.pad(slot_h, ((0, 0), (0, ts_pad - ts), (0, 0)))
    turn_ids = jnp.arange(ts_pad)
    valid = (turn_ids[None, :] <= turn_ids[:, None]) & (turn_ids[None, :] < ts)
    causal_add = (1.0 - valid.astype(jnp.float32)) * -10000.0  # (ts_pad, ts_pad)
    B2 = ds * slot_dim
    nbt_mask = _block_diag_mask(
        jnp.broadcast_to(causal_add[None], (B2, ts_pad, ts_pad)))

    turn_emb = emb["pos_emb"][turn_ids][None]                  # shared position emb
    slot_h = _ln(turn_emb + slot_h, fparams["pos_ln_g"], fparams["pos_ln_b"])

    head_out = fused_encoder(slot_h.reshape(B2 * ts_pad, D), nbt_mask,
                             fparams["nbt_stack"], NBT_HEADS,
                             head_w=fparams["head_w"], head_b=fparams["head_b"])
    # head_out: (B2*ts_pad, slot_dim*NV_PAD + 3), rows ordered (d, s, t)
    head_out = head_out.reshape(ds, slot_dim, ts_pad, HEAD_DIM_OUT)[:, :, :ts]

    dist_all = head_out[..., :slot_dim * NV_PAD].reshape(
        ds, slot_dim, ts, slot_dim, NV_PAD)
    # each row only needs the value block of its own slot -> diagonal over slot axes
    dist = jnp.diagonal(dist_all, axis1=1, axis2=3)            # (ds, ts, NV_PAD, S)
    dist = dist.transpose(3, 0, 1, 2)[..., :MAX_VALUE_NUM]     # (S, ds, ts, NV)
    dist = dist + buffers["value_mask"].reshape(slot_dim, 1, 1, MAX_VALUE_NUM)

    answer_type_logits = head_out[..., slot_dim * NV_PAD:].transpose(1, 0, 2, 3)
    return dist, answer_type_logits


# ---------------------------------------------------------------------------
# Deterministic parameter / buffer initialization and layout preparation
# ---------------------------------------------------------------------------
def init_params(key):
    kit = iter(jax.random.split(key, 256))

    def nrm(shape, scale=0.02):
        return jax.random.normal(next(kit), shape, jnp.float32) * scale

    def layer_params(d, inter):
        return dict(
            q_w=nrm((d, d)), q_b=jnp.zeros((d,), jnp.float32),
            k_w=nrm((d, d)), k_b=jnp.zeros((d,), jnp.float32),
            v_w=nrm((d, d)), v_b=jnp.zeros((d,), jnp.float32),
            ao_w=nrm((d, d)), ao_b=jnp.zeros((d,), jnp.float32),
            aln_g=jnp.ones((d,), jnp.float32), aln_b=jnp.zeros((d,), jnp.float32),
            i_w=nrm((d, inter)), i_b=jnp.zeros((inter,), jnp.float32),
            o_w=nrm((inter, d)), o_b=jnp.zeros((d,), jnp.float32),
            oln_g=jnp.ones((d,), jnp.float32), oln_b=jnp.zeros((d,), jnp.float32),
        )

    emb = dict(
        word_emb=nrm((VOCAB, HIDDEN)),
        pos_emb=nrm((MAX_POS, HIDDEN)),
        type_emb=nrm((TYPE_VOCAB, HIDDEN)),
        emb_ln_g=jnp.ones((HIDDEN,), jnp.float32),
        emb_ln_b=jnp.zeros((HIDDEN,), jnp.float32),
    )
    return dict(
        utt_encoder=dict(
            embeddings=emb,
            layers=[layer_params(HIDDEN, BERT_INTER) for _ in range(BERT_LAYERS)]),
        nbt_layers=[layer_params(HIDDEN, NBT_INTER) for _ in range(NBT_LAYERS)],
        pos_ln_g=jnp.ones((HIDDEN,), jnp.float32),
        pos_ln_b=jnp.zeros((HIDDEN,), jnp.float32),
        cls_w=nrm((HIDDEN, 3)), cls_b=jnp.zeros((3,), jnp.float32),
        hid_w=nrm((HIDDEN, HIDDEN)),
    )


def _stack_layers(layers, num_heads):
    """Stack per-layer weights along a leading axis, pre-split per attention head."""
    d = layers[0]["q_w"].shape[0]
    dh = d // num_heads

    def st(key, fn):
        return jnp.stack([fn(p[key]) for p in layers], axis=0)

    per_head_w = lambda w: w.reshape(d, num_heads, dh).transpose(1, 0, 2)  # (H, D, Dh)
    per_head_b = lambda b: b.reshape(num_heads, 1, dh)                     # (H, 1, Dh)
    out_proj_w = lambda w: w.reshape(num_heads, dh, d)                     # (H, Dh, D)
    row = lambda v: v.reshape(1, -1)
    full = lambda w: w

    return dict(
        qw=st("q_w", per_head_w), qb=st("q_b", per_head_b),
        kw=st("k_w", per_head_w), kb=st("k_b", per_head_b),
        vw=st("v_w", per_head_w), vb=st("v_b", per_head_b),
        aow=st("ao_w", out_proj_w), aob=st("ao_b", row),
        aln_g=st("aln_g", row), aln_b=st("aln_b", row),
        iw=st("i_w", full), ib=st("i_b", row),
        ow=st("o_w", full), ob=st("o_b", row),
        oln_g=st("oln_g", row), oln_b=st("oln_b", row),
    )


def prepare_params(params, buffers):
    """One-time conversion of torch-structured params into the fused-kernel layout."""
    slot_dim = NUM_SLOTS
    vals = buffers["defined_values"]                           # (S, NV, D)
    vals = jnp.pad(vals, ((0, 0), (0, NV_PAD - MAX_VALUE_NUM), (0, 0)))
    vals_flat = vals.reshape(slot_dim * NV_PAD, HIDDEN)
    # Fold hidden_output into the product similarity:
    #   dist = (h @ hid_w) @ values.T == h @ (hid_w @ values.T)  (exact up to f32 reassoc.)
    w_dist = params["hid_w"] @ vals_flat.T                     # (D, S*NV_PAD)
    head_w = jnp.concatenate([w_dist, params["cls_w"]], axis=1)        # (D, S*NV_PAD+3)
    head_b = jnp.concatenate(
        [jnp.zeros((slot_dim * NV_PAD,), jnp.float32),
         params["cls_b"]]).reshape(1, -1)
    return dict(
        embeddings=params["utt_encoder"]["embeddings"],
        utt_stack=_stack_layers(params["utt_encoder"]["layers"], BERT_HEADS),
        nbt_stack=_stack_layers(params["nbt_layers"], NBT_HEADS),
        pos_ln_g=params["pos_ln_g"], pos_ln_b=params["pos_ln_b"],
        head_w=head_w, head_b=head_b,
    )


def init_buffers(key):
    k0, k1 = jax.random.split(key, 2)
    L_slot = NUM_SLOTS * MAX_SLOT_LEN

    slot_ids = jax.random.randint(k0, (NUM_SLOTS, MAX_SLOT_LEN), 1, VOCAB,
                                  dtype=jnp.int32)
    slot_token_type_ids = jnp.zeros_like(slot_ids)
    slot_mask = (slot_ids > 0).astype(jnp.int32)

    s2s = jnp.zeros((NUM_SLOTS, NUM_SLOTS, MAX_SLOT_LEN), jnp.int32)
    s2s = s2s.at[jnp.arange(NUM_SLOTS), jnp.arange(NUM_SLOTS)].set(slot_mask)
    s2s = jnp.broadcast_to(
        s2s[:, None, :, :],
        (NUM_SLOTS, MAX_SLOT_LEN, NUM_SLOTS, MAX_SLOT_LEN)).reshape(L_slot, L_slot)

    seq_to_slot_mask = jnp.zeros((MAX_SEQ, L_slot), jnp.int32)
    pos_ids = jnp.concatenate(
        [jnp.arange(MAX_SEQ, dtype=jnp.int32),
         jnp.tile(MAX_SEQ + jnp.arange(MAX_SLOT_LEN, dtype=jnp.int32), NUM_SLOTS)])

    # Synthetic frozen value embeddings (stand-in for sv_encoder output).
    defined_values = jax.random.normal(
        k1, (NUM_SLOTS, MAX_VALUE_NUM, HIDDEN), jnp.float32) * 0.5
    valid = jnp.zeros((NUM_SLOTS, MAX_VALUE_NUM), jnp.int32)
    for s, n in enumerate(NUM_LABELS):
        valid = valid.at[s, :n].set(1)
    defined_values = defined_values * valid[:, :, None].astype(jnp.float32)
    value_mask = ((1 - valid).astype(jnp.float32) * -10000.0)[:, None, None, :]

    return dict(
        slot_ids=slot_ids,
        slot_token_type_ids=slot_token_type_ids,
        slot_to_slot_mask=s2s,
        seq_to_slot_mask=seq_to_slot_mask,
        pos_ids=pos_ids,
        defined_values=defined_values,
        value_mask=value_mask,
    )


# ---------------------------------------------------------------------------
if __name__ == "__main__":
    key = jax.random.PRNGKey(0)
    kp, kb, kd = jax.random.split(key, 3)
    params = init_params(kp)
    buffers = init_buffers(kb)
    fparams = prepare_params(params, buffers)

    input_ids = jax.random.randint(kd, (DS, TS, MAX_SEQ), 1, VOCAB,
                                   dtype=jnp.int32)
    input_ids = input_ids.at[0, :, 6:].set(0)       # some padding
    input_ids = input_ids.at[1, :, 7:].set(0)
    token_type_ids = jnp.zeros_like(input_ids)
    attention_mask = (input_ids > 0).astype(jnp.int32)

    fwd = jax.jit(belief_tracker_forward)
    dist, answer_type_logits = fwd(fparams, buffers, input_ids, token_type_ids,
                                   attention_mask)
    jax.block_until_ready(dist)
    jax.block_until_ready(answer_type_logits)

    assert dist.shape == (NUM_SLOTS, DS, TS, MAX_VALUE_NUM)
    assert answer_type_logits.shape == (NUM_SLOTS, DS, TS, 3)
    assert bool(jnp.all(jnp.isfinite(dist)))
    assert bool(jnp.all(jnp.isfinite(answer_type_logits)))
    print("KERNEL_OK")
</pallas_src>

<mosaic_0001>
module attributes {stable_mosaic.version = 11 : i64} {
  func.func @_stacked_encoder_kernel(%arg0: i32, %arg1: memref<96x32xf32, #tpu.memory_space<vmem>>, %arg2: memref<96x96xf32, #tpu.memory_space<vmem>>, %arg3: memref<1x2x32x16xf32, #tpu.memory_space<vmem>>, %arg4: memref<1x2x1x16xf32, #tpu.memory_space<vmem>>, %arg5: memref<1x2x32x16xf32, #tpu.memory_space<vmem>>, %arg6: memref<1x2x1x16xf32, #tpu.memory_space<vmem>>, %arg7: memref<1x2x32x16xf32, #tpu.memory_space<vmem>>, %arg8: memref<1x2x1x16xf32, #tpu.memory_space<vmem>>, %arg9: memref<1x2x16x32xf32, #tpu.memory_space<vmem>>, %arg10: memref<1x1x32xf32, #tpu.memory_space<vmem>>, %arg11: memref<1x1x32xf32, #tpu.memory_space<vmem>>, %arg12: memref<1x1x32xf32, #tpu.memory_space<vmem>>, %arg13: memref<1x32x64xf32, #tpu.memory_space<vmem>>, %arg14: memref<1x1x64xf32, #tpu.memory_space<vmem>>, %arg15: memref<1x64x32xf32, #tpu.memory_space<vmem>>, %arg16: memref<1x1x32xf32, #tpu.memory_space<vmem>>, %arg17: memref<1x1x32xf32, #tpu.memory_space<vmem>>, %arg18: memref<1x1x32xf32, #tpu.memory_space<vmem>>, %arg19: memref<96x32xf32, #tpu.memory_space<vmem>>, %arg20: memref<96x32xf32, #tpu.memory_space<vmem>>) attributes {dimension_semantics = [#tpu.dimension_semantics<arbitrary>], iteration_bounds = array<i64: 2>, scalar_prefetch = 0 : i64, scratch_operands = 1 : i64, tpu.core_type = #tpu.core_type<tc>, window_params = [{pipeline_mode = #tpu.pipeline_mode<synchronous>, transform_indices = @transform_0, window_bounds = array<i64: 96, 32>}, {pipeline_mode = #tpu.pipeline_mode<synchronous>, transform_indices = @transform_1, window_bounds = array<i64: 96, 96>}, {transform_indices = @transform_2, window_bounds = array<i64: 1, 2, 32, 16>}, {transform_indices = @transform_3, window_bounds = array<i64: 1, 2, 1, 16>}, {transform_indices = @transform_4, window_bounds = array<i64: 1, 2, 32, 16>}, {transform_indices = @transform_5, window_bounds = array<i64: 1, 2, 1, 16>}, {transform_indices = @transform_6, window_bounds = array<i64: 1, 2, 32, 16>}, {transform_indices = @transform_7, window_bounds = array<i64: 1, 2, 1, 16>}, {transform_indices = @transform_8, window_bounds = array<i64: 1, 2, 16, 32>}, {transform_indices = @transform_9, window_bounds = array<i64: 1, 1, 32>}, {transform_indices = @transform_10, window_bounds = array<i64: 1, 1, 32>}, {transform_indices = @transform_11, window_bounds = array<i64: 1, 1, 32>}, {transform_indices = @transform_12, window_bounds = array<i64: 1, 32, 64>}, {transform_indices = @transform_13, window_bounds = array<i64: 1, 1, 64>}, {transform_indices = @transform_14, window_bounds = array<i64: 1, 64, 32>}, {transform_indices = @transform_15, window_bounds = array<i64: 1, 1, 32>}, {transform_indices = @transform_16, window_bounds = array<i64: 1, 1, 32>}, {transform_indices = @transform_17, window_bounds = array<i64: 1, 1, 32>}, {pipeline_mode = #tpu.pipeline_mode<synchronous>, transform_indices = @transform_18, window_bounds = array<i64: 96, 32>}]} {
    %c0_i32 = arith.constant 0 : i32
    %0 = arith.cmpi eq, %arg0, %c0_i32 : i32
    %1 = arith.extui %0 : i1 to i32
    %c0_i32_0 = arith.constant 0 : i32
    %2 = arith.cmpi ne, %1, %c0_i32_0 : i32
    scf.if %2 {
      %c0_123 = arith.constant 0 : index
      %c0_124 = arith.constant 0 : index
      %173 = vector.load %arg1[%c0_123, %c0_124] : memref<96x32xf32, #tpu.memory_space<vmem>>, vector<96x32xf32>
      %c0_125 = arith.constant 0 : index
      %c0_126 = arith.constant 0 : index
      %174 = vector.load %arg20[%c0_125, %c0_126] : memref<96x32xf32, #tpu.memory_space<vmem>>, vector<96x32xf32>
      tpu.vector_store %arg20[%c0_125, %c0_126], %173 {strides = array<i32>} : memref<96x32xf32, #tpu.memory_space<vmem>>, vector<96x32xf32>,
    } else {
    }
    %c0 = arith.constant 0 : index
    %c0_1 = arith.constant 0 : index
    %3 = vector.load %arg20[%c0, %c0_1] : memref<96x32xf32, #tpu.memory_space<vmem>>, vector<96x32xf32>
    %c0_2 = arith.constant 0 : index
    %c0_3 = arith.constant 0 : index
    %4 = vector.load %arg2[%c0_2, %c0_3] : memref<96x96xf32, #tpu.memory_space<vmem>>, vector<96x96xf32>
    %cst = arith.constant 0.000000e+00 : f32
    %5 = vector.broadcast %cst : f32 to vector<96x32xf32>
    %c0_4 = arith.constant 0 : index
    %c0_5 = arith.constant 0 : index
    %c0_6 = arith.constant 0 : index
    %c0_7 = arith.constant 0 : index
    %6 = vector.load %arg3[%c0_4, %c0_5, %c0_6, %c0_7] : memref<1x2x32x16xf32, #tpu.memory_space<vmem>>, vector<1x1x32x16xf32>
    %7 = vector.shape_cast %6 : vector<1x1x32x16xf32> to vector<32x16xf32>
    %cst_8 = arith.constant dense<0.000000e+00> : vector<96x16xf32>
    %8 = tpu.matmul %3, %7, %cst_8 {dimension_numbers = #tpu.dot_dimension_numbers<[1], [0], [0], [1], [0, 0, 1, 1], [], []>} : vector<96x32xf32>, vector<32x16xf32>, vector<96x16xf32> -> vector<96x16xf32>
    %c0_9 = arith.constant 0 : index
    %c0_10 = arith.constant 0 : index
    %c0_11 = arith.constant 0 : index
    %c0_12 = arith.constant 0 : index
    %9 = vector.load %arg4[%c0_9, %c0_10, %c0_11, %c0_12] : memref<1x2x1x16xf32, #tpu.memory_space<vmem>>, vector<1x1x1x16xf32>
    %10 = vector.shape_cast %9 : vector<1x1x1x16xf32> to vector<1x16xf32>
    %11 = vector.broadcast %10 : vector<1x16xf32> to vector<96x16xf32>
    %12 = arith.addf %8, %11 : vector<96x16xf32>
    %cst_13 = arith.constant 2.500000e-01 : f32
    %13 = vector.broadcast %cst_13 : f32 to vector<96x16xf32>
    %14 = arith.mulf %12, %13 : vector<96x16xf32>
    %c0_14 = arith.constant 0 : index
    %c0_15 = arith.constant 0 : index
    %c0_16 = arith.constant 0 : index
    %c0_17 = arith.constant 0 : index
    %15 = vector.load %arg5[%c0_14, %c0_15, %c0_16, %c0_17] : memref<1x2x32x16xf32, #tpu.memory_space<vmem>>, vector<1x1x32x16xf32>
    %16 = vector.shape_cast %15 : vector<1x1x32x16xf32> to vector<32x16xf32>
    %cst_18 = arith.constant dense<0.000000e+00> : vector<96x16xf32>
    %17 = tpu.matmul %3, %16, %cst_18 {dimension_numbers = #tpu.dot_dimension_numbers<[1], [0], [0], [1], [0, 0, 1, 1], [], []>} : vector<96x32xf32>, vector<32x16xf32>, vector<96x16xf32> -> vector<96x16xf32>
    %c0_19 = arith.constant 0 : index
    %c0_20 = arith.constant 0 : index
    %c0_21 = arith.constant 0 : index
    %c0_22 = arith.constant 0 : index
    %18 = vector.load %arg6[%c0_19, %c0_20, %c0_21, %c0_22] : memref<1x2x1x16xf32, #tpu.memory_space<vmem>>, vector<1x1x1x16xf32>
    %19 = vector.shape_cast %18 : vector<1x1x1x16xf32> to vector<1x16xf32>
    %20 = vector.broadcast %19 : vector<1x16xf32> to vector<96x16xf32>
    %21 = arith.addf %17, %20 : vector<96x16xf32>
    %c0_23 = arith.constant 0 : index
    %c0_24 = arith.constant 0 : index
    %c0_25 = arith.constant 0 : index
    %c0_26 = arith.constant 0 : index
    %22 = vector.load %arg7[%c0_23, %c0_24, %c0_25, %c0_26] : memref<1x2x32x16xf32, #tpu.memory_space<vmem>>, vector<1x1x32x16xf32>
    %23 = vector.shape_cast %22 : vector<1x1x32x16xf32> to vector<32x16xf32>
    %cst_27 = arith.constant dense<0.000000e+00> : vector<96x16xf32>
    %24 = tpu.matmul %3, %23, %cst_27 {dimension_numbers = #tpu.dot_dimension_numbers<[1], [0], [0], [1], [0, 0, 1, 1], [], []>} : vector<96x32xf32>, vector<32x16xf32>, vector<96x16xf32> -> vector<96x16xf32>
    %c0_28 = arith.constant 0 : index
    %c0_29 = arith.constant 0 : index
    %c0_30 = arith.constant 0 : index
    %c0_31 = arith.constant 0 : index
    %25 = vector.load %arg8[%c0_28, %c0_29, %c0_30, %c0_31] : memref<1x2x1x16xf32, #tpu.memory_space<vmem>>, vector<1x1x1x16xf32>
    %26 = vector.shape_cast %25 : vector<1x1x1x16xf32> to vector<1x16xf32>
    %27 = vector.broadcast %26 : vector<1x16xf32> to vector<96x16xf32>
    %28 = arith.addf %24, %27 : vector<96x16xf32>
    %cst_32 = arith.constant dense<0.000000e+00> : vector<96x96xf32>
    %29 = tpu.matmul %14, %21, %cst_32 {dimension_numbers = #tpu.dot_dimension_numbers<[1], [1], [0], [0], [0, 0, 1, 0], [], []>} : vector<96x16xf32>, vector<96x16xf32>, vector<96x96xf32> -> vector<96x96xf32>
    %30 = arith.addf %29, %4 : vector<96x96xf32>
    %cst_33 = arith.constant dense<0xFF800000> : vector<96xf32>
    %31 = vector.multi_reduction <maximumf>, %30, %cst_33 [1] : vector<96x96xf32> to vector<96xf32>
    %32 = vector.shape_cast %31 : vector<96xf32> to vector<96x1xf32>
    %33 = vector.broadcast %32 : vector<96x1xf32> to vector<96x96xf32>
    %34 = arith.subf %30, %33 : vector<96x96xf32>
    %35 = math.exp %34 : vector<96x96xf32>
    %cst_34 = arith.constant dense<0.000000e+00> : vector<96xf32>
    %36 = vector.multi_reduction <add>, %35, %cst_34 [1] : vector<96x96xf32> to vector<96xf32>
    %37 = vector.shape_cast %36 : vector<96xf32> to vector<96x1xf32>
    %38 = vector.broadcast %37 : vector<96x1xf32> to vector<96x96xf32>
    %39 = arith.divf %35, %38 : vector<96x96xf32>
    %cst_35 = arith.constant dense<0.000000e+00> : vector<96x16xf32>
    %40 = tpu.matmul %39, %28, %cst_35 {dimension_numbers = #tpu.dot_dimension_numbers<[1], [0], [0], [1], [0, 0, 1, 1], [], []>} : vector<96x96xf32>, vector<96x16xf32>, vector<96x16xf32> -> vector<96x16xf32>
    %c0_36 = arith.constant 0 : index
    %c0_37 = arith.constant 0 : index
    %c0_38 = arith.constant 0 : index
    %c0_39 = arith.constant 0 : index
    %41 = vector.load %arg9[%c0_36, %c0_37, %c0_38, %c0_39] : memref<1x2x16x32xf32, #tpu.memory_space<vmem>>, vector<1x1x16x32xf32>
    %42 = vector.shape_cast %41 : vector<1x1x16x32xf32> to vector<16x32xf32>
    %cst_40 = arith.constant dense<0.000000e+00> : vector<96x32xf32>
    %43 = tpu.matmul %40, %42, %cst_40 {dimension_numbers = #tpu.dot_dimension_numbers<[1], [0], [0], [1], [0, 0, 1, 1], [], []>} : vector<96x16xf32>, vector<16x32xf32>, vector<96x32xf32> -> vector<96x32xf32>
    %44 = arith.addf %5, %43 : vector<96x32xf32>
    %c0_41 = arith.constant 0 : index
    %c1 = arith.constant 1 : index
    %c0_42 = arith.constant 0 : index
    %c0_43 = arith.constant 0 : index
    %45 = vector.load %arg3[%c0_41, %c1, %c0_42, %c0_43] : memref<1x2x32x16xf32, #tpu.memory_space<vmem>>, vector<1x1x32x16xf32>
    %46 = vector.shape_cast %45 : vector<1x1x32x16xf32> to vector<32x16xf32>
    %cst_44 = arith.constant dense<0.000000e+00> : vector<96x16xf32>
    %47 = tpu.matmul %3, %46, %cst_44 {dimension_numbers = #tpu.dot_dimension_numbers<[1], [0], [0], [1], [0, 0, 1, 1], [], []>} : vector<96x32xf32>, vector<32x16xf32>, vector<96x16xf32> -> vector<96x16xf32>
    %c0_45 = arith.constant 0 : index
    %c1_46 = arith.constant 1 : index
    %c0_47 = arith.constant 0 : index
    %c0_48 = arith.constant 0 : index
    %48 = vector.load %arg4[%c0_45, %c1_46, %c0_47, %c0_48] : memref<1x2x1x16xf32, #tpu.memory_space<vmem>>, vector<1x1x1x16xf32>
    %49 = vector.shape_cast %48 : vector<1x1x1x16xf32> to vector<1x16xf32>
    %50 = vector.broadcast %49 : vector<1x16xf32> to vector<96x16xf32>
    %51 = arith.addf %47, %50 : vector<96x16xf32>
    %cst_49 = arith.constant 2.500000e-01 : f32
    %52 = vector.broadcast %cst_49 : f32 to vector<96x16xf32>
    %53 = arith.mulf %51, %52 : vector<96x16xf32>
    %c0_50 = arith.constant 0 : index
    %c1_51 = arith.constant 1 : index
    %c0_52 = arith.constant 0 : index
    %c0_53 = arith.constant 0 : index
    %54 = vector.load %arg5[%c0_50, %c1_51, %c0_52, %c0_53] : memref<1x2x32x16xf32, #tpu.memory_space<vmem>>, vector<1x1x32x16xf32>
    %55 = vector.shape_cast %54 : vector<1x1x32x16xf32> to vector<32x16xf32>
    %cst_54 = arith.constant dense<0.000000e+00> : vector<96x16xf32>
    %56 = tpu.matmul %3, %55, %cst_54 {dimension_numbers = #tpu.dot_dimension_numbers<[1], [0], [0], [1], [0, 0, 1, 1], [], []>} : vector<96x32xf32>, vector<32x16xf32>, vector<96x16xf32> -> vector<96x16xf32>
    %c0_55 = arith.constant 0 : index
    %c1_56 = arith.constant 1 : index
    %c0_57 = arith.constant 0 : index
    %c0_58 = arith.constant 0 : index
    %57 = vector.load %arg6[%c0_55, %c1_56, %c0_57, %c0_58] : memref<1x2x1x16xf32, #tpu.memory_space<vmem>>, vector<1x1x1x16xf32>
    %58 = vector.shape_cast %57 : vector<1x1x1x16xf32> to vector<1x16xf32>
    %59 = vector.broadcast %58 : vector<1x16xf32> to vector<96x16xf32>
    %60 = arith.addf %56, %59 : vector<96x16xf32>
    %c0_59 = arith.constant 0 : index
    %c1_60 = arith.constant 1 : index
    %c0_61 = arith.constant 0 : index
    %c0_62 = arith.constant 0 : index
    %61 = vector.load %arg7[%c0_59, %c1_60, %c0_61, %c0_62] : memref<1x2x32x16xf32, #tpu.memory_space<vmem>>, vector<1x1x32x16xf32>
    %62 = vector.shape_cast %61 : vector<1x1x32x16xf32> to vector<32x16xf32>
    %cst_63 = arith.constant dense<0.000000e+00> : vector<96x16xf32>
    %63 = tpu.matmul %3, %62, %cst_63 {dimension_numbers = #tpu.dot_dimension_numbers<[1], [0], [0], [1], [0, 0, 1, 1], [], []>} : vector<96x32xf32>, vector<32x16xf32>, vector<96x16xf32> -> vector<96x16xf32>
    %c0_64 = arith.constant 0 : index
    %c1_65 = arith.constant 1 : index
    %c0_66 = arith.constant 0 : index
    %c0_67 = arith.constant 0 : index
    %64 = vector.load %arg8[%c0_64, %c1_65, %c0_66, %c0_67] : memref<1x2x1x16xf32, #tpu.memory_space<vmem>>, vector<1x1x1x16xf32>
    %65 = vector.shape_cast %64 : vector<1x1x1x16xf32> to vector<1x16xf32>
    %66 = vector.broadcast %65 : vector<1x16xf32> to vector<96x16xf32>
    %67 = arith.addf %63, %66 : vector<96x16xf32>
    %cst_68 = arith.constant dense<0.000000e+00> : vector<96x96xf32>
    %68 = tpu.matmul %53, %60, %cst_68 {dimension_numbers = #tpu.dot_dimension_numbers<[1], [1], [0], [0], [0, 0, 1, 0], [], []>} : vector<96x16xf32>, vector<96x16xf32>, vector<96x96xf32> -> vector<96x96xf32>
    %69 = arith.addf %68, %4 : vector<96x96xf32>
    %cst_69 = arith.constant dense<0xFF800000> : vector<96xf32>
    %70 = vector.multi_reduction <maximumf>, %69, %cst_69 [1] : vector<96x96xf32> to vector<96xf32>
    %71 = vector.shape_cast %70 : vector<96xf32> to vector<96x1xf32>
    %72 = vector.broadcast %71 : vector<96x1xf32> to vector<96x96xf32>
    %73 = arith.subf %69, %72 : vector<96x96xf32>
    %74 = math.exp %73 : vector<96x96xf32>
    %cst_70 = arith.constant dense<0.000000e+00> : vector<96xf32>
    %75 = vector.multi_reduction <add>, %74, %cst_70 [1] : vector<96x96xf32> to vector<96xf32>
    %76 = vector.shape_cast %75 : vector<96xf32> to vector<96x1xf32>
    %77 = vector.broadcast %76 : vector<96x1xf32> to vector<96x96xf32>
    %78 = arith.divf %74, %77 : vector<96x96xf32>
    %cst_71 = arith.constant dense<0.000000e+00> : vector<96x16xf32>
    %79 = tpu.matmul %78, %67, %cst_71 {dimension_numbers = #tpu.dot_dimension_numbers<[1], [0], [0], [1], [0, 0, 1, 1], [], []>} : vector<96x96xf32>, vector<96x16xf32>, vector<96x16xf32> -> vector<96x16xf32>
    %c0_72 = arith.constant 0 : index
    %c1_73 = arith.constant 1 : index
    %c0_74 = arith.constant 0 : index
    %c0_75 = arith.constant 0 : index
    %80 = vector.load %arg9[%c0_72, %c1_73, %c0_74, %c0_75] : memref<1x2x16x32xf32, #tpu.memory_space<vmem>>, vector<1x1x16x32xf32>
    %81 = vector.shape_cast %80 : vector<1x1x16x32xf32> to vector<16x32xf32>
    %cst_76 = arith.constant dense<0.000000e+00> : vector<96x32xf32>
    %82 = tpu.matmul %79, %81, %cst_76 {dimension_numbers = #tpu.dot_dimension_numbers<[1], [0], [0], [1], [0, 0, 1, 1], [], []>} : vector<96x16xf32>, vector<16x32xf32>, vector<96x32xf32> -> vector<96x32xf32>
    %83 = arith.addf %44, %82 : vector<96x32xf32>
    %c0_77 = arith.constant 0 : index
    %c0_78 = arith.constant 0 : index
    %c0_79 = arith.constant 0 : index
    %84 = vector.load %arg10[%c0_77, %c0_78, %c0_79] : memref<1x1x32xf32, #tpu.memory_space<vmem>>, vector<1x1x32xf32>
    %85 = vector.shape_cast %84 : vector<1x1x32xf32> to vector<1x32xf32>
    %86 = vector.broadcast %85 : vector<1x32xf32> to vector<96x32xf32>
    %87 = arith.addf %83, %86 : vector<96x32xf32>
    %88 = arith.addf %87, %3 : vector<96x32xf32>
    %c0_80 = arith.constant 0 : index
    %c0_81 = arith.constant 0 : index
    %c0_82 = arith.constant 0 : index
    %89 = vector.load %arg11[%c0_80, %c0_81, %c0_82] : memref<1x1x32xf32, #tpu.memory_space<vmem>>, vector<1x1x32xf32>
    %90 = vector.shape_cast %89 : vector<1x1x32xf32> to vector<1x32xf32>
    %c0_83 = arith.constant 0 : index
    %c0_84 = arith.constant 0 : index
    %c0_85 = arith.constant 0 : index
    %91 = vector.load %arg12[%c0_83, %c0_84, %c0_85] : memref<1x1x32xf32, #tpu.memory_space<vmem>>, vector<1x1x32xf32>
    %92 = vector.shape_cast %91 : vector<1x1x32xf32> to vector<1x32xf32>
    %cst_86 = arith.constant dense<0.000000e+00> : vector<96xf32>
    %93 = vector.multi_reduction <add>, %88, %cst_86 [1] : vector<96x32xf32> to vector<96xf32>
    %94 = vector.shape_cast %93 : vector<96xf32> to vector<96x1xf32>
    %cst_87 = arith.constant 3.200000e+01 : f32
    %95 = vector.broadcast %cst_87 : f32 to vector<96x1xf32>
    %96 = arith.divf %94, %95 : vector<96x1xf32>
    %97 = vector.broadcast %96 : vector<96x1xf32> to vector<96x32xf32>
    %98 = arith.subf %88, %97 : vector<96x32xf32>
    %99 = arith.mulf %98, %98 : vector<96x32xf32>
    %cst_88 = arith.constant dense<0.000000e+00> : vector<96xf32>
    %100 = vector.multi_reduction <add>, %99, %cst_88 [1] : vector<96x32xf32> to vector<96xf32>
    %101 = vector.shape_cast %100 : vector<96xf32> to vector<96x1xf32>
    %cst_89 = arith.constant 3.200000e+01 : f32
    %102 = vector.broadcast %cst_89 : f32 to vector<96x1xf32>
    %103 = arith.divf %101, %102 : vector<96x1xf32>
    %104 = vector.broadcast %96 : vector<96x1xf32> to vector<96x32xf32>
    %105 = arith.subf %88, %104 : vector<96x32xf32>
    %cst_90 = arith.constant 9.99999996E-13 : f32
    %106 = vector.broadcast %cst_90 : f32 to vector<96x1xf32>
    %107 = arith.addf %103, %106 : vector<96x1xf32>
    %108 = math.rsqrt %107 : vector<96x1xf32>
    %109 = vector.broadcast %108 : vector<96x1xf32> to vector<96x32xf32>
    %110 = arith.mulf %105, %109 : vector<96x32xf32>
    %111 = vector.broadcast %90 : vector<1x32xf32> to vector<96x32xf32>
    %112 = arith.mulf %110, %111 : vector<96x32xf32>
    %113 = vector.broadcast %92 : vector<1x32xf32> to vector<96x32xf32>
    %114 = arith.addf %112, %113 : vector<96x32xf32>
    %c0_91 = arith.constant 0 : index
    %c0_92 = arith.constant 0 : index
    %c0_93 = arith.constant 0 : index
    %115 = vector.load %arg13[%c0_91, %c0_92, %c0_93] : memref<1x32x64xf32, #tpu.memory_space<vmem>>, vector<1x32x64xf32>
    %116 = vector.shape_cast %115 : vector<1x32x64xf32> to vector<32x64xf32>
    %cst_94 = arith.constant dense<0.000000e+00> : vector<96x64xf32>
    %117 = tpu.matmul %114, %116, %cst_94 {dimension_numbers = #tpu.dot_dimension_numbers<[1], [0], [0], [1], [0, 0, 1, 1], [], []>} : vector<96x32xf32>, vector<32x64xf32>, vector<96x64xf32> -> vector<96x64xf32>
    %c0_95 = arith.constant 0 : index
    %c0_96 = arith.constant 0 : index
    %c0_97 = arith.constant 0 : index
    %118 = vector.load %arg14[%c0_95, %c0_96, %c0_97] : memref<1x1x64xf32, #tpu.memory_space<vmem>>, vector<1x1x64xf32>
    %119 = vector.shape_cast %118 : vector<1x1x64xf32> to vector<1x64xf32>
    %120 = vector.broadcast %119 : vector<1x64xf32> to vector<96x64xf32>
    %121 = arith.addf %117, %120 : vector<96x64xf32>
    %122 = arith.mulf %121, %121 : vector<96x64xf32>
    %123 = arith.mulf %121, %122 : vector<96x64xf32>
    %cst_98 = arith.constant 4.471500e-02 : f32
    %124 = vector.broadcast %cst_98 : f32 to vector<96x64xf32>
    %125 = arith.mulf %124, %123 : vector<96x64xf32>
    %126 = arith.addf %121, %125 : vector<96x64xf32>
    %cst_99 = arith.constant 0.797884583 : f32
    %127 = vector.broadcast %cst_99 : f32 to vector<96x64xf32>
    %128 = arith.mulf %127, %126 : vector<96x64xf32>
    %129 = math.tanh %128 : vector<96x64xf32>
    %cst_100 = arith.constant 1.000000e+00 : f32
    %130 = vector.broadcast %cst_100 : f32 to vector<96x64xf32>
    %131 = arith.addf %130, %129 : vector<96x64xf32>
    %cst_101 = arith.constant 5.000000e-01 : f32
    %132 = vector.broadcast %cst_101 : f32 to vector<96x64xf32>
    %133 = arith.mulf %132, %131 : vector<96x64xf32>
    %134 = arith.mulf %121, %133 : vector<96x64xf32>
    %c0_102 = arith.constant 0 : index
    %c0_103 = arith.constant 0 : index
    %c0_104 = arith.constant 0 : index
    %135 = vector.load %arg15[%c0_102, %c0_103, %c0_104] : memref<1x64x32xf32, #tpu.memory_space<vmem>>, vector<1x64x32xf32>
    %136 = vector.shape_cast %135 : vector<1x64x32xf32> to vector<64x32xf32>
    %cst_105 = arith.constant dense<0.000000e+00> : vector<96x32xf32>
    %137 = tpu.matmul %134, %136, %cst_105 {dimension_numbers = #tpu.dot_dimension_numbers<[1], [0], [0], [1], [0, 0, 1, 1], [], []>} : vector<96x64xf32>, vector<64x32xf32>, vector<96x32xf32> -> vector<96x32xf32>
    %c0_106 = arith.constant 0 : index
    %c0_107 = arith.constant 0 : index
    %c0_108 = arith.constant 0 : index
    %138 = vector.load %arg16[%c0_106, %c0_107, %c0_108] : memref<1x1x32xf32, #tpu.memory_space<vmem>>, vector<1x1x32xf32>
    %139 = vector.shape_cast %138 : vector<1x1x32xf32> to vector<1x32xf32>
    %140 = vector.broadcast %139 : vector<1x32xf32> to vector<96x32xf32>
    %141 = arith.addf %137, %140 : vector<96x32xf32>
    %142 = arith.addf %141, %114 : vector<96x32xf32>
    %c0_109 = arith.constant 0 : index
    %c0_110 = arith.constant 0 : index
    %c0_111 = arith.constant 0 : index
    %143 = vector.load %arg17[%c0_109, %c0_110, %c0_111] : memref<1x1x32xf32, #tpu.memory_space<vmem>>, vector<1x1x32xf32>
    %144 = vector.shape_cast %143 : vector<1x1x32xf32> to vector<1x32xf32>
    %c0_112 = arith.constant 0 : index
    %c0_113 = arith.constant 0 : index
    %c0_114 = arith.constant 0 : index
    %145 = vector.load %arg18[%c0_112, %c0_113, %c0_114] : memref<1x1x32xf32, #tpu.memory_space<vmem>>, vector<1x1x32xf32>
    %146 = vector.shape_cast %145 : vector<1x1x32xf32> to vector<1x32xf32>
    %cst_115 = arith.constant dense<0.000000e+00> : vector<96xf32>
    %147 = vector.multi_reduction <add>, %142, %cst_115 [1] : vector<96x32xf32> to vector<96xf32>
    %148 = vector.shape_cast %147 : vector<96xf32> to vector<96x1xf32>
    %cst_116 = arith.constant 3.200000e+01 : f32
    %149 = vector.broadcast %cst_116 : f32 to vector<96x1xf32>
    %150 = arith.divf %148, %149 : vector<96x1xf32>
    %151 = vector.broadcast %150 : vector<96x1xf32> to vector<96x32xf32>
    %152 = arith.subf %142, %151 : vector<96x32xf32>
    %153 = arith.mulf %152, %152 : vector<96x32xf32>
    %cst_117 = arith.constant dense<0.000000e+00> : vector<96xf32>
    %154 = vector.multi_reduction <add>, %153, %cst_117 [1] : vector<96x32xf32> to vector<96xf32>
    %155 = vector.shape_cast %154 : vector<96xf32> to vector<96x1xf32>
    %cst_118 = arith.constant 3.200000e+01 : f32
    %156 = vector.broadcast %cst_118 : f32 to vector<96x1xf32>
    %157 = arith.divf %155, %156 : vector<96x1xf32>
    %158 = vector.broadcast %150 : vector<96x1xf32> to vector<96x32xf32>
    %159 = arith.subf %142, %158 : vector<96x32xf32>
    %cst_119 = arith.constant 9.99999996E-13 : f32
    %160 = vector.broadcast %cst_119 : f32 to vector<96x1xf32>
    %161 = arith.addf %157, %160 : vector<96x1xf32>
    %162 = math.rsqrt %161 : vector<96x1xf32>
    %163 = vector.broadcast %162 : vector<96x1xf32> to vector<96x32xf32>
    %164 = arith.mulf %159, %163 : vector<96x32xf32>
    %165 = vector.broadcast %144 : vector<1x32xf32> to vector<96x32xf32>
    %166 = arith.mulf %164, %165 : vector<96x32xf32>
    %167 = vector.broadcast %146 : vector<1x32xf32> to vector<96x32xf32>
    %168 = arith.addf %166, %167 : vector<96x32xf32>
    %c0_120 = arith.constant 0 : index
    %c0_121 = arith.constant 0 : index
    %169 = vector.load %arg20[%c0_120, %c0_121] : memref<96x32xf32, #tpu.memory_space<vmem>>, vector<96x32xf32>
    tpu.vector_store %arg20[%c0_120, %c0_121], %168 {strides = array<i32>} : memref<96x32xf32, #tpu.memory_space<vmem>>, vector<96x32xf32>,
    %c1_i32 = arith.constant 1 : i32
    %170 = arith.cmpi eq, %arg0, %c1_i32 : i32
    %171 = arith.extui %170 : i1 to i32
    %c0_i32_122 = arith.constant 0 : i32
    %172 = arith.cmpi ne, %171, %c0_i32_122 : i32
    scf.if %172 {
      %c0_123 = arith.constant 0 : index
      %c0_124 = arith.constant 0 : index
      %173 = vector.load %arg19[%c0_123, %c0_124] : memref<96x32xf32, #tpu.memory_space<vmem>>, vector<96x32xf32>
      tpu.vector_store %arg19[%c0_123, %c0_124], %168 {strides = array<i32>} : memref<96x32xf32, #tpu.memory_space<vmem>>, vector<96x32xf32>,
    } else {
    }
    return
  }
  func.func @transform_0(%arg0: i32) -> (i32, i32) {
    %c0_i32 = arith.constant 0 : i32
    %c0_i32_0 = arith.constant 0 : i32
    %c0_i32_1 = arith.constant 0 : i32
    return %c0_i32, %c0_i32_0 : i32, i32
  }
  func.func @transform_1(%arg0: i32) -> (i32, i32) {
    %c0_i32 = arith.constant 0 : i32
    %c0_i32_0 = arith.constant 0 : i32
    %c0_i32_1 = arith.constant 0 : i32
    return %c0_i32, %c0_i32_0 : i32, i32
  }
  func.func @transform_2(%arg0: i32) -> (i32, i32, i32, i32) {
    %c0_i32 = arith.constant 0 : i32
    %c0_i32_0 = arith.constant 0 : i32
    %c0_i32_1 = arith.constant 0 : i32
    %c0_i32_2 = arith.constant 0 : i32
    return %arg0, %c0_i32, %c0_i32_0, %c0_i32_1 : i32, i32, i32, i32
  }
  func.func @transform_3(%arg0: i32) -> (i32, i32, i32, i32) {
    %c0_i32 = arith.constant 0 : i32
    %c0_i32_0 = arith.constant 0 : i32
    %c0_i32_1 = arith.constant 0 : i32
    %c0_i32_2 = arith.constant 0 : i32
    return %arg0, %c0_i32, %c0_i32_0, %c0_i32_1 : i32, i32, i32, i32
  }
  func.func @transform_4(%arg0: i32) -> (i32, i32, i32, i32) {
    %c0_i32 = arith.constant 0 : i32
    %c0_i32_0 = arith.constant 0 : i32
    %c0_i32_1 = arith.constant 0 : i32
    %c0_i32_2 = arith.constant 0 : i32
    return %arg0, %c0_i32, %c0_i32_0, %c0_i32_1 : i32, i32, i32, i32
  }
  func.func @transform_5(%arg0: i32) -> (i32, i32, i32, i32) {
    %c0_i32 = arith.constant 0 : i32
    %c0_i32_0 = arith.constant 0 : i32
    %c0_i32_1 = arith.constant 0 : i32
    %c0_i32_2 = arith.constant 0 : i32
    return %arg0, %c0_i32, %c0_i32_0, %c0_i32_1 : i32, i32, i32, i32
  }
  func.func @transform_6(%arg0: i32) -> (i32, i32, i32, i32) {
    %c0_i32 = arith.constant 0 : i32
    %c0_i32_0 = arith.constant 0 : i32
    %c0_i32_1 = arith.constant 0 : i32
    %c0_i32_2 = arith.constant 0 : i32
    return %arg0, %c0_i32, %c0_i32_0, %c0_i32_1 : i32, i32, i32, i32
  }
  func.func @transform_7(%arg0: i32) -> (i32, i32, i32, i32) {
    %c0_i32 = arith.constant 0 : i32
    %c0_i32_0 = arith.constant 0 : i32
    %c0_i32_1 = arith.constant 0 : i32
    %c0_i32_2 = arith.constant 0 : i32
    return %arg0, %c0_i32, %c0_i32_0, %c0_i32_1 : i32, i32, i32, i32
  }
  func.func @transform_8(%arg0: i32) -> (i32, i32, i32, i32) {
    %c0_i32 = arith.constant 0 : i32
    %c0_i32_0 = arith.constant 0 : i32
    %c0_i32_1 = arith.constant 0 : i32
    %c0_i32_2 = arith.constant 0 : i32
    return %arg0, %c0_i32, %c0_i32_0, %c0_i32_1 : i32, i32, i32, i32
  }
  func.func @transform_9(%arg0: i32) -> (i32, i32, i32) {
    %c0_i32 = arith.constant 0 : i32
    %c0_i32_0 = arith.constant 0 : i32
    %c0_i32_1 = arith.constant 0 : i32
    return %arg0, %c0_i32, %c0_i32_0 : i32, i32, i32
  }
  func.func @transform_10(%arg0: i32) -> (i32, i32, i32) {
    %c0_i32 = arith.constant 0 : i32
    %c0_i32_0 = arith.constant 0 : i32
    %c0_i32_1 = arith.constant 0 : i32
    return %arg0, %c0_i32, %c0_i32_0 : i32, i32, i32
  }
  func.func @transform_11(%arg0: i32) -> (i32, i32, i32) {
    %c0_i32 = arith.constant 0 : i32
    %c0_i32_0 = arith.constant 0 : i32
    %c0_i32_1 = arith.constant 0 : i32
    return %arg0, %c0_i32, %c0_i32_0 : i32, i32, i32
  }
  func.func @transform_12(%arg0: i32) -> (i32, i32, i32) {
    %c0_i32 = arith.constant 0 : i32
    %c0_i32_0 = arith.constant 0 : i32
    %c0_i32_1 = arith.constant 0 : i32
    return %arg0, %c0_i32, %c0_i32_0 : i32, i32, i32
  }
  func.func @transform_13(%arg0: i32) -> (i32, i32, i32) {
    %c0_i32 = arith.constant 0 : i32
    %c0_i32_0 = arith.constant 0 : i32
    %c0_i32_1 = arith.constant 0 : i32
    return %arg0, %c0_i32, %c0_i32_0 : i32, i32, i32
  }
  func.func @transform_14(%arg0: i32) -> (i32, i32, i32) {
    %c0_i32 = arith.constant 0 : i32
    %c0_i32_0 = arith.constant 0 : i32
    %c0_i32_1 = arith.constant 0 : i32
    return %arg0, %c0_i32, %c0_i32_0 : i32, i32, i32
  }
  func.func @transform_15(%arg0: i32) -> (i32, i32, i32) {
    %c0_i32 = arith.constant 0 : i32
    %c0_i32_0 = arith.constant 0 : i32
    %c0_i32_1 = arith.constant 0 : i32
    return %arg0, %c0_i32, %c0_i32_0 : i32, i32, i32
  }
  func.func @transform_16(%arg0: i32) -> (i32, i32, i32) {
    %c0_i32 = arith.constant 0 : i32
    %c0_i32_0 = arith.constant 0 : i32
    %c0_i32_1 = arith.constant 0 : i32
    return %arg0, %c0_i32, %c0_i32_0 : i32, i32, i32
  }
  func.func @transform_17(%arg0: i32) -> (i32, i32, i32) {
    %c0_i32 = arith.constant 0 : i32
    %c0_i32_0 = arith.constant 0 : i32
    %c0_i32_1 = arith.constant 0 : i32
    return %arg0, %c0_i32, %c0_i32_0 : i32, i32, i32
  }
  func.func @transform_18(%arg0: i32) -> (i32, i32) {
    %c0_i32 = arith.constant 0 : i32
    %c0_i32_0 = arith.constant 0 : i32
    %c0_i32_1 = arith.constant 0 : i32
    return %c0_i32, %c0_i32_0 : i32, i32
  }
}

module attributes {stable_mosaic.version = 11 : i64} {
  func.func @_stacked_encoder_kernel(%arg0: i32, %arg1: memref<48x32xf32, #tpu.memory_space<vmem>>, %arg2: memref<48x48xf32, #tpu.memory_space<vmem>>, %arg3: memref<1x2x32x16xf32, #tpu.memory_space<vmem>>, %arg4: memref<1x2x1x16xf32, #tpu.memory_space<vmem>>, %arg5: memref<1x2x32x16xf32, #tpu.memory_space<vmem>>, %arg6: memref<1x2x1x16xf32, #tpu.memory_space<vmem>>, %arg7: memref<1x2x32x16xf32, #tpu.memory_space<vmem>>, %arg8: memref<1x2x1x16xf32, #tpu.memory_space<vmem>>, %arg9: memref<1x2x16x32xf32, #tpu.memory_space<vmem>>, %arg10: memref<1x1x32xf32, #tpu.memory_space<vmem>>, %arg11: memref<1x1x32xf32, #tpu.memory_space<vmem>>, %arg12: memref<1x1x32xf32, #tpu.memory_space<vmem>>, %arg13: memref<1x32x64xf32, #tpu.memory_space<vmem>>, %arg14: memref<1x1x64xf32, #tpu.memory_space<vmem>>, %arg15: memref<1x64x32xf32, #tpu.memory_space<vmem>>, %arg16: memref<1x1x32xf32, #tpu.memory_space<vmem>>, %arg17: memref<1x1x32xf32, #tpu.memory_space<vmem>>, %arg18: memref<1x1x32xf32, #tpu.memory_space<vmem>>, %arg19: memref<32x27xf32, #tpu.memory_space<vmem>>, %arg20: memref<1x27xf32, #tpu.memory_space<vmem>>, %arg21: memref<48x27xf32, #tpu.memory_space<vmem>>, %arg22: memref<48x32xf32, #tpu.memory_space<vmem>>) attributes {dimension_semantics = [#tpu.dimension_semantics<arbitrary>], iteration_bounds = array<i64: 1>, scalar_prefetch = 0 : i64, scratch_operands = 1 : i64, tpu.core_type = #tpu.core_type<tc>, window_params = [{pipeline_mode = #tpu.pipeline_mode<synchronous>, transform_indices = @transform_0, window_bounds = array<i64: 48, 32>}, {pipeline_mode = #tpu.pipeline_mode<synchronous>, transform_indices = @transform_1, window_bounds = array<i64: 48, 48>}, {transform_indices = @transform_2, window_bounds = array<i64: 1, 2, 32, 16>}, {transform_indices = @transform_3, window_bounds = array<i64: 1, 2, 1, 16>}, {transform_indices = @transform_4, window_bounds = array<i64: 1, 2, 32, 16>}, {transform_indices = @transform_5, window_bounds = array<i64: 1, 2, 1, 16>}, {transform_indices = @transform_6, window_bounds = array<i64: 1, 2, 32, 16>}, {transform_indices = @transform_7, window_bounds = array<i64: 1, 2, 1, 16>}, {transform_indices = @transform_8, window_bounds = array<i64: 1, 2, 16, 32>}, {transform_indices = @transform_9, window_bounds = array<i64: 1, 1, 32>}, {transform_indices = @transform_10, window_bounds = array<i64: 1, 1, 32>}, {transform_indices = @transform_11, window_bounds = array<i64: 1, 1, 32>}, {transform_indices = @transform_12, window_bounds = array<i64: 1, 32, 64>}, {transform_indices = @transform_13, window_bounds = array<i64: 1, 1, 64>}, {transform_indices = @transform_14, window_bounds = array<i64: 1, 64, 32>}, {transform_indices = @transform_15, window_bounds = array<i64: 1, 1, 32>}, {transform_indices = @transform_16, window_bounds = array<i64: 1, 1, 32>}, {transform_indices = @transform_17, window_bounds = array<i64: 1, 1, 32>}, {pipeline_mode = #tpu.pipeline_mode<synchronous>, transform_indices = @transform_18, window_bounds = array<i64: 32, 27>}, {pipeline_mode = #tpu.pipeline_mode<synchronous>, transform_indices = @transform_19, window_bounds = array<i64: 1, 27>}, {pipeline_mode = #tpu.pipeline_mode<synchronous>, transform_indices = @transform_20, window_bounds = array<i64: 48, 27>}]} {
    %c0_i32 = arith.constant 0 : i32
    %0 = arith.cmpi eq, %arg0, %c0_i32 : i32
    %1 = arith.extui %0 : i1 to i32
    %c0_i32_0 = arith.constant 0 : i32
    %2 = arith.cmpi ne, %1, %c0_i32_0 : i32
    scf.if %2 {
      %c0_124 = arith.constant 0 : index
      %c0_125 = arith.constant 0 : index
      %173 = vector.load %arg1[%c0_124, %c0_125] : memref<48x32xf32, #tpu.memory_space<vmem>>, vector<48x32xf32>
      %c0_126 = arith.constant 0 : index
      %c0_127 = arith.constant 0 : index
      %174 = vector.load %arg22[%c0_126, %c0_127] : memref<48x32xf32, #tpu.memory_space<vmem>>, vector<48x32xf32>
      tpu.vector_store %arg22[%c0_126, %c0_127], %173 {strides = array<i32>} : memref<48x32xf32, #tpu.memory_space<vmem>>, vector<48x32xf32>,
    } else {
    }
    %c0 = arith.constant 0 : index
    %c0_1 = arith.constant 0 : index
    %3 = vector.load %arg22[%c0, %c0_1] : memref<48x32xf32, #tpu.memory_space<vmem>>, vector<48x32xf32>
    %c0_2 = arith.constant 0 : index
    %c0_3 = arith.constant 0 : index
    %4 = vector.load %arg2[%c0_2, %c0_3] : memref<48x48xf32, #tpu.memory_space<vmem>>, vector<48x48xf32>
    %cst = arith.constant 0.000000e+00 : f32
    %5 = vector.broadcast %cst : f32 to vector<48x32xf32>
    %c0_4 = arith.constant 0 : index
    %c0_5 = arith.constant 0 : index
    %c0_6 = arith.constant 0 : index
    %c0_7 = arith.constant 0 : index
    %6 = vector.load %arg3[%c0_4, %c0_5, %c0_6, %c0_7] : memref<1x2x32x16xf32, #tpu.memory_space<vmem>>, vector<1x1x32x16xf32>
    %7 = vector.shape_cast %6 : vector<1x1x32x16xf32> to vector<32x16xf32>
    %cst_8 = arith.constant dense<0.000000e+00> : vector<48x16xf32>
    %8 = tpu.matmul %3, %7, %cst_8 {dimension_numbers = #tpu.dot_dimension_numbers<[1], [0], [0], [1], [0, 0, 1, 1], [], []>} : vector<48x32xf32>, vector<32x16xf32>, vector<48x16xf32> -> vector<48x16xf32>
    %c0_9 = arith.constant 0 : index
    %c0_10 = arith.constant 0 : index
    %c0_11 = arith.constant 0 : index
    %c0_12 = arith.constant 0 : index
    %9 = vector.load %arg4[%c0_9, %c0_10, %c0_11, %c0_12] : memref<1x2x1x16xf32, #tpu.memory_space<vmem>>, vector<1x1x1x16xf32>
    %10 = vector.shape_cast %9 : vector<1x1x1x16xf32> to vector<1x16xf32>
    %11 = vector.broadcast %10 : vector<1x16xf32> to vector<48x16xf32>
    %12 = arith.addf %8, %11 : vector<48x16xf32>
    %cst_13 = arith.constant 2.500000e-01 : f32
    %13 = vector.broadcast %cst_13 : f32 to vector<48x16xf32>
    %14 = arith.mulf %12, %13 : vector<48x16xf32>
    %c0_14 = arith.constant 0 : index
    %c0_15 = arith.constant 0 : index
    %c0_16 = arith.constant 0 : index
    %c0_17 = arith.constant 0 : index
    %15 = vector.load %arg5[%c0_14, %c0_15, %c0_16, %c0_17] : memref<1x2x32x16xf32, #tpu.memory_space<vmem>>, vector<1x1x32x16xf32>
    %16 = vector.shape_cast %15 : vector<1x1x32x16xf32> to vector<32x16xf32>
    %cst_18 = arith.constant dense<0.000000e+00> : vector<48x16xf32>
    %17 = tpu.matmul %3, %16, %cst_18 {dimension_numbers = #tpu.dot_dimension_numbers<[1], [0], [0], [1], [0, 0, 1, 1], [], []>} : vector<48x32xf32>, vector<32x16xf32>, vector<48x16xf32> -> vector<48x16xf32>
    %c0_19 = arith.constant 0 : index
    %c0_20 = arith.constant 0 : index
    %c0_21 = arith.constant 0 : index
    %c0_22 = arith.constant 0 : index
    %18 = vector.load %arg6[%c0_19, %c0_20, %c0_21, %c0_22] : memref<1x2x1x16xf32, #tpu.memory_space<vmem>>, vector<1x1x1x16xf32>
    %19 = vector.shape_cast %18 : vector<1x1x1x16xf32> to vector<1x16xf32>
    %20 = vector.broadcast %19 : vector<1x16xf32> to vector<48x16xf32>
    %21 = arith.addf %17, %20 : vector<48x16xf32>
    %c0_23 = arith.constant 0 : index
    %c0_24 = arith.constant 0 : index
    %c0_25 = arith.constant 0 : index
    %c0_26 = arith.constant 0 : index
    %22 = vector.load %arg7[%c0_23, %c0_24, %c0_25, %c0_26] : memref<1x2x32x16xf32, #tpu.memory_space<vmem>>, vector<1x1x32x16xf32>
    %23 = vector.shape_cast %22 : vector<1x1x32x16xf32> to vector<32x16xf32>
    %cst_27 = arith.constant dense<0.000000e+00> : vector<48x16xf32>
    %24 = tpu.matmul %3, %23, %cst_27 {dimension_numbers = #tpu.dot_dimension_numbers<[1], [0], [0], [1], [0, 0, 1, 1], [], []>} : vector<48x32xf32>, vector<32x16xf32>, vector<48x16xf32> -> vector<48x16xf32>
    %c0_28 = arith.constant 0 : index
    %c0_29 = arith.constant 0 : index
    %c0_30 = arith.constant 0 : index
    %c0_31 = arith.constant 0 : index
    %25 = vector.load %arg8[%c0_28, %c0_29, %c0_30, %c0_31] : memref<1x2x1x16xf32, #tpu.memory_space<vmem>>, vector<1x1x1x16xf32>
    %26 = vector.shape_cast %25 : vector<1x1x1x16xf32> to vector<1x16xf32>
    %27 = vector.broadcast %26 : vector<1x16xf32> to vector<48x16xf32>
    %28 = arith.addf %24, %27 : vector<48x16xf32>
    %cst_32 = arith.constant dense<0.000000e+00> : vector<48x48xf32>
    %29 = tpu.matmul %14, %21, %cst_32 {dimension_numbers = #tpu.dot_dimension_numbers<[1], [1], [0], [0], [0, 0, 1, 0], [], []>} : vector<48x16xf32>, vector<48x16xf32>, vector<48x48xf32> -> vector<48x48xf32>
    %30 = arith.addf %29, %4 : vector<48x48xf32>
    %cst_33 = arith.constant dense<0xFF800000> : vector<48xf32>
    %31 = vector.multi_reduction <maximumf>, %30, %cst_33 [1] : vector<48x48xf32> to vector<48xf32>
    %32 = vector.shape_cast %31 : vector<48xf32> to vector<48x1xf32>
    %33 = vector.broadcast %32 : vector<48x1xf32> to vector<48x48xf32>
    %34 = arith.subf %30, %33 : vector<48x48xf32>
    %35 = math.exp %34 : vector<48x48xf32>
    %cst_34 = arith.constant dense<0.000000e+00> : vector<48xf32>
    %36 = vector.multi_reduction <add>, %35, %cst_34 [1] : vector<48x48xf32> to vector<48xf32>
    %37 = vector.shape_cast %36 : vector<48xf32> to vector<48x1xf32>
    %38 = vector.broadcast %37 : vector<48x1xf32> to vector<48x48xf32>
    %39 = arith.divf %35, %38 : vector<48x48xf32>
    %cst_35 = arith.constant dense<0.000000e+00> : vector<48x16xf32>
    %40 = tpu.matmul %39, %28, %cst_35 {dimension_numbers = #tpu.dot_dimension_numbers<[1], [0], [0], [1], [0, 0, 1, 1], [], []>} : vector<48x48xf32>, vector<48x16xf32>, vector<48x16xf32> -> vector<48x16xf32>
    %c0_36 = arith.constant 0 : index
    %c0_37 = arith.constant 0 : index
    %c0_38 = arith.constant 0 : index
    %c0_39 = arith.constant 0 : index
    %41 = vector.load %arg9[%c0_36, %c0_37, %c0_38, %c0_39] : memref<1x2x16x32xf32, #tpu.memory_space<vmem>>, vector<1x1x16x32xf32>
    %42 = vector.shape_cast %41 : vector<1x1x16x32xf32> to vector<16x32xf32>
    %cst_40 = arith.constant dense<0.000000e+00> : vector<48x32xf32>
    %43 = tpu.matmul %40, %42, %cst_40 {dimension_numbers = #tpu.dot_dimension_numbers<[1], [0], [0], [1], [0, 0, 1, 1], [], []>} : vector<48x16xf32>, vector<16x32xf32>, vector<48x32xf32> -> vector<48x32xf32>
    %44 = arith.addf %5, %43 : vector<48x32xf32>
    %c0_41 = arith.constant 0 : index
    %c1 = arith.constant 1 : index
    %c0_42 = arith.constant 0 : index
    %c0_43 = arith.constant 0 : index
    %45 = vector.load %arg3[%c0_41, %c1, %c0_42, %c0_43] : memref<1x2x32x16xf32, #tpu.memory_space<vmem>>, vector<1x1x32x16xf32>
    %46 = vector.shape_cast %45 : vector<1x1x32x16xf32> to vector<32x16xf32>
    %cst_44 = arith.constant dense<0.000000e+00> : vector<48x16xf32>
    %47 = tpu.matmul %3, %46, %cst_44 {dimension_numbers = #tpu.dot_dimension_numbers<[1], [0], [0], [1], [0, 0, 1, 1], [], []>} : vector<48x32xf32>, vector<32x16xf32>, vector<48x16xf32> -> vector<48x16xf32>
    %c0_45 = arith.constant 0 : index
    %c1_46 = arith.constant 1 : index
    %c0_47 = arith.constant 0 : index
    %c0_48 = arith.constant 0 : index
    %48 = vector.load %arg4[%c0_45, %c1_46, %c0_47, %c0_48] : memref<1x2x1x16xf32, #tpu.memory_space<vmem>>, vector<1x1x1x16xf32>
    %49 = vector.shape_cast %48 : vector<1x1x1x16xf32> to vector<1x16xf32>
    %50 = vector.broadcast %49 : vector<1x16xf32> to vector<48x16xf32>
    %51 = arith.addf %47, %50 : vector<48x16xf32>
    %cst_49 = arith.constant 2.500000e-01 : f32
    %52 = vector.broadcast %cst_49 : f32 to vector<48x16xf32>
    %53 = arith.mulf %51, %52 : vector<48x16xf32>
    %c0_50 = arith.constant 0 : index
    %c1_51 = arith.constant 1 : index
    %c0_52 = arith.constant 0 : index
    %c0_53 = arith.constant 0 : index
    %54 = vector.load %arg5[%c0_50, %c1_51, %c0_52, %c0_53] : memref<1x2x32x16xf32, #tpu.memory_space<vmem>>, vector<1x1x32x16xf32>
    %55 = vector.shape_cast %54 : vector<1x1x32x16xf32> to vector<32x16xf32>
    %cst_54 = arith.constant dense<0.000000e+00> : vector<48x16xf32>
    %56 = tpu.matmul %3, %55, %cst_54 {dimension_numbers = #tpu.dot_dimension_numbers<[1], [0], [0], [1], [0, 0, 1, 1], [], []>} : vector<48x32xf32>, vector<32x16xf32>, vector<48x16xf32> -> vector<48x16xf32>
    %c0_55 = arith.constant 0 : index
    %c1_56 = arith.constant 1 : index
    %c0_57 = arith.constant 0 : index
    %c0_58 = arith.constant 0 : index
    %57 = vector.load %arg6[%c0_55, %c1_56, %c0_57, %c0_58] : memref<1x2x1x16xf32, #tpu.memory_space<vmem>>, vector<1x1x1x16xf32>
    %58 = vector.shape_cast %57 : vector<1x1x1x16xf32> to vector<1x16xf32>
    %59 = vector.broadcast %58 : vector<1x16xf32> to vector<48x16xf32>
    %60 = arith.addf %56, %59 : vector<48x16xf32>
    %c0_59 = arith.constant 0 : index
    %c1_60 = arith.constant 1 : index
    %c0_61 = arith.constant 0 : index
    %c0_62 = arith.constant 0 : index
    %61 = vector.load %arg7[%c0_59, %c1_60, %c0_61, %c0_62] : memref<1x2x32x16xf32, #tpu.memory_space<vmem>>, vector<1x1x32x16xf32>
    %62 = vector.shape_cast %61 : vector<1x1x32x16xf32> to vector<32x16xf32>
    %cst_63 = arith.constant dense<0.000000e+00> : vector<48x16xf32>
    %63 = tpu.matmul %3, %62, %cst_63 {dimension_numbers = #tpu.dot_dimension_numbers<[1], [0], [0], [1], [0, 0, 1, 1], [], []>} : vector<48x32xf32>, vector<32x16xf32>, vector<48x16xf32> -> vector<48x16xf32>
    %c0_64 = arith.constant 0 : index
    %c1_65 = arith.constant 1 : index
    %c0_66 = arith.constant 0 : index
    %c0_67 = arith.constant 0 : index
    %64 = vector.load %arg8[%c0_64, %c1_65, %c0_66, %c0_67] : memref<1x2x1x16xf32, #tpu.memory_space<vmem>>, vector<1x1x1x16xf32>
    %65 = vector.shape_cast %64 : vector<1x1x1x16xf32> to vector<1x16xf32>
    %66 = vector.broadcast %65 : vector<1x16xf32> to vector<48x16xf32>
    %67 = arith.addf %63, %66 : vector<48x16xf32>
    %cst_68 = arith.constant dense<0.000000e+00> : vector<48x48xf32>
    %68 = tpu.matmul %53, %60, %cst_68 {dimension_numbers = #tpu.dot_dimension_numbers<[1], [1], [0], [0], [0, 0, 1, 0], [], []>} : vector<48x16xf32>, vector<48x16xf32>, vector<48x48xf32> -> vector<48x48xf32>
    %69 = arith.addf %68, %4 : vector<48x48xf32>
    %cst_69 = arith.constant dense<0xFF800000> : vector<48xf32>
    %70 = vector.multi_reduction <maximumf>, %69, %cst_69 [1] : vector<48x48xf32> to vector<48xf32>
    %71 = vector.shape_cast %70 : vector<48xf32> to vector<48x1xf32>
    %72 = vector.broadcast %71 : vector<48x1xf32> to vector<48x48xf32>
    %73 = arith.subf %69, %72 : vector<48x48xf32>
    %74 = math.exp %73 : vector<48x48xf32>
    %cst_70 = arith.constant dense<0.000000e+00> : vector<48xf32>
    %75 = vector.multi_reduction <add>, %74, %cst_70 [1] : vector<48x48xf32> to vector<48xf32>
    %76 = vector.shape_cast %75 : vector<48xf32> to vector<48x1xf32>
    %77 = vector.broadcast %76 : vector<48x1xf32> to vector<48x48xf32>
    %78 = arith.divf %74, %77 : vector<48x48xf32>
    %cst_71 = arith.constant dense<0.000000e+00> : vector<48x16xf32>
    %79 = tpu.matmul %78, %67, %cst_71 {dimension_numbers = #tpu.dot_dimension_numbers<[1], [0], [0], [1], [0, 0, 1, 1], [], []>} : vector<48x48xf32>, vector<48x16xf32>, vector<48x16xf32> -> vector<48x16xf32>
    %c0_72 = arith.constant 0 : index
    %c1_73 = arith.constant 1 : index
    %c0_74 = arith.constant 0 : index
    %c0_75 = arith.constant 0 : index
    %80 = vector.load %arg9[%c0_72, %c1_73, %c0_74, %c0_75] : memref<1x2x16x32xf32, #tpu.memory_space<vmem>>, vector<1x1x16x32xf32>
    %81 = vector.shape_cast %80 : vector<1x1x16x32xf32> to vector<16x32xf32>
    %cst_76 = arith.constant dense<0.000000e+00> : vector<48x32xf32>
    %82 = tpu.matmul %79, %81, %cst_76 {dimension_numbers = #tpu.dot_dimension_numbers<[1], [0], [0], [1], [0, 0, 1, 1], [], []>} : vector<48x16xf32>, vector<16x32xf32>, vector<48x32xf32> -> vector<48x32xf32>
    %83 = arith.addf %44, %82 : vector<48x32xf32>
    %c0_77 = arith.constant 0 : index
    %c0_78 = arith.constant 0 : index
    %c0_79 = arith.constant 0 : index
    %84 = vector.load %arg10[%c0_77, %c0_78, %c0_79] : memref<1x1x32xf32, #tpu.memory_space<vmem>>, vector<1x1x32xf32>
    %85 = vector.shape_cast %84 : vector<1x1x32xf32> to vector<1x32xf32>
    %86 = vector.broadcast %85 : vector<1x32xf32> to vector<48x32xf32>
    %87 = arith.addf %83, %86 : vector<48x32xf32>
    %88 = arith.addf %87, %3 : vector<48x32xf32>
    %c0_80 = arith.constant 0 : index
    %c0_81 = arith.constant 0 : index
    %c0_82 = arith.constant 0 : index
    %89 = vector.load %arg11[%c0_80, %c0_81, %c0_82] : memref<1x1x32xf32, #tpu.memory_space<vmem>>, vector<1x1x32xf32>
    %90 = vector.shape_cast %89 : vector<1x1x32xf32> to vector<1x32xf32>
    %c0_83 = arith.constant 0 : index
    %c0_84 = arith.constant 0 : index
    %c0_85 = arith.constant 0 : index
    %91 = vector.load %arg12[%c0_83, %c0_84, %c0_85] : memref<1x1x32xf32, #tpu.memory_space<vmem>>, vector<1x1x32xf32>
    %92 = vector.shape_cast %91 : vector<1x1x32xf32> to vector<1x32xf32>
    %cst_86 = arith.constant dense<0.000000e+00> : vector<48xf32>
    %93 = vector.multi_reduction <add>, %88, %cst_86 [1] : vector<48x32xf32> to vector<48xf32>
    %94 = vector.shape_cast %93 : vector<48xf32> to vector<48x1xf32>
    %cst_87 = arith.constant 3.200000e+01 : f32
    %95 = vector.broadcast %cst_87 : f32 to vector<48x1xf32>
    %96 = arith.divf %94, %95 : vector<48x1xf32>
    %97 = vector.broadcast %96 : vector<48x1xf32> to vector<48x32xf32>
    %98 = arith.subf %88, %97 : vector<48x32xf32>
    %99 = arith.mulf %98, %98 : vector<48x32xf32>
    %cst_88 = arith.constant dense<0.000000e+00> : vector<48xf32>
    %100 = vector.multi_reduction <add>, %99, %cst_88 [1] : vector<48x32xf32> to vector<48xf32>
    %101 = vector.shape_cast %100 : vector<48xf32> to vector<48x1xf32>
    %cst_89 = arith.constant 3.200000e+01 : f32
    %102 = vector.broadcast %cst_89 : f32 to vector<48x1xf32>
    %103 = arith.divf %101, %102 : vector<48x1xf32>
    %104 = vector.broadcast %96 : vector<48x1xf32> to vector<48x32xf32>
    %105 = arith.subf %88, %104 : vector<48x32xf32>
    %cst_90 = arith.constant 9.99999996E-13 : f32
    %106 = vector.broadcast %cst_90 : f32 to vector<48x1xf32>
    %107 = arith.addf %103, %106 : vector<48x1xf32>
    %108 = math.rsqrt %107 : vector<48x1xf32>
    %109 = vector.broadcast %108 : vector<48x1xf32> to vector<48x32xf32>
    %110 = arith.mulf %105, %109 : vector<48x32xf32>
    %111 = vector.broadcast %90 : vector<1x32xf32> to vector<48x32xf32>
    %112 = arith.mulf %110, %111 : vector<48x32xf32>
    %113 = vector.broadcast %92 : vector<1x32xf32> to vector<48x32xf32>
    %114 = arith.addf %112, %113 : vector<48x32xf32>
    %c0_91 = arith.constant 0 : index
    %c0_92 = arith.constant 0 : index
    %c0_93 = arith.constant 0 : index
    %115 = vector.load %arg13[%c0_91, %c0_92, %c0_93] : memref<1x32x64xf32, #tpu.memory_space<vmem>>, vector<1x32x64xf32>
    %116 = vector.shape_cast %115 : vector<1x32x64xf32> to vector<32x64xf32>
    %cst_94 = arith.constant dense<0.000000e+00> : vector<48x64xf32>
    %117 = tpu.matmul %114, %116, %cst_94 {dimension_numbers = #tpu.dot_dimension_numbers<[1], [0], [0], [1], [0, 0, 1, 1], [], []>} : vector<48x32xf32>, vector<32x64xf32>, vector<48x64xf32> -> vector<48x64xf32>
    %c0_95 = arith.constant 0 : index
    %c0_96 = arith.constant 0 : index
    %c0_97 = arith.constant 0 : index
    %118 = vector.load %arg14[%c0_95, %c0_96, %c0_97] : memref<1x1x64xf32, #tpu.memory_space<vmem>>, vector<1x1x64xf32>
    %119 = vector.shape_cast %118 : vector<1x1x64xf32> to vector<1x64xf32>
    %120 = vector.broadcast %119 : vector<1x64xf32> to vector<48x64xf32>
    %121 = arith.addf %117, %120 : vector<48x64xf32>
    %122 = arith.mulf %121, %121 : vector<48x64xf32>
    %123 = arith.mulf %121, %122 : vector<48x64xf32>
    %cst_98 = arith.constant 4.471500e-02 : f32
    %124 = vector.broadcast %cst_98 : f32 to vector<48x64xf32>
    %125 = arith.mulf %124, %123 : vector<48x64xf32>
    %126 = arith.addf %121, %125 : vector<48x64xf32>
    %cst_99 = arith.constant 0.797884583 : f32
    %127 = vector.broadcast %cst_99 : f32 to vector<48x64xf32>
    %128 = arith.mulf %127, %126 : vector<48x64xf32>
    %129 = math.tanh %128 : vector<48x64xf32>
    %cst_100 = arith.constant 1.000000e+00 : f32
    %130 = vector.broadcast %cst_100 : f32 to vector<48x64xf32>
    %131 = arith.addf %130, %129 : vector<48x64xf32>
    %cst_101 = arith.constant 5.000000e-01 : f32
    %132 = vector.broadcast %cst_101 : f32 to vector<48x64xf32>
    %133 = arith.mulf %132, %131 : vector<48x64xf32>
    %134 = arith.mulf %121, %133 : vector<48x64xf32>
    %c0_102 = arith.constant 0 : index
    %c0_103 = arith.constant 0 : index
    %c0_104 = arith.constant 0 : index
    %135 = vector.load %arg15[%c0_102, %c0_103, %c0_104] : memref<1x64x32xf32, #tpu.memory_space<vmem>>, vector<1x64x32xf32>
    %136 = vector.shape_cast %135 : vector<1x64x32xf32> to vector<64x32xf32>
    %cst_105 = arith.constant dense<0.000000e+00> : vector<48x32xf32>
    %137 = tpu.matmul %134, %136, %cst_105 {dimension_numbers = #tpu.dot_dimension_numbers<[1], [0], [0], [1], [0, 0, 1, 1], [], []>} : vector<48x64xf32>, vector<64x32xf32>, vector<48x32xf32> -> vector<48x32xf32>
    %c0_106 = arith.constant 0 : index
    %c0_107 = arith.constant 0 : index
    %c0_108 = arith.constant 0 : index
    %138 = vector.load %arg16[%c0_106, %c0_107, %c0_108] : memref<1x1x32xf32, #tpu.memory_space<vmem>>, vector<1x1x32xf32>
    %139 = vector.shape_cast %138 : vector<1x1x32xf32> to vector<1x32xf32>
    %140 = vector.broadcast %139 : vector<1x32xf32> to vector<48x32xf32>
    %141 = arith.addf %137, %140 : vector<48x32xf32>
    %142 = arith.addf %141, %114 : vector<48x32xf32>
    %c0_109 = arith.constant 0 : index
    %c0_110 = arith.constant 0 : index
    %c0_111 = arith.constant 0 : index
    %143 = vector.load %arg17[%c0_109, %c0_110, %c0_111] : memref<1x1x32xf32, #tpu.memory_space<vmem>>, vector<1x1x32xf32>
    %144 = vector.shape_cast %143 : vector<1x1x32xf32> to vector<1x32xf32>
    %c0_112 = arith.constant 0 : index
    %c0_113 = arith.constant 0 : index
    %c0_114 = arith.constant 0 : index
    %145 = vector.load %arg18[%c0_112, %c0_113, %c0_114] : memref<1x1x32xf32, #tpu.memory_space<vmem>>, vector<1x1x32xf32>
    %146 = vector.shape_cast %145 : vector<1x1x32xf32> to vector<1x32xf32>
    %cst_115 = arith.constant dense<0.000000e+00> : vector<48xf32>
    %147 = vector.multi_reduction <add>, %142, %cst_115 [1] : vector<48x32xf32> to vector<48xf32>
    %148 = vector.shape_cast %147 : vector<48xf32> to vector<48x1xf32>
    %cst_116 = arith.constant 3.200000e+01 : f32
    %149 = vector.broadcast %cst_116 : f32 to vector<48x1xf32>
    %150 = arith.divf %148, %149 : vector<48x1xf32>
    %151 = vector.broadcast %150 : vector<48x1xf32> to vector<48x32xf32>
    %152 = arith.subf %142, %151 : vector<48x32xf32>
    %153 = arith.mulf %152, %152 : vector<48x32xf32>
    %cst_117 = arith.constant dense<0.000000e+00> : vector<48xf32>
    %154 = vector.multi_reduction <add>, %153, %cst_117 [1] : vector<48x32xf32> to vector<48xf32>
    %155 = vector.shape_cast %154 : vector<48xf32> to vector<48x1xf32>
    %cst_118 = arith.constant 3.200000e+01 : f32
    %156 = vector.broadcast %cst_118 : f32 to vector<48x1xf32>
    %157 = arith.divf %155, %156 : vector<48x1xf32>
    %158 = vector.broadcast %150 : vector<48x1xf32> to vector<48x32xf32>
    %159 = arith.subf %142, %158 : vector<48x32xf32>
    %cst_119 = arith.constant 9.99999996E-13 : f32
    %160 = vector.broadcast %cst_119 : f32 to vector<48x1xf32>
    %161 = arith.addf %157, %160 : vector<48x1xf32>
    %162 = math.rsqrt %161 : vector<48x1xf32>
    %163 = vector.broadcast %162 : vector<48x1xf32> to vector<48x32xf32>
    %164 = arith.mulf %159, %163 : vector<48x32xf32>
    %165 = vector.broadcast %144 : vector<1x32xf32> to vector<48x32xf32>
    %166 = arith.mulf %164, %165 : vector<48x32xf32>
    %167 = vector.broadcast %146 : vector<1x32xf32> to vector<48x32xf32>
    %168 = arith.addf %166, %167 : vector<48x32xf32>
    %c0_120 = arith.constant 0 : index
    %c0_121 = arith.constant 0 : index
    %169 = vector.load %arg22[%c0_120, %c0_121] : memref<48x32xf32, #tpu.memory_space<vmem>>, vector<48x32xf32>
    tpu.vector_store %arg22[%c0_120, %c0_121], %168 {strides = array<i32>} : memref<48x32xf32, #tpu.memory_space<vmem>>, vector<48x32xf32>,
    %c0_i32_122 = arith.constant 0 : i32
    %170 = arith.cmpi eq, %arg0, %c0_i32_122 : i32
    %171 = arith.extui %170 : i1 to i32
    %c0_i32_123 = arith.constant 0 : i32
    %172 = arith.cmpi ne, %171, %c0_i32_123 : i32
    scf.if %172 {
      %c0_124 = arith.constant 0 : index
      %c0_125 = arith.constant 0 : index
      %173 = vector.load %arg19[%c0_124, %c0_125] : memref<32x27xf32, #tpu.memory_space<vmem>>, vector<32x27xf32>
      %cst_126 = arith.constant dense<0.000000e+00> : vector<48x27xf32>
      %174 = tpu.matmul %168, %173, %cst_126 {dimension_numbers = #tpu.dot_dimension_numbers<[1], [0], [0], [1], [0, 0, 1, 1], [], []>} : vector<48x32xf32>, vector<32x27xf32>, vector<48x27xf32> -> vector<48x27xf32>
      %c0_127 = arith.constant 0 : index
      %c0_128 = arith.constant 0 : index
      %175 = vector.load %arg20[%c0_127, %c0_128] : memref<1x27xf32, #tpu.memory_space<vmem>>, vector<1x27xf32>
      %176 = vector.broadcast %175 : vector<1x27xf32> to vector<48x27xf32>
      %177 = arith.addf %174, %176 : vector<48x27xf32>
      %c0_129 = arith.constant 0 : index
      %c0_130 = arith.constant 0 : index
      %178 = vector.load %arg21[%c0_129, %c0_130] : memref<48x27xf32, #tpu.memory_space<vmem>>, vector<48x27xf32>
      tpu.vector_store %arg21[%c0_129, %c0_130], %177 {strides = array<i32>} : memref<48x27xf32, #tpu.memory_space<vmem>>, vector<48x27xf32>,
    } else {
    }
    return
  }
  func.func @transform_0(%arg0: i32) -> (i32, i32) {
    %c0_i32 = arith.constant 0 : i32
    %c0_i32_0 = arith.constant 0 : i32
    %c0_i32_1 = arith.constant 0 : i32
    return %c0_i32, %c0_i32_0 : i32, i32
  }
  func.func @transform_1(%arg0: i32) -> (i32, i32) {
    %c0_i32 = arith.constant 0 : i32
    %c0_i32_0 = arith.constant 0 : i32
    %c0_i32_1 = arith.constant 0 : i32
    return %c0_i32, %c0_i32_0 : i32, i32
  }
  func.func @transform_2(%arg0: i32) -> (i32, i32, i32, i32) {
    %c0_i32 = arith.constant 0 : i32
    %c0_i32_0 = arith.constant 0 : i32
    %c0_i32_1 = arith.constant 0 : i32
    %c0_i32_2 = arith.constant 0 : i32
    return %arg0, %c0_i32, %c0_i32_0, %c0_i32_1 : i32, i32, i32, i32
  }
  func.func @transform_3(%arg0: i32) -> (i32, i32, i32, i32) {
    %c0_i32 = arith.constant 0 : i32
    %c0_i32_0 = arith.constant 0 : i32
    %c0_i32_1 = arith.constant 0 : i32
    %c0_i32_2 = arith.constant 0 : i32
    return %arg0, %c0_i32, %c0_i32_0, %c0_i32_1 : i32, i32, i32, i32
  }
  func.func @transform_4(%arg0: i32) -> (i32, i32, i32, i32) {
    %c0_i32 = arith.constant 0 : i32
    %c0_i32_0 = arith.constant 0 : i32
    %c0_i32_1 = arith.constant 0 : i32
    %c0_i32_2 = arith.constant 0 : i32
    return %arg0, %c0_i32, %c0_i32_0, %c0_i32_1 : i32, i32, i32, i32
  }
  func.func @transform_5(%arg0: i32) -> (i32, i32, i32, i32) {
    %c0_i32 = arith.constant 0 : i32
    %c0_i32_0 = arith.constant 0 : i32
    %c0_i32_1 = arith.constant 0 : i32
    %c0_i32_2 = arith.constant 0 : i32
    return %arg0, %c0_i32, %c0_i32_0, %c0_i32_1 : i32, i32, i32, i32
  }
  func.func @transform_6(%arg0: i32) -> (i32, i32, i32, i32) {
    %c0_i32 = arith.constant 0 : i32
    %c0_i32_0 = arith.constant 0 : i32
    %c0_i32_1 = arith.constant 0 : i32
    %c0_i32_2 = arith.constant 0 : i32
    return %arg0, %c0_i32, %c0_i32_0, %c0_i32_1 : i32, i32, i32, i32
  }
  func.func @transform_7(%arg0: i32) -> (i32, i32, i32, i32) {
    %c0_i32 = arith.constant 0 : i32
    %c0_i32_0 = arith.constant 0 : i32
    %c0_i32_1 = arith.constant 0 : i32
    %c0_i32_2 = arith.constant 0 : i32
    return %arg0, %c0_i32, %c0_i32_0, %c0_i32_1 : i32, i32, i32, i32
  }
  func.func @transform_8(%arg0: i32) -> (i32, i32, i32, i32) {
    %c0_i32 = arith.constant 0 : i32
    %c0_i32_0 = arith.constant 0 : i32
    %c0_i32_1 = arith.constant 0 : i32
    %c0_i32_2 = arith.constant 0 : i32
    return %arg0, %c0_i32, %c0_i32_0, %c0_i32_1 : i32, i32, i32, i32
  }
  func.func @transform_9(%arg0: i32) -> (i32, i32, i32) {
    %c0_i32 = arith.constant 0 : i32
    %c0_i32_0 = arith.constant 0 : i32
    %c0_i32_1 = arith.constant 0 : i32
    return %arg0, %c0_i32, %c0_i32_0 : i32, i32, i32
  }
  func.func @transform_10(%arg0: i32) -> (i32, i32, i32) {
    %c0_i32 = arith.constant 0 : i32
    %c0_i32_0 = arith.constant 0 : i32
    %c0_i32_1 = arith.constant 0 : i32
    return %arg0, %c0_i32, %c0_i32_0 : i32, i32, i32
  }
  func.func @transform_11(%arg0: i32) -> (i32, i32, i32) {
    %c0_i32 = arith.constant 0 : i32
    %c0_i32_0 = arith.constant 0 : i32
    %c0_i32_1 = arith.constant 0 : i32
    return %arg0, %c0_i32, %c0_i32_0 : i32, i32, i32
  }
  func.func @transform_12(%arg0: i32) -> (i32, i32, i32) {
    %c0_i32 = arith.constant 0 : i32
    %c0_i32_0 = arith.constant 0 : i32
    %c0_i32_1 = arith.constant 0 : i32
    return %arg0, %c0_i32, %c0_i32_0 : i32, i32, i32
  }
  func.func @transform_13(%arg0: i32) -> (i32, i32, i32) {
    %c0_i32 = arith.constant 0 : i32
    %c0_i32_0 = arith.constant 0 : i32
    %c0_i32_1 = arith.constant 0 : i32
    return %arg0, %c0_i32, %c0_i32_0 : i32, i32, i32
  }
  func.func @transform_14(%arg0: i32) -> (i32, i32, i32) {
    %c0_i32 = arith.constant 0 : i32
    %c0_i32_0 = arith.constant 0 : i32
    %c0_i32_1 = arith.constant 0 : i32
    return %arg0, %c0_i32, %c0_i32_0 : i32, i32, i32
  }
  func.func @transform_15(%arg0: i32) -> (i32, i32, i32) {
    %c0_i32 = arith.constant 0 : i32
    %c0_i32_0 = arith.constant 0 : i32
    %c0_i32_1 = arith.constant 0 : i32
    return %arg0, %c0_i32, %c0_i32_0 : i32, i32, i32
  }
  func.func @transform_16(%arg0: i32) -> (i32, i32, i32) {
    %c0_i32 = arith.constant 0 : i32
    %c0_i32_0 = arith.constant 0 : i32
    %c0_i32_1 = arith.constant 0 : i32
    return %arg0, %c0_i32, %c0_i32_0 : i32, i32, i32
  }
  func.func @transform_17(%arg0: i32) -> (i32, i32, i32) {
    %c0_i32 = arith.constant 0 : i32
    %c0_i32_0 = arith.constant 0 : i32
    %c0_i32_1 = arith.constant 0 : i32
    return %arg0, %c0_i32, %c0_i32_0 : i32, i32, i32
  }
  func.func @transform_18(%arg0: i32) -> (i32, i32) {
    %c0_i32 = arith.constant 0 : i32
    %c0_i32_0 = arith.constant 0 : i32
    %c0_i32_1 = arith.constant 0 : i32
    return %c0_i32, %c0_i32_0 : i32, i32
  }
  func.func @transform_19(%arg0: i32) -> (i32, i32) {
    %c0_i32 = arith.constant 0 : i32
    %c0_i32_0 = arith.constant 0 : i32
    %c0_i32_1 = arith.constant 0 : i32
    return %c0_i32, %c0_i32_0 : i32, i32
  }
  func.func @transform_20(%arg0: i32) -> (i32, i32) {
    %c0_i32 = arith.constant 0 : i32
    %c0_i32_0 = arith.constant 0 : i32
    %c0_i32_1 = arith.constant 0 : i32
    return %c0_i32, %c0_i32_0 : i32, i32
  }
}

</mosaic_0001>

<bundles_post_ra>
// kernel: belief_tracker_forward.2
= control target key start
LH: loop header
LB: loop body
LE: loop exit
PB: predicated region body
PF: predicated region fallthrough
CT: control target
= control target key end

     0   :  { %s5385_s27 = smov 0   ;;  %s6850_s0 = inlined_call_operand.vmem [shape: f32[96,32], index: 0, kind: input, shape index: {}]   ;;  %s6851_s1 = inlined_call_operand.vmem [shape: f32[96,96], index: 1, kind: input, shape index: {}]   ;;  %s6852_s2 = inlined_call_operand.vmem [shape: f32[2,2,32,16], index: 2, kind: input, shape index: {}]   ;;  %s6853_s3 = inlined_call_operand.vmem [shape: f32[2,2,1,16], index: 3, kind: input, shape index: {}]   ;;  %s6854_s4 = inlined_call_operand.vmem [shape: f32[2,2,32,16], index: 4, kind: input, shape index: {}]   ;;  %s6855_s5 = inlined_call_operand.vmem [shape: f32[2,2,1,16], index: 5, kind: input, shape index: {}]   ;;  %s6856_s6 = inlined_call_operand.vmem [shape: f32[2,2,32,16], index: 6, kind: input, shape index: {}]   ;;  %s6857_s7 = inlined_call_operand.vmem [shape: f32[2,2,1,16], index: 7, kind: input, shape index: {}]   ;;  %s6858_s8 = inlined_call_operand.vmem [shape: f32[2,2,16,32], index: 8, kind: input, shape index: {}]   ;;  %s6859_s9 = inlined_call_operand.vmem [shape: f32[2,1,32], index: 9, kind: input, shape index: {}]   ;;  %s6860_s10 = inlined_call_operand.vmem [shape: f32[2,1,32], index: 10, kind: input, shape index: {}]   ;;  %s6861_s11 = inlined_call_operand.vmem [shape: f32[2,1,32], index: 11, kind: input, shape index: {}]   ;;  %s6862_s12 = inlined_call_operand.vmem [shape: f32[2,32,64], index: 12, kind: input, shape index: {}]   ;;  %s6863_s13 = inlined_call_operand.vmem [shape: f32[2,1,64], index: 13, kind: input, shape index: {}]   ;;  %s6864_s14 = inlined_call_operand.vmem [shape: f32[2,64,32], index: 14, kind: input, shape index: {}]   ;;  %s6865_s15 = inlined_call_operand.vmem [shape: f32[2,1,32], index: 15, kind: input, shape index: {}]   ;;  %s6866_s16 = inlined_call_operand.vmem [shape: f32[2,1,32], index: 16, kind: input, shape index: {}]   ;;  %s6867_s17 = inlined_call_operand.vmem [shape: f32[2,1,32], index: 17, kind: input, shape index: {}]   ;;  %s6868_s18 = inlined_call_operand.vmem [shape: f32[96,32], index: 18, kind: output, shape index: {}]  }
   0x1   :  { %6877 = sst [smem:[#allocation8_spill]] %s6850_s0 }
   0x2   :  { %6878 = sst [smem:[#allocation9_spill]] %s6851_s1 }
   0x3   :  { %6879 = sst [smem:[#allocation10_spill]] %s6852_s2 }
   0x4   :  { %6880 = sst [smem:[#allocation11_spill]] %s6853_s3 }
   0x5   :  { %6881 = sst [smem:[#allocation12_spill]] %s6854_s4 }
   0x6   :  { %6882 = sst [smem:[#allocation13_spill]] %s6855_s5 }
   0x7   :  { %6883 = sst [smem:[#allocation14_spill]] %s6856_s6 }
   0x8   :  { %6884 = sst [smem:[#allocation15_spill]] %s6857_s7 }
   0x9   :  { %6885 = sst [smem:[#allocation16_spill]] %s6858_s8 }
   0xa   :  { %6886 = sst [smem:[#allocation17_spill]] %s6862_s12 }
   0xb   :  { %6887 = sst [smem:[#allocation18_spill]] %s6868_s18 }
   0xc LB: > { %6888 = sst [smem:[#allocation3_spill]] %s5288_s27  ;;  %s5391_s28 = sadd.s32 4294967295, %s5288_s27   ;;  %s5288_s27 = sphi %s5385_s27, %s28_s27  }
   0xd   : > { %6889 = sst [smem:[#allocation4_spill]] %s5391_s28  ;;  %p4162_p0 = scmp.ge.s32.totalorder %s5288_s27, 1 }
   0xe   : > { %p640_p1 = scmp.lt.s32.totalorder %s5288_s27, 3 }
  0x10   : > { %p641_p2 = pnand %p4162_p0, %p640_p1 }
  0x12   : > { %644 = sbr.rel (%p641_p2) target bundleno = 3057 (0xbf1), region = 92 }
  0x17   : > { %p747_p3 = scmp.lt.s32.totalorder %s5391_s28, 1  ;;  %s6890_s20 = sld [smem:[#allocation10_spill]] }
  0x18   : > { %s6892_s3 = sld [smem:[#allocation11_spill]] }
  0x19   : > { %s5397_s29 = scalar_select %p747_p3, %s5391_s28, 1 }
  0x1a   : > { %s6894_s4 = sld [smem:[#allocation12_spill]] }
  0x1b   : > { %s4404_s30 = sshll.u32 %s5397_s29, 6  ;;  %s4165_s0 = sshll.u32 %s5397_s29, 1 }
  0x1c   : > { %s6896_s5 = sld [smem:[#allocation13_spill]]  ;;  %s795_s25 = scalar_lea.vmem %s6863_s13, %s5397_s29 }
  0x1d   : > { %s5404_s21 = scalar_lea.vmem %s6890_s20, %s4404_s30  ;;  %s6897_s6 = sld [smem:[#allocation14_spill]] }
  0x1e   : > { %6891 = sst [smem:[#allocation5_spill]] %s5404_s21  ;;  %s5409_s23 = scalar_lea.vmem %s6892_s3, %s4165_s0 }
  0x1f   : > { %6893 = sst [smem:[#allocation6_spill]] %s5409_s23  ;;  %s4407_s3 = sshll.u32 %s5397_s29, 5 }
  0x20   : > { %s5414_s26 = scalar_lea.vmem %s6894_s4, %s4404_s30  ;;  %s6898_s7 = sld [smem:[#allocation15_spill]] }
  0x21   : > { %6895 = sst [smem:[#allocation7_spill]] %s5414_s26  ;;  %s803_s19 = scalar_lea.vmem %s6865_s15, %s5397_s29 }
  0x22   : > { %s5419_s28 = scalar_lea.vmem %s6896_s5, %s4165_s0  ;;  %s6899_s8 = sld [smem:[#allocation16_spill]] }
  0x23   : > { %s5424_s20 = scalar_lea.vmem %s6897_s6, %s4404_s30  ;;  %s6900_s12 = sld [smem:[#allocation17_spill]] }
  0x24   : > { %s806_s21 = scalar_lea.vmem %s6866_s16, %s5397_s29  ;;  %s809_s22 = scalar_lea.vmem %s6867_s17, %s5397_s29 }
  0x26   : > { %s5429_s2 = scalar_lea.vmem %s6898_s7, %s4165_s0 }
  0x28   : > { %s5439_s18 = scalar_lea.vmem %s6899_s8, %s4407_s3  ;;  %s5461_s8 = scalar_lea.vmem %s6864_s14, %s4404_s30 }
  0x29   : > { %s5452_s7 = scalar_lea.vmem %s6900_s12, %s4407_s3  ;;  %s6901_s12 = sld [smem:[#allocation4_spill]] }
  0x2f   : > { %p4178_p4 = scmp.ne.s32.totalorder %s6901_s12, 0 }
  0x30   : > { %s6902_s4 = sld [smem:[#allocation8_spill]] (!%p4178_p4) }
  0x31   : > { %813 = sbr.rel (%p4178_p4) target bundleno = 61 (0x3d), region = 96 }
  0x36   : > { %v814_v0 = vld [vmem:[%s6902_s4] sm:$0xff]  ;;  %vm826_vm0 = vcmask 261120   ;;  %v815_v1 = vld [vmem:[%s6902_s4 + $0x8] sm:$0xff]  ;;  %v816_v2 = vld [vmem:[%s6902_s4 + $0x10] sm:$0xff] }
  0x37   : > { %827 = vst.msk [vmem:[#allocation2] sm:$0xff] %vm826_vm0, %v814_v0  ;;  %828 = vst.msk [vmem:[#allocation2 + $0x8] sm:$0xff] %vm826_vm0, %v815_v1  ;;  %v817_v3 = vld [vmem:[%s6902_s4 + $0x18] sm:$0xff]  ;;  %v818_v4 = vld [vmem:[%s6902_s4 + $0x20] sm:$0xff] }
  0x38   : > { %829 = vst.msk [vmem:[#allocation2 + $0x10] sm:$0xff] %vm826_vm0, %v816_v2  ;;  %v819_v5 = vld [vmem:[%s6902_s4 + $0x28] sm:$0xff]  ;;  %830 = vst.msk [vmem:[#allocation2 + $0x18] sm:$0xff] %vm826_vm0, %v817_v3  ;;  %v820_v6 = vld [vmem:[%s6902_s4 + $0x30] sm:$0xff] }
  0x39   : > { %831 = vst.msk [vmem:[#allocation2 + $0x20] sm:$0xff] %vm826_vm0, %v818_v4  ;;  %832 = vst.msk [vmem:[#allocation2 + $0x28] sm:$0xff] %vm826_vm0, %v819_v5  ;;  %v821_v7 = vld [vmem:[%s6902_s4 + $0x38] sm:$0xff]  ;;  %v822_v8 = vld [vmem:[%s6902_s4 + $0x40] sm:$0xff] }
  0x3a   : > { %833 = vst.msk [vmem:[#allocation2 + $0x30] sm:$0xff] %vm826_vm0, %v820_v6  ;;  %834 = vst.msk [vmem:[#allocation2 + $0x38] sm:$0xff] %vm826_vm0, %v821_v7  ;;  %v823_v9 = vld [vmem:[%s6902_s4 + $0x48] sm:$0xff]  ;;  %v824_v10 = vld [vmem:[%s6902_s4 + $0x50] sm:$0xff] }
  0x3b   : > { %835 = vst.msk [vmem:[#allocation2 + $0x40] sm:$0xff] %vm826_vm0, %v822_v8  ;;  %v825_v11 = vld [vmem:[%s6902_s4 + $0x58] sm:$0xff]  ;;  %836 = vst.msk [vmem:[#allocation2 + $0x48] sm:$0xff] %vm826_vm0, %v823_v9 }
  0x3c   : > { %837 = vst.msk [vmem:[#allocation2 + $0x50] sm:$0xff] %vm826_vm0, %v824_v10  ;;  %838 = vst.msk [vmem:[#allocation2 + $0x58] sm:$0xff] %vm826_vm0, %v825_v11 }
  0x3d PF: > { %s6903_s30 = sld [smem:[#allocation7_spill]]  ;;  %vm874_vm1 = vcmask 261120   ;;  %vm1320_vm2 = vcmask 130048   ;;  %v4192_v47 = vld [vmem:[%s5419_s28] ss:$0 sm:$0xff]  ;;  %vm1518_vm3 = vcmask 785408   ;;  %s6909_s0 = scalar_lea.vmem %s6861_s11, %s5397_s29 }
  0x3e   : > { %s6904_s26 = sld [smem:[#allocation5_spill]]  ;;  %v5526_v14 = vld [vmem:[#allocation2] sm:$0xff]  ;;  %v5536_v19 = vld [vmem:[#allocation2 + $0x8] sm:$0xff]  ;;  %vm3576_vm4 = vcmask 523264  }
  0x3f   : > { %4700 = vmatprep.mubr.msk.f32.mxu1 %vm874_vm1, %v5526_v14  ;;  %4674 = vmatprep.mubr.msk.f32.mxu0 %vm874_vm1, %v5526_v14  ;;  %v5538_v20 = vld [vmem:[#allocation2 + $0x10] sm:$0xff]  ;;  %v5546_v23 = vld [vmem:[#allocation2 + $0x18] sm:$0xff]  ;;  %s6905_s5 = sld [smem:[#allocation6_spill]] }
  0x40   : > { %v5548_v24 = vld [vmem:[#allocation2 + $0x20] sm:$0xff]  ;;  %v5554_v25 = vld [vmem:[#allocation2 + $0x28] sm:$0xff]  ;;  %s6906_s6 = sld [smem:[#allocation9_spill]] }
  0x41   : > { %v5558_v26 = vld [vmem:[#allocation2 + $0x30] sm:$0xff]  ;;  %v5566_v27 = vld [vmem:[#allocation2 + $0x38] sm:$0xff] }
  0x42   : > { %v5570_v28 = vld [vmem:[#allocation2 + $0x40] sm:$0xff]  ;;  %v5578_v29 = vld [vmem:[#allocation2 + $0x48] sm:$0xff] }
  0x43   : > { %v1051_v12 = vld [vmem:[%s6903_s30 + $0x18] sm:$0xff]  ;;  %v1050_v13 = vld [vmem:[%s6903_s30 + $0x10] sm:$0xff]  ;;  %v1049_v15 = vld [vmem:[%s6903_s30 + $0x8] sm:$0xff] }
  0x44   : > { %4692 = vmatprep.subr.mxu1 %v1051_v12  ;;  %v1048_v16 = vld [vmem:[%s6903_s30] sm:$0xff]  ;;  %v866_v17 = vld [vmem:[%s6904_s26 + $0x18] sm:$0xff]  ;;  %v865_v18 = vld [vmem:[%s6904_s26 + $0x10] sm:$0xff] }
  0x45   : > { %4693 = vmatpush3.msra.mxu1 %v1051_v12  ;;  %4666 = vmatprep.subr.mxu0 %v866_v17  ;;  %v864_v21 = vld [vmem:[%s6904_s26 + $0x8] sm:$0xff]  ;;  %v863_v22 = vld [vmem:[%s6904_s26] sm:$0xff]  ;;  %v5582_v30 = vld [vmem:[#allocation2 + $0x50] sm:$0xff] }
  0x46   : > { %4694 = vmatprep.subr.mxu1 %v1050_v13  ;;  %4667 = vmatpush3.msra.mxu0 %v866_v17  ;;  %v5590_v31 = vld [vmem:[#allocation2 + $0x58] sm:$0xff]  ;;  %v5607_v36 = vld [vmem:[%s6905_s5] ss:$0 sm:$0xff] }
  0x47   : > { %4695 = vmatpush3.msra.mxu1 %v1050_v13  ;;  %4668 = vmatprep.subr.mxu0 %v865_v18 }
  0x48   : > { %4696 = vmatprep.subr.mxu1 %v1049_v15  ;;  %4669 = vmatpush3.msra.mxu0 %v865_v18 }
  0x49   : > { %4697 = vmatpush3.msra.mxu1 %v1049_v15  ;;  %4670 = vmatprep.subr.mxu0 %v864_v21 }
  0x4a   : > { %4698 = vmatprep.subr.mxu1 %v1048_v16  ;;  %4671 = vmatpush3.msra.mxu0 %v864_v21 }
  0x4b   : > { %4699 = vmatpush3.msra.mxu1 %v1048_v16  ;;  %4672 = vmatprep.subr.mxu0 %v863_v22 }
  0x4c   : > { %4701 = vmatmul.mubr.msk.f32.vlgmr.msra.gmra.mxu1 %vm874_vm1, %v5536_v19  ;;  %4673 = vmatpush3.msra.mxu0 %v863_v22 }
  0x4d   : > { %4703 = vmatprep.mubr.msk.f32.mxu1 %vm874_vm1, %v5538_v20  ;;  %4675 = vmatmul.mubr.msk.f32.vlgmr.msra.gmra.mxu0 %vm874_vm1, %v5536_v19 }
  0x4e   : > { %4677 = vmatprep.mubr.msk.f32.mxu0 %vm874_vm1, %v5538_v20 }
  0x50   : > { %4704 = vmatmul.mubr.msk.f32.gmra.mxu1 %vm874_vm1, %v5546_v23 }
  0x51   : > { %4706 = vmatprep.mubr.msk.f32.mxu1 %vm874_vm1, %v5548_v24  ;;  %4678 = vmatmul.mubr.msk.f32.gmra.mxu0 %vm874_vm1, %v5546_v23 }
  0x52   : > { %4680 = vmatprep.mubr.msk.f32.mxu0 %vm874_vm1, %v5548_v24 }
  0x54   : > { %4707 = vmatmul.mubr.msk.f32.gmra.mxu1 %vm874_vm1, %v5554_v25 }
  0x55   : > { %4709 = vmatprep.mubr.msk.f32.mxu1 %vm874_vm1, %v5558_v26  ;;  %4681 = vmatmul.mubr.msk.f32.gmra.mxu0 %vm874_vm1, %v5554_v25 }
  0x56   : > { %4683 = vmatprep.mubr.msk.f32.mxu0 %vm874_vm1, %v5558_v26 }
  0x58   : > { %4710 = vmatmul.mubr.msk.f32.gmra.mxu1 %vm874_vm1, %v5566_v27 }
  0x59   : > { %4712 = vmatprep.mubr.msk.f32.mxu1 %vm874_vm1, %v5570_v28  ;;  %4684 = vmatmul.mubr.msk.f32.gmra.mxu0 %vm874_vm1, %v5566_v27 }
  0x5a   : > { %4686 = vmatprep.mubr.msk.f32.mxu0 %vm874_vm1, %v5570_v28 }
  0x5c   : > { %4713 = vmatmul.mubr.msk.f32.gmra.mxu1 %vm874_vm1, %v5578_v29 }
  0x5d   : > { %4715 = vmatprep.mubr.msk.f32.mxu1 %vm874_vm1, %v5582_v30  ;;  %4687 = vmatmul.mubr.msk.f32.gmra.mxu0 %vm874_vm1, %v5578_v29 }
  0x5e   : > { %4689 = vmatprep.mubr.msk.f32.mxu0 %vm874_vm1, %v5582_v30 }
  0x60   : > { %4716 = vmatmul.mubr.msk.f32.gmra.mxu1 %vm874_vm1, %v5590_v31 }
  0x61   : > { %4690 = vmatmul.mubr.msk.f32.gmra.mxu0 %vm874_vm1, %v5590_v31 }
  0x62   : > { %4726 = vmatprep.mubr.msk.f32.mxu0 %vm874_vm1, %v5526_v14 }
 0x10c   : > { %v4702_v32 = vpop.f32.mrf.mxu1 }
 0x10d   : > { %v4676_v35 = vpop.f32.mrf.mxu0  ;;  %v1131_v1 = vadd.f32 %v4702_v32, %v4192_v47 }
 0x10e   : > { %v1125_v33 = vpop.f32.mrf.mxu1  ;;  %v983_v5 = vadd.f32 %v4676_v35, %v5607_v36 }
 0x10f   : > { %v977_v38 = vpop.f32.mrf.mxu0  ;;  %v1126_v3 = vadd.f32 %v4192_v47, %v1125_v33 }
 0x110   : > { %v4705_v34 = vpop.f32.mrf.mxu1  ;;  %v978_v40 = vadd.f32 %v5607_v36, %v977_v38  ;;  %v1037_v9 = vmul.f32 0.25, %v983_v5 }
 0x111   : > { %v4679_v57 = vpop.f32.mrf.mxu0  ;;  %v1141_v61 = vadd.f32 %v4705_v34, %v4192_v47 }
 0x112   : > { %v1135_v37 = vpop.f32.mrf.mxu1  ;;  %v1036_v42 = vmul.f32 0.25, %v978_v40  ;;  %v993_v10 = vadd.f32 %v4679_v57, %v5607_v36 }
 0x113   : > { %v987_v59 = vpop.f32.mrf.mxu0  ;;  %v1136_v63 = vadd.f32 %v4192_v47, %v1135_v37 }
 0x114   : > { %v4708_v39 = vpop.f32.mrf.mxu1  ;;  %4768 = vmatprep.mubr.msk.f32.mxu1 %vm1320_vm2, %v1036_v42  ;;  %v988_v4 = vadd.f32 %v5607_v36, %v987_v59  ;;  %v1039_v16 = vmul.f32 0.25, %v993_v10  ;;  %v5760_v10 = vld [vmem:[%s6906_s6 + $0x40] sm:$0xff] }
 0x115   : > { %v1151_v56 = vadd.f32 %v4708_v39, %v4192_v47  ;;  %v4682_v60 = vpop.f32.mrf.mxu0 }
 0x116   : > { %v1145_v41 = vpop.f32.mrf.mxu1  ;;  %v1038_v7 = vmul.f32 0.25, %v988_v4  ;;  %v1003_v12 = vadd.f32 %v4682_v60, %v5607_v36 }
 0x117   : > { %v1146_v58 = vadd.f32 %v4192_v47, %v1145_v41  ;;  %v997_v62 = vpop.f32.mrf.mxu0 }
 0x118   : > { %v4711_v43 = vpop.f32.mrf.mxu1  ;;  %v998_v8 = vadd.f32 %v5607_v36, %v997_v62  ;;  %v1041_v18 = vmul.f32 0.25, %v1003_v12  ;;  %v5732_v62 = vld [vmem:[%s6906_s6 + $0x28] sm:$0xff] }
 0x119   : > { %v1161_v54 = vadd.f32 %v4711_v43, %v4192_v47  ;;  %v4685_v0 = vpop.f32.mrf.mxu0  ;;  %v1187_v43 = vld [vmem:[%s5424_s20 + $0x18] sm:$0xff] }
 0x11a   : > { %v1155_v44 = vpop.f32.mrf.mxu1  ;;  %v1040_v13 = vmul.f32 0.25, %v998_v8  ;;  %v1013_v21 = vadd.f32 %v4685_v0, %v5607_v36  ;;  %4718 = vmatprep.subr.mxu0 %v1187_v43 }
 0x11b   : > { %v1156_v55 = vadd.f32 %v4192_v47, %v1155_v44  ;;  %v1007_v2 = vpop.f32.mrf.mxu0  ;;  %4719 = vmatpush3.msra.mxu0 %v1187_v43  ;;  %v1185_v44 = vld [vmem:[%s5424_s20 + $0x8] sm:$0xff]  ;;  %v4274_v43 = vld [vmem:[%s6903_s30 + $0x30] sm:$0xff] }
 0x11c   : > { %v4714_v45 = vpop.f32.mrf.mxu1  ;;  %v1008_v15 = vadd.f32 %v5607_v36, %v1007_v2  ;;  %v1043_v34 = vmul.f32 0.25, %v1013_v21  ;;  %v5740_v2 = vld [vmem:[%s6906_s6 + $0x30] sm:$0xff] }
 0x11d   : > { %v1171_v52 = vadd.f32 %v4714_v45, %v4192_v47  ;;  %v4688_v6 = vpop.f32.mrf.mxu0  ;;  %v1184_v45 = vld [vmem:[%s5424_s20] sm:$0xff]  ;;  %v5780_v21 = vld [vmem:[%s6906_s6 + $0x50] sm:$0xff] }
 0x11e   : > { %v1165_v46 = vpop.f32.mrf.mxu1  ;;  %v1042_v22 = vmul.f32 0.25, %v1008_v15  ;;  %v1023_v35 = vadd.f32 %v4688_v6, %v5607_v36  ;;  %v5752_v6 = vld [vmem:[%s6906_s6 + $0x38] sm:$0xff]  ;;  %v5772_v15 = vld [vmem:[%s6906_s6 + $0x48] sm:$0xff] }
 0x11f   : > { %v1166_v53 = vadd.f32 %v4192_v47, %v1165_v46  ;;  %v1017_v11 = vpop.f32.mrf.mxu0  ;;  %v5689_v46 = vld [vmem:[%s6906_s6] sm:$0xff] }
 0x120   : > { %v4717_v48 = vpop.f32.mrf.mxu1  ;;  %v1018_v32 = vadd.f32 %v5607_v36, %v1017_v11  ;;  %v1045_v39 = vmul.f32 0.25, %v1023_v35 }
 0x121   : > { %v1181_v49 = vadd.f32 %v4717_v48, %v4192_v47  ;;  %v4691_v17 = vpop.f32.mrf.mxu0 }
 0x122   : > { %v1175_v50 = vpop.f32.mrf.mxu1  ;;  %v1044_v37 = vmul.f32 0.25, %v1018_v32  ;;  %v1033_v40 = vadd.f32 %v4691_v17, %v5607_v36 }
 0x123   : > { %v1176_v51 = vadd.f32 %v4192_v47, %v1175_v50  ;;  %4744 = vmatprep.subr.msk.mxu1 %vm1320_vm2, %v1181_v49  ;;  %v1027_v33 = vpop.f32.mrf.mxu0  ;;  %v5694_v47 = vld [vmem:[%s6906_s6 + $0x8] sm:$0xff] }
 0x124   : > { %4745 = vmatpush3.xpose.msk.msra.mxu1 %vm1320_vm2, %v1181_v49  ;;  %v1028_v38 = vadd.f32 %v5607_v36, %v1027_v33  ;;  %v1047_v42 = vmul.f32 0.25, %v1033_v40  ;;  %v1186_v36 = vld [vmem:[%s5424_s20 + $0x10] sm:$0xff] }
 0x125   : > { %4746 = vmatprep.subr.msk.mxu1 %vm1320_vm2, %v1176_v51  ;;  %4720 = vmatprep.subr.mxu0 %v1186_v36 }
 0x126   : > { %v1046_v41 = vmul.f32 0.25, %v1028_v38  ;;  %4721 = vmatpush3.msra.mxu0 %v1186_v36  ;;  %v4273_v36 = vld [vmem:[%s6903_s30 + $0x28] sm:$0xff] }
 0x127   : > { %4722 = vmatprep.subr.mxu0 %v1185_v44 }
 0x128   : > { %4747 = vmatpush3.xpose.msk.msra.mxu1 %vm1320_vm2, %v1176_v51  ;;  %4723 = vmatpush3.msra.mxu0 %v1185_v44  ;;  %v5702_v51 = vld [vmem:[%s6906_s6 + $0x10] sm:$0xff]  ;;  %v4272_v44 = vld [vmem:[%s6903_s30 + $0x20] sm:$0xff] }
 0x129   : > { %4748 = vmatprep.subr.msk.mxu1 %vm1320_vm2, %v1171_v52  ;;  %4724 = vmatprep.subr.mxu0 %v1184_v45 }
 0x12a   : > { %4725 = vmatpush3.msra.mxu0 %v1184_v45 }
 0x12b   : > { %4727 = vmatmul.mubr.msk.f32.vlgmr.msra.gmra.mxu0 %vm874_vm1, %v5536_v19 }
 0x12c   : > { %4749 = vmatpush3.xpose.msk.msra.mxu1 %vm1320_vm2, %v1171_v52  ;;  %4729 = vmatprep.mubr.msk.f32.mxu0 %vm874_vm1, %v5538_v20 }
 0x12d   : > { %4750 = vmatprep.subr.msk.mxu1 %vm1320_vm2, %v1166_v53 }
 0x12f   : > { %4730 = vmatmul.mubr.msk.f32.gmra.mxu0 %vm874_vm1, %v5546_v23 }
 0x130   : > { %4751 = vmatpush3.xpose.msk.msra.mxu1 %vm1320_vm2, %v1166_v53  ;;  %4732 = vmatprep.mubr.msk.f32.mxu0 %vm874_vm1, %v5548_v24 }
 0x131   : > { %4752 = vmatprep.subr.msk.mxu1 %vm1320_vm2, %v1161_v54 }
 0x133   : > { %4733 = vmatmul.mubr.msk.f32.gmra.mxu0 %vm874_vm1, %v5554_v25 }
 0x134   : > { %4753 = vmatpush3.xpose.msk.msra.mxu1 %vm1320_vm2, %v1161_v54  ;;  %4735 = vmatprep.mubr.msk.f32.mxu0 %vm874_vm1, %v5558_v26  ;;  %v5712_v54 = vld [vmem:[%s6906_s6 + $0x18] sm:$0xff] }
 0x135   : > { %4754 = vmatprep.subr.msk.mxu1 %vm1320_vm2, %v1156_v55 }
 0x137   : > { %4736 = vmatmul.mubr.msk.f32.gmra.mxu0 %vm874_vm1, %v5566_v27 }
 0x138   : > { %4755 = vmatpush3.xpose.msk.msra.mxu1 %vm1320_vm2, %v1156_v55  ;;  %4738 = vmatprep.mubr.msk.f32.mxu0 %vm874_vm1, %v5570_v28 }
 0x139   : > { %4756 = vmatprep.subr.msk.mxu1 %vm1320_vm2, %v1151_v56 }
 0x13b   : > { %4739 = vmatmul.mubr.msk.f32.gmra.mxu0 %vm874_vm1, %v5578_v29 }
 0x13c   : > { %4757 = vmatpush3.xpose.msk.msra.mxu1 %vm1320_vm2, %v1151_v56  ;;  %4741 = vmatprep.mubr.msk.f32.mxu0 %vm874_vm1, %v5582_v30 }
 0x13d   : > { %4758 = vmatprep.subr.msk.mxu1 %vm1320_vm2, %v1146_v58 }
 0x13f   : > { %4742 = vmatmul.mubr.msk.f32.gmra.mxu0 %vm874_vm1, %v5590_v31 }
 0x140   : > { %4759 = vmatpush3.xpose.msk.msra.mxu1 %vm1320_vm2, %v1146_v58  ;;  %v5720_v58 = vld [vmem:[%s6906_s6 + $0x20] sm:$0xff] }
 0x141   : > { %4760 = vmatprep.subr.msk.mxu1 %vm1320_vm2, %v1141_v61 }
 0x144   : > { %4761 = vmatpush3.xpose.msk.msra.mxu1 %vm1320_vm2, %v1141_v61 }
 0x145   : > { %4762 = vmatprep.subr.msk.mxu1 %vm1320_vm2, %v1136_v63 }
 0x148   : > { %4763 = vmatpush3.xpose.msk.msra.mxu1 %vm1320_vm2, %v1136_v63 }
 0x149   : > { %4764 = vmatprep.subr.msk.mxu1 %vm1320_vm2, %v1131_v1 }
 0x14c   : > { %4765 = vmatpush3.xpose.msk.msra.mxu1 %vm1320_vm2, %v1131_v1 }
 0x14d   : > { %4766 = vmatprep.subr.msk.mxu1 %vm1320_vm2, %v1126_v3 }
 0x150   : > { %4767 = vmatpush3.xpose.msk.msra.mxu1 %vm1320_vm2, %v1126_v3 }
 0x153   : > { %4769 = vmatmul.mubr.msk.f32.vlgmr.msra.gmra.mxu1 %vm1320_vm2, %v1037_v9 }
 0x154   : > { %4771 = vmatprep.mubr.msk.f32.mxu1 %vm1320_vm2, %v1038_v7 }
 0x157   : > { %4772 = vmatmul.mubr.msk.f32.gmra.mxu1 %vm1320_vm2, %v1039_v16 }
 0x158   : > { %4774 = vmatprep.mubr.msk.f32.mxu1 %vm1320_vm2, %v1040_v13 }
 0x15b   : > { %4775 = vmatmul.mubr.msk.f32.gmra.mxu1 %vm1320_vm2, %v1041_v18 }
 0x15c   : > { %4777 = vmatprep.mubr.msk.f32.mxu1 %vm1320_vm2, %v1042_v22 }
 0x15f   : > { %4778 = vmatmul.mubr.msk.f32.gmra.mxu1 %vm1320_vm2, %v1043_v34  ;;  %v5792_v34 = vld [vmem:[%s6906_s6 + $0x58] sm:$0xff] }
 0x160   : > { %4780 = vmatprep.mubr.msk.f32.mxu1 %vm1320_vm2, %v1044_v37 }
 0x163   : > { %4781 = vmatmul.mubr.msk.f32.gmra.mxu1 %vm1320_vm2, %v1045_v39 }
 0x164   : > { %4783 = vmatprep.mubr.msk.f32.mxu1 %vm1320_vm2, %v1046_v41 }
 0x167   : > { %4784 = vmatmul.mubr.msk.f32.gmra.mxu1 %vm1320_vm2, %v1047_v42  ;;  %v4275_v42 = vld [vmem:[%s6903_s30 + $0x38] sm:$0xff]  ;;  %s6908_s30 = scalar_lea.vmem %s6860_s10, %s5397_s29 }
 0x168   : > { %4862 = vmatprep.mubr.msk.f32.mxu1 %vm874_vm1, %v5526_v14  ;;  %4854 = vmatprep.subr.mxu1 %v4275_v42 }
 0x169   : > { %4855 = vmatpush3.msra.mxu1 %v4275_v42 }
 0x16a   : > { %4856 = vmatprep.subr.mxu1 %v4274_v43 }
 0x16b   : > { %4857 = vmatpush3.msra.mxu1 %v4274_v43 }
 0x16c   : > { %4858 = vmatprep.subr.mxu1 %v4273_v36 }
 0x16d   : > { %4859 = vmatpush3.msra.mxu1 %v4273_v36 }
 0x16e   : > { %4860 = vmatprep.subr.mxu1 %v4272_v44 }
 0x16f   : > { %4861 = vmatpush3.msra.mxu1 %v4272_v44 }
 0x170   : > { %4863 = vmatmul.mubr.msk.f32.vlgmr.msra.gmra.mxu1 %vm874_vm1, %v5536_v19 }
 0x171   : > { %4865 = vmatprep.mubr.msk.f32.mxu1 %vm874_vm1, %v5538_v20 }
 0x174   : > { %4866 = vmatmul.mubr.msk.f32.gmra.mxu1 %vm874_vm1, %v5546_v23 }
 0x175   : > { %4868 = vmatprep.mubr.msk.f32.mxu1 %vm874_vm1, %v5548_v24 }
 0x178   : > { %4869 = vmatmul.mubr.msk.f32.gmra.mxu1 %vm874_vm1, %v5554_v25 }
 0x179   : > { %4871 = vmatprep.mubr.msk.f32.mxu1 %vm874_vm1, %v5558_v26 }
 0x17c   : > { %4872 = vmatmul.mubr.msk.f32.gmra.mxu1 %vm874_vm1, %v5566_v27 }
 0x17d   : > { %4874 = vmatprep.mubr.msk.f32.mxu1 %vm874_vm1, %v5570_v28 }
 0x180   : > { %4875 = vmatmul.mubr.msk.f32.gmra.mxu1 %vm874_vm1, %v5578_v29 }
 0x181   : > { %4877 = vmatprep.mubr.msk.f32.mxu1 %vm874_vm1, %v5582_v30 }
 0x184   : > { %4878 = vmatmul.mubr.msk.f32.gmra.mxu1 %vm874_vm1, %v5590_v31 }
 0x1eb   : > { %v4728_v45 = vpop.f32.mrf.mxu0 }
 0x213   : > { %v4770_v14 = vpop.f32.mrf.mxu1 }
 0x214   : > { %v5705_v52 = vadd.f32 %v4770_v14, %v5694_v47  ;;  %v1261_v14 = vpop.f32.mrf.mxu0 }
 0x215   : > { %v1459_v48 = vpop.f32.mrf.mxu1 }
 0x216   : > { %v5697_v49 = vadd.f32 %v1459_v48, %v5689_v46  ;;  %v1522_v61 = vsel %vm1518_vm3, %v5705_v52, -inf  ;;  %v4731_v48 = vpop.f32.mrf.mxu0 }
 0x217   : > { %v4773_v50 = vpop.f32.mrf.mxu1 }
 0x218   : > { %v1519_v53 = vsel %vm1518_vm3, %v5697_v49, -inf  ;;  %v5723_v59 = vadd.f32 %v4773_v50, %v5712_v54  ;;  %v1271_v50 = vpop.f32.mrf.mxu0 }
 0x219   : > { %v1469_v55 = vpop.f32.mrf.mxu1  ;;  %1520 = vmax.xlane.f32.xlu0 %v1519_v53 }
 0x21a   : > { %v5715_v56 = vadd.f32 %v1469_v55, %v5702_v51  ;;  %v1528_v4 = vsel %vm1518_vm3, %v5723_v59, -inf  ;;  %v4734_v53 = vpop.f32.mrf.mxu0 }
 0x21b   : > { %v4776_v57 = vpop.f32.mrf.mxu1 }
 0x21c   : > { %v1525_v60 = vsel %vm1518_vm3, %v5715_v56, -inf  ;;  %v5743_v3 = vadd.f32 %v4776_v57, %v5732_v62  ;;  %v1281_v55 = vpop.f32.mrf.mxu0 }
 0x21d   : > { %v1479_v63 = vpop.f32.mrf.mxu1  ;;  %1526 = vmax.xlane.f32.xlu1 %v1525_v60  ;;  %1523 = vmax.xlane.f32.xlu0 %v1522_v61 }
 0x21e   : > { %v5735_v0 = vadd.f32 %v1479_v63, %v5720_v58  ;;  %v1534_v12 = vsel %vm1518_vm3, %v5743_v3, -inf  ;;  %v4737_v57 = vpop.f32.mrf.mxu0  ;;  %v4205_v63 = vld [vmem:[%s5429_s2] ss:$0 sm:$0xff] }
 0x21f   : > { %v4779_v1 = vpop.f32.mrf.mxu1 }
 0x220   : > { %v1531_v5 = vsel %vm1518_vm3, %v5735_v0, -inf  ;;  %v5763_v11 = vadd.f32 %v4779_v1, %v5752_v6  ;;  %v1291_v60 = vpop.f32.mrf.mxu0 }
 0x221   : > { %v1489_v7 = vpop.f32.mrf.mxu1  ;;  %1529 = vmax.xlane.f32.xlu1 %v1528_v4  ;;  %1532 = vmax.xlane.f32.xlu0 %v1531_v5 }
 0x222   : > { %v5755_v8 = vadd.f32 %v1489_v7, %v5740_v2  ;;  %v1540_v32 = vsel %vm1518_vm3, %v5763_v11, -inf  ;;  %v4740_v61 = vpop.f32.mrf.mxu0 }
 0x223   : > { %v4782_v9 = vpop.f32.mrf.mxu1 }
 0x224   : > { %v1537_v13 = vsel %vm1518_vm3, %v5755_v8, -inf  ;;  %v5783_v22 = vadd.f32 %v4782_v9, %v5772_v15  ;;  %v1301_v1 = vpop.f32.mrf.mxu0  ;;  %v1307_v9 = vadd.f32 %v4740_v61, %v4205_v63 }
 0x225   : > { %v1499_v16 = vpop.f32.mrf.mxu1  ;;  %1535 = vmax.xlane.f32.xlu1 %v1534_v12  ;;  %1538 = vmax.xlane.f32.xlu0 %v1537_v13  ;;  %v1302_v13 = vadd.f32 %v4205_v63, %v1301_v1 }
 0x226   : > { %v5775_v17 = vadd.f32 %v1499_v16, %v5760_v10  ;;  %v1546_v39 = vsel %vm1518_vm3, %v5783_v22, -inf  ;;  %v4743_v4 = vpop.f32.mrf.mxu0  ;;  %v1297_v16 = vadd.f32 %v4737_v57, %v4205_v63 }
 0x227   : > { %v4785_v18 = vpop.f32.mrf.mxu1  ;;  %v1317_v5 = vadd.f32 %v4743_v4, %v4205_v63 }
 0x228   : > { %v1543_v33 = vsel %vm1518_vm3, %v5775_v17, -inf  ;;  %v5798_v38 = vadd.f32 %v4785_v18, %v5792_v34  ;;  %v1311_v7 = vpop.f32.mrf.mxu0  ;;  %v1292_v18 = vadd.f32 %v4205_v63, %v1291_v60 }
 0x229   : > { %v1509_v35 = vpop.f32.mrf.mxu1  ;;  %1541 = vmax.xlane.f32.xlu1 %v1540_v32  ;;  %1544 = vmax.xlane.f32.xlu0 %v1543_v33  ;;  %v1312_v12 = vadd.f32 %v4205_v63, %v1311_v7  ;;  %v1287_v32 = vadd.f32 %v4734_v53, %v4205_v63  ;;  %v1282_v33 = vadd.f32 %v4205_v63, %v1281_v55 }
 0x22a   : > { %v5795_v37 = vadd.f32 %v1509_v35, %v5780_v21  ;;  %v1552_v41 = vsel %vm1518_vm3, %v5798_v38, -inf  ;;  %4786 = vmatprep.subr.mxu0 %v1317_v5  ;;  %v1277_v35 = vadd.f32 %v4731_v48, %v4205_v63 }
 0x22b   : > { %4787 = vmatpush3.msra.mxu0 %v1317_v5 }
 0x22c   : > { %v1549_v40 = vsel %vm1518_vm3, %v5795_v37, -inf  ;;  %4788 = vmatprep.subr.mxu0 %v1312_v12 }
 0x22d   : > { %1547 = vmax.xlane.f32.xlu1 %v1546_v39  ;;  %1550 = vmax.xlane.f32.xlu0 %v1549_v40  ;;  %v1272_v39 = vadd.f32 %v4205_v63, %v1271_v50  ;;  %v1267_v40 = vadd.f32 %v4728_v45, %v4205_v63 }
 0x22e   : > { %4789 = vmatpush3.msra.mxu0 %v1312_v12 }
 0x22f   : > { %4790 = vmatprep.subr.mxu0 %v1307_v9 }
 0x230   : > { %4791 = vmatpush3.msra.mxu0 %v1307_v9 }
 0x231   : > { %1553 = vmax.xlane.f32.xlu1 %v1552_v41  ;;  %4792 = vmatprep.subr.mxu0 %v1302_v13  ;;  %v1262_v41 = vadd.f32 %v4205_v63, %v1261_v14 }
 0x232   : > { %4793 = vmatpush3.msra.mxu0 %v1302_v13 }
 0x233   : > { %4794 = vmatprep.subr.mxu0 %v1297_v16 }
 0x234   : > { %4795 = vmatpush3.msra.mxu0 %v1297_v16 }
 0x235   : > { %4796 = vmatprep.subr.mxu0 %v1292_v18 }
 0x236   : > { %4797 = vmatpush3.msra.mxu0 %v1292_v18 }
 0x237   : > { %4798 = vmatprep.subr.mxu0 %v1287_v32 }
 0x238   : > { %4799 = vmatpush3.msra.mxu0 %v1287_v32 }
 0x239   : > { %4800 = vmatprep.subr.mxu0 %v1282_v33 }
 0x23a   : > { %4801 = vmatpush3.msra.mxu0 %v1282_v33 }
 0x23b   : > { %4802 = vmatprep.subr.mxu0 %v1277_v35 }
 0x23c   : > { %4803 = vmatpush3.msra.mxu0 %v1277_v35 }
 0x23d   : > { %4804 = vmatprep.subr.mxu0 %v1272_v39 }
 0x23e   : > { %4805 = vmatpush3.msra.mxu0 %v1272_v39 }
 0x23f   : > { %4806 = vmatprep.subr.mxu0 %v1267_v40 }
 0x240   : > { %4807 = vmatpush3.msra.mxu0 %v1267_v40 }
 0x241   : > { %4808 = vmatprep.subr.mxu0 %v1262_v41 }
 0x242   : > { %4809 = vmatpush3.msra.mxu0 %v1262_v41 }
 0x2a2   : > { %v1521_v42 = vpop.xlane.xlu0 %1520 }
 0x2a3   : > { %v1555_v43 = vsub.f32 %v5697_v49, %v1521_v42 }
 0x2a5   : > { %v1567_v36 = vmul.f32 1.442695, %v1555_v43 }
 0x2a6   : > { %v1527_v44 = vpop.xlane.xlu1 %1526  ;;  %v1524_v48 = vpop.xlane.xlu0 %1523 }
 0x2a7   : > { %5102 = vpow2.f32 %v1567_v36  ;;  %v1557_v50 = vsub.f32 %v5715_v56, %v1527_v44  ;;  %v1556_v45 = vsub.f32 %v5705_v52, %v1524_v48 }
 0x2a9   : > { %v1571_v53 = vmul.f32 1.442695, %v1557_v50  ;;  %v1569_v55 = vmul.f32 1.442695, %v1556_v45 }
 0x2aa   : > { %v1530_v14 = vpop.xlane.xlu1 %1529  ;;  %v1533_v57 = vpop.xlane.xlu0 %1532 }
 0x2ab   : > { %5104 = vpow2.f32 %v1571_v53  ;;  %v1558_v60 = vsub.f32 %v5723_v59, %v1530_v14  ;;  %v1559_v49 = vsub.f32 %v5735_v0, %v1533_v57 }
 0x2ac   : > { %5106 = vpow2.f32 %v1569_v55 }
 0x2ad   : > { %v1573_v61 = vmul.f32 1.442695, %v1558_v60  ;;  %v1575_v63 = vmul.f32 1.442695, %v1559_v49 }
 0x2ae   : > { %v1536_v1 = vpop.xlane.xlu1 %1535  ;;  %v1539_v4 = vpop.xlane.xlu0 %1538 }
 0x2af   : > { %5108 = vpow2.f32 %v1573_v61  ;;  %v1560_v5 = vsub.f32 %v5743_v3, %v1536_v1  ;;  %v1561_v56 = vsub.f32 %v5755_v8, %v1539_v4 }
 0x2b0   : > { %5110 = vpow2.f32 %v1575_v63 }
 0x2b1   : > { %v1577_v52 = vmul.f32 1.442695, %v1560_v5  ;;  %v1579_v7 = vmul.f32 1.442695, %v1561_v56 }
 0x2b2   : > { %v1542_v9 = vpop.xlane.xlu1 %1541  ;;  %v1545_v12 = vpop.xlane.xlu0 %1544 }
 0x2b3   : > { %5112 = vpow2.f32 %v1577_v52  ;;  %v1562_v59 = vsub.f32 %v5763_v11, %v1542_v9  ;;  %v1563_v0 = vsub.f32 %v5775_v17, %v1545_v12  ;;  %v5894_v52 = vld [vmem:[%s6904_s26 + $0x38] sm:$0xff] }
 0x2b4   : > { %v5842_v13 = vpop.eup %5102  ;;  %5114 = vpow2.f32 %v1579_v7  ;;  %4828 = vmatprep.subr.mxu0 %v5894_v52  ;;  %v4864_v7 = vpop.f32.mrf.mxu1 }
 0x2b5   : > { %v1581_v16 = vmul.f32 1.442695, %v1562_v59  ;;  %v1583_v18 = vmul.f32 1.442695, %v1563_v0  ;;  %v1591_v3 = vsel %vm1518_vm3, %v5842_v13, 0.0 }
 0x2b6   : > { %v1548_v32 = vpop.xlane.xlu1 %1547  ;;  %1592 = vadd.xlane.f32.xlu0 %v1591_v3  ;;  %v1551_v8 = vpop.xlane.xlu0 %1550 }
 0x2b7   : > { %5116 = vpow2.f32 %v1581_v16  ;;  %v1564_v33 = vsub.f32 %v5783_v22, %v1548_v32  ;;  %v1565_v35 = vsub.f32 %v5795_v37, %v1551_v8  ;;  %v5897_v9 = vpop.f32.mrf.mxu1  ;;  %v5900_v8 = vld [vmem:[%s5419_s28 + $0x1] ss:$0 sm:$0xff] }
 0x2b8   : > { %v5848_v39 = vpop.eup %5104  ;;  %5118 = vpow2.f32 %v1583_v18 }
 0x2b9   : > { %v5850_v11 = vpop.eup %5106  ;;  %v1585_v17 = vmul.f32 1.442695, %v1564_v33  ;;  %v1587_v40 = vmul.f32 1.442695, %v1565_v35  ;;  %v1597_v41 = vsel %vm1518_vm3, %v5848_v39, 0.0  ;;  %v4867_v12 = vpop.f32.mrf.mxu1 }
 0x2ba   : > { %v1554_v42 = vpop.xlane.xlu1 %1553  ;;  %1598 = vadd.xlane.f32.xlu0 %v1597_v41  ;;  %v1594_v43 = vsel %vm1518_vm3, %v5850_v11, 0.0 }
 0x2bb   : > { %5120 = vpow2.f32 %v1585_v17  ;;  %v1566_v22 = vsub.f32 %v5798_v38, %v1554_v42  ;;  %1595 = vadd.xlane.f32.xlu1 %v1594_v43  ;;  %v2053_v59 = vpop.f32.mrf.mxu1 }
 0x2bc   : > { %v5857_v37 = vpop.eup %5108  ;;  %5122 = vpow2.f32 %v1587_v40 }
 0x2bd   : > { %v5859_v36 = vpop.eup %5110  ;;  %v1589_v44 = vmul.f32 1.442695, %v1566_v22  ;;  %v1600_v48 = vsel %vm1518_vm3, %v5857_v37, 0.0  ;;  %v4870_v0 = vpop.f32.mrf.mxu1 }
 0x2be   : > { %v1603_v50 = vsel %vm1518_vm3, %v5859_v36, 0.0 }
 0x2bf   : > { %5124 = vpow2.f32 %v1589_v44  ;;  %1601 = vadd.xlane.f32.xlu1 %v1600_v48  ;;  %1604 = vadd.xlane.f32.xlu0 %v1603_v50  ;;  %v2063_v16 = vpop.f32.mrf.mxu1  ;;  %v2069_v50 = vadd.f32 %v4870_v0, %v5900_v8 }
 0x2c0   : > { %v5865_v45 = vpop.eup %5112 }
 0x2c1   : > { %v5867_v53 = vpop.eup %5114  ;;  %v1606_v38 = vsel %vm1518_vm3, %v5865_v45, 0.0  ;;  %v4873_v18 = vpop.f32.mrf.mxu1 }
 0x2c2   : > { %v1609_v55 = vsel %vm1518_vm3, %v5867_v53, 0.0  ;;  %v2079_v22 = vadd.f32 %v4873_v18, %v5900_v8 }
 0x2c3   : > { %1607 = vadd.xlane.f32.xlu1 %v1606_v38  ;;  %1610 = vadd.xlane.f32.xlu0 %v1609_v55  ;;  %v2073_v3 = vpop.f32.mrf.mxu1 }
 0x2c4   : > { %v5873_v14 = vpop.eup %5116  ;;  %v2074_v44 = vadd.f32 %v5900_v8, %v2073_v3 }
 0x2c5   : > { %v5875_v57 = vpop.eup %5118  ;;  %v1612_v60 = vsel %vm1518_vm3, %v5873_v14, 0.0  ;;  %v4876_v32 = vpop.f32.mrf.mxu1 }
 0x2c6   : > { %v1615_v49 = vsel %vm1518_vm3, %v5875_v57, 0.0  ;;  %v2089_v42 = vadd.f32 %v4876_v32, %v5900_v8 }
 0x2c7   : > { %1613 = vadd.xlane.f32.xlu1 %v1612_v60  ;;  %1616 = vadd.xlane.f32.xlu0 %v1615_v49  ;;  %v2083_v33 = vpop.f32.mrf.mxu1  ;;  %v2064_v60 = vadd.f32 %v5900_v8, %v2063_v16  ;;  %v2054_v16 = vadd.f32 %v5900_v8, %v2053_v59 }
 0x2c8   : > { %v5881_v61 = vpop.eup %5120  ;;  %v2084_v43 = vadd.f32 %v5900_v8, %v2083_v33 }
 0x2c9   : > { %v5883_v63 = vpop.eup %5122  ;;  %v1618_v1 = vsel %vm1518_vm3, %v5881_v61, 0.0  ;;  %v4879_v35 = vpop.f32.mrf.mxu1 }
 0x2ca   : > { %v1621_v4 = vsel %vm1518_vm3, %v5883_v63, 0.0  ;;  %v2099_v17 = vadd.f32 %v4879_v35, %v5900_v8  ;;  %v2049_v35 = vadd.f32 %v4864_v7, %v5900_v8 }
 0x2cb   : > { %1619 = vadd.xlane.f32.xlu1 %v1618_v1  ;;  %1622 = vadd.xlane.f32.xlu0 %v1621_v4  ;;  %v2093_v40 = vpop.f32.mrf.mxu1  ;;  %v2059_v4 = vadd.f32 %v4867_v12, %v5900_v8 }
 0x2cc   : > { %v5889_v5 = vpop.eup %5124  ;;  %4906 = vmatprep.subr.msk.mxu1 %vm1320_vm2, %v2099_v17  ;;  %v2094_v41 = vadd.f32 %v5900_v8, %v2093_v40 }
 0x2cd   : > { %v1624_v56 = vsel %vm1518_vm3, %v5889_v5, 0.0  ;;  %4907 = vmatpush3.xpose.msk.msra.mxu1 %vm1320_vm2, %v2099_v17 }
 0x2ce   : > { %4908 = vmatprep.subr.msk.mxu1 %vm1320_vm2, %v2094_v41 }
 0x2cf   : > { %1625 = vadd.xlane.f32.xlu1 %v1624_v56 }
 0x2d1   : > { %4909 = vmatpush3.xpose.msk.msra.mxu1 %vm1320_vm2, %v2094_v41 }
 0x2d2   : > { %4910 = vmatprep.subr.msk.mxu1 %vm1320_vm2, %v2089_v42 }
 0x2d5   : > { %4911 = vmatpush3.xpose.msk.msra.mxu1 %vm1320_vm2, %v2089_v42  ;;  %v4256_v42 = vld [vmem:[%s6904_s26 + $0x30] sm:$0xff] }
 0x2d6   : > { %4912 = vmatprep.subr.msk.mxu1 %vm1320_vm2, %v2084_v43 }
 0x2d9   : > { %4913 = vmatpush3.xpose.msk.msra.mxu1 %vm1320_vm2, %v2084_v43 }
 0x2da   : > { %4914 = vmatprep.subr.msk.mxu1 %vm1320_vm2, %v2079_v22 }
 0x2dd   : > { %4915 = vmatpush3.xpose.msk.msra.mxu1 %vm1320_vm2, %v2079_v22  ;;  %v2044_v22 = vadd.f32 %v5900_v8, %v5897_v9 }
 0x2de   : > { %4916 = vmatprep.subr.msk.mxu1 %vm1320_vm2, %v2074_v44 }
 0x2e1   : > { %4917 = vmatpush3.xpose.msk.msra.mxu1 %vm1320_vm2, %v2074_v44 }
 0x2e2   : > { %4918 = vmatprep.subr.msk.mxu1 %vm1320_vm2, %v2069_v50 }
 0x2e5   : > { %4919 = vmatpush3.xpose.msk.msra.mxu1 %vm1320_vm2, %v2069_v50  ;;  %v4254_v50 = vld [vmem:[%s6904_s26 + $0x20] sm:$0xff] }
 0x2e6   : > { %4920 = vmatprep.subr.msk.mxu1 %vm1320_vm2, %v2064_v60 }
 0x2e9   : > { %4921 = vmatpush3.xpose.msk.msra.mxu1 %vm1320_vm2, %v2064_v60 }
 0x2ea   : > { %4922 = vmatprep.subr.msk.mxu1 %vm1320_vm2, %v2059_v4 }
 0x2ed   : > { %4923 = vmatpush3.xpose.msk.msra.mxu1 %vm1320_vm2, %v2059_v4 }
 0x2ee   : > { %4924 = vmatprep.subr.msk.mxu1 %vm1320_vm2, %v2054_v16 }
 0x2f1   : > { %4925 = vmatpush3.xpose.msk.msra.mxu1 %vm1320_vm2, %v2054_v16 }
 0x2f2   : > { %4926 = vmatprep.subr.msk.mxu1 %vm1320_vm2, %v2049_v35 }
 0x2f5   : > { %4927 = vmatpush3.xpose.msk.msra.mxu1 %vm1320_vm2, %v2049_v35 }
 0x2f6   : > { %4928 = vmatprep.subr.msk.mxu1 %vm1320_vm2, %v2044_v22 }
 0x2f9   : > { %4929 = vmatpush3.xpose.msk.msra.mxu1 %vm1320_vm2, %v2044_v22 }
 0x33f   : > { %v1593_v48 = vpop.xlane.xlu0 %1592 }
 0x340   : > { %5126 = vrcp.f32 %v1593_v48 }
 0x343   : > { %v1599_v38 = vpop.xlane.xlu0 %1598 }
 0x344   : > { %v1596_v55 = vpop.xlane.xlu1 %1595  ;;  %5128 = vrcp.f32 %v1599_v38 }
 0x345   : > { %5130 = vrcp.f32 %v1596_v55 }
 0x348   : > { %v1602_v49 = vpop.xlane.xlu1 %1601  ;;  %v1605_v1 = vpop.xlane.xlu0 %1604 }
 0x349   : > { %5132 = vrcp.f32 %v1602_v49 }
 0x34a   : > { %5134 = vrcp.f32 %v1605_v1 }
 0x34c   : > { %v1608_v56 = vpop.xlane.xlu1 %1607  ;;  %v1611_v0 = vpop.xlane.xlu0 %1610 }
 0x34d   : > { %v5127_v18 = vpop.eup %5126  ;;  %5136 = vrcp.f32 %v1608_v56 }
 0x34e   : > { %5138 = vrcp.f32 %v1611_v0  ;;  %v1628_v3 = vmul.f32 %v5127_v18, %v5842_v13 }
 0x350   : > { %v1614_v32 = vpop.xlane.xlu1 %1613  ;;  %v1617_v33 = vpop.xlane.xlu0 %1616  ;;  %4810 = vmatprep.mubr.msk.f32.mxu0 %vm1518_vm3, %v1628_v3 }
 0x351   : > { %v5129_v12 = vpop.eup %5128  ;;  %5140 = vrcp.f32 %v1614_v32 }
 0x352   : > { %v5131_v59 = vpop.eup %5130  ;;  %5142 = vrcp.f32 %v1617_v33  ;;  %v1632_v17 = vmul.f32 %v5129_v12, %v5848_v39  ;;  %v4255_v39 = vld [vmem:[%s6904_s26 + $0x28] sm:$0xff] }
 0x353   : > { %v1630_v40 = vmul.f32 %v5131_v59, %v5850_v11 }
 0x354   : > { %v1620_v13 = vpop.xlane.xlu1 %1619  ;;  %v1623_v41 = vpop.xlane.xlu0 %1622 }
 0x355   : > { %5144 = vrcp.f32 %v1620_v13  ;;  %4811 = vmatmul.mubr.msk.f32.vlgmr.msra.gmra.mxu0 %vm1518_vm3, %v1630_v40 }
 0x356   : > { %v5133_v7 = vpop.eup %5132  ;;  %5146 = vrcp.f32 %v1623_v41  ;;  %4829 = vmatpush3.msra.mxu0 %v5894_v52  ;;  %4813 = vmatprep.mubr.msk.f32.mxu0 %vm1518_vm3, %v1632_v17  ;;  %v1812_v17 = vld [vmem:[%s5439_s18] sm:$0xff] }
 0x357   : > { %v5135_v43 = vpop.eup %5134  ;;  %v1634_v11 = vmul.f32 %v5133_v7, %v5857_v37  ;;  %4830 = vmatprep.subr.mxu0 %v4256_v42 }
 0x358   : > { %v1626_v44 = vpop.xlane.xlu1 %1625  ;;  %v1636_v48 = vmul.f32 %v5135_v43, %v5859_v36  ;;  %4831 = vmatpush3.msra.mxu0 %v4256_v42 }
 0x359   : > { %5148 = vrcp.f32 %v1626_v44  ;;  %4814 = vmatmul.mubr.msk.f32.gmra.mxu0 %vm1518_vm3, %v1634_v11  ;;  %4832 = vmatprep.subr.mxu0 %v4255_v39 }
 0x35a   : > { %v5137_v52 = vpop.eup %5136  ;;  %4816 = vmatprep.mubr.msk.f32.mxu0 %vm1518_vm3, %v1636_v48  ;;  %4833 = vmatpush3.msra.mxu0 %v4255_v39 }
 0x35b   : > { %v5139_v37 = vpop.eup %5138  ;;  %v1638_v38 = vmul.f32 %v5137_v52, %v5865_v45  ;;  %4834 = vmatprep.subr.mxu0 %v4254_v50 }
 0x35c   : > { %v1640_v36 = vmul.f32 %v5139_v37, %v5867_v53  ;;  %4835 = vmatpush3.msra.mxu0 %v4254_v50 }
 0x35d   : > { %4817 = vmatmul.mubr.msk.f32.gmra.mxu0 %vm1518_vm3, %v1638_v38 }
 0x35e   : > { %v5141_v9 = vpop.eup %5140  ;;  %4819 = vmatprep.mubr.msk.f32.mxu0 %vm1518_vm3, %v1640_v36 }
 0x35f   : > { %v5143_v8 = vpop.eup %5142  ;;  %v1642_v55 = vmul.f32 %v5141_v9, %v5873_v14  ;;  %v5967_v14 = vld [vmem:[#allocation2] sm:$0xff] }
 0x360   : > { %v1644_v60 = vmul.f32 %v5143_v8, %v5875_v57 }
 0x361   : > { %4820 = vmatmul.mubr.msk.f32.gmra.mxu0 %vm1518_vm3, %v1642_v55 }
 0x362   : > { %v5145_v45 = vpop.eup %5144  ;;  %4822 = vmatprep.mubr.msk.f32.mxu0 %vm1518_vm3, %v1644_v60 }
 0x363   : > { %v5147_v49 = vpop.eup %5146  ;;  %v1646_v53 = vmul.f32 %v5145_v45, %v5881_v61 }
 0x364   : > { %v1648_v1 = vmul.f32 %v5147_v49, %v5883_v63  ;;  %v4259_v63 = vld [vmem:[%s6905_s5 + $0x1] ss:$0 sm:$0xff] }
 0x365   : > { %4823 = vmatmul.mubr.msk.f32.gmra.mxu0 %vm1518_vm3, %v1646_v53 }
 0x366   : > { %v5149_v4 = vpop.eup %5148  ;;  %4825 = vmatprep.mubr.msk.f32.mxu0 %vm1518_vm3, %v1648_v1 }
 0x367   : > { %v1650_v56 = vmul.f32 %v5149_v4, %v5889_v5 }
 0x369   : > { %4826 = vmatmul.mubr.msk.f32.gmra.mxu0 %vm1518_vm3, %v1650_v56 }
 0x36a   : > { %4836 = vmatprep.mubr.msk.f32.mxu0 %vm874_vm1, %v5967_v14 }
 0x36d   : > { %4837 = vmatmul.mubr.msk.f32.vlgmr.msra.gmra.mxu0 %vm874_vm1, %v5536_v19  ;;  %v1813_v19 = vld [vmem:[%s5439_s18 + $0x8] sm:$0xff] }
 0x36e   : > { %4839 = vmatprep.mubr.msk.f32.mxu0 %vm874_vm1, %v5538_v20  ;;  %5012 = vmatprep.subr.mxu1 %v1813_v19 }
 0x371   : > { %4840 = vmatmul.mubr.msk.f32.gmra.mxu0 %vm874_vm1, %v5546_v23 }
 0x372   : > { %4842 = vmatprep.mubr.msk.f32.mxu0 %vm874_vm1, %v5548_v24 }
 0x375   : > { %4843 = vmatmul.mubr.msk.f32.gmra.mxu0 %vm874_vm1, %v5554_v25 }
 0x376   : > { %4845 = vmatprep.mubr.msk.f32.mxu0 %vm874_vm1, %v5558_v26 }
 0x379   : > { %4846 = vmatmul.mubr.msk.f32.gmra.mxu0 %vm874_vm1, %v5566_v27 }
 0x37a   : > { %4848 = vmatprep.mubr.msk.f32.mxu0 %vm874_vm1, %v5570_v28 }
 0x37d   : > { %4849 = vmatmul.mubr.msk.f32.gmra.mxu0 %vm874_vm1, %v5578_v29 }
 0x37e   : > { %4851 = vmatprep.mubr.msk.f32.mxu0 %vm874_vm1, %v5582_v30 }
 0x381   : > { %4852 = vmatmul.mubr.msk.f32.gmra.mxu0 %vm874_vm1, %v5590_v31 }
 0x382   : > { %4888 = vmatprep.mubr.msk.f32.mxu0 %vm874_vm1, %v5967_v14 }
 0x415   : > { %v5996_v20 = vpop.f32.mrf.mxu0 }
 0x417   : > { %v5998_v23 = vpop.f32.mrf.mxu0 }
 0x419   : > { %v6000_v24 = vpop.f32.mrf.mxu0 }
 0x41b   : > { %v6002_v25 = vpop.f32.mrf.mxu0 }
 0x41d   : > { %v6004_v26 = vpop.f32.mrf.mxu0 }
 0x41f   : > { %v6006_v27 = vpop.f32.mrf.mxu0 }
 0x421   : > { %v6008_v28 = vpop.f32.mrf.mxu0 }
 0x423   : > { %v6010_v29 = vpop.f32.mrf.mxu0 }
 0x425   : > { %v6012_v30 = vpop.f32.mrf.mxu0 }
 0x427   : > { %v6014_v31 = vpop.f32.mrf.mxu0 }
 0x429   : > { %v6016_v57 = vpop.f32.mrf.mxu0 }
 0x42b   : > { %v6018_v61 = vpop.f32.mrf.mxu0 }
 0x42d   : > { %v4838_v5 = vpop.f32.mrf.mxu0 }
 0x42e   : > { %v1899_v0 = vadd.f32 %v4838_v5, %v4259_v63  ;;  %v6102_v5 = vld [vmem:[#allocation2 + $0x58] sm:$0xff] }
 0x42f   : > { %v1893_v18 = vpop.f32.mrf.mxu0 }
 0x430   : > { %v1894_v16 = vadd.f32 %v4259_v63, %v1893_v18  ;;  %v1953_v33 = vmul.f32 0.25, %v1899_v0 }
 0x431   : > { %v4841_v3 = vpop.f32.mrf.mxu0 }
 0x432   : > { %v1952_v32 = vmul.f32 0.25, %v1894_v16  ;;  %v1909_v12 = vadd.f32 %v4841_v3, %v4259_v63 }
 0x433   : > { %v1903_v35 = vpop.f32.mrf.mxu0 }
 0x434   : > { %v1904_v59 = vadd.f32 %v4259_v63, %v1903_v35  ;;  %4930 = vmatprep.mubr.msk.f32.mxu1 %vm1320_vm2, %v1952_v32  ;;  %v1955_v41 = vmul.f32 0.25, %v1909_v12 }
 0x435   : > { %v4844_v40 = vpop.f32.mrf.mxu0  ;;  %4931 = vmatmul.mubr.msk.f32.vlgmr.msra.gmra.mxu1 %vm1320_vm2, %v1953_v33 }
 0x436   : > { %v1954_v13 = vmul.f32 0.25, %v1904_v59  ;;  %5013 = vmatpush3.msra.mxu1 %v1813_v19  ;;  %v1919_v42 = vadd.f32 %v4844_v40, %v4259_v63  ;;  %v4293_v19 = vld [vmem:[%s5424_s20 + $0x38] sm:$0xff] }
 0x437   : > { %v1913_v7 = vpop.f32.mrf.mxu0  ;;  %5014 = vmatprep.subr.mxu1 %v1812_v17  ;;  %4880 = vmatprep.subr.mxu0 %v4293_v19 }
 0x438   : > { %v1914_v39 = vadd.f32 %v4259_v63, %v1913_v7  ;;  %4933 = vmatprep.mubr.msk.f32.mxu1 %vm1320_vm2, %v1954_v13  ;;  %5015 = vmatpush3.msra.mxu1 %v1812_v17  ;;  %v1957_v22 = vmul.f32 0.25, %v1919_v42 }
 0x439   : > { %v4847_v43 = vpop.f32.mrf.mxu0  ;;  %4934 = vmatmul.mubr.msk.f32.gmra.mxu1 %vm1320_vm2, %v1955_v41  ;;  %4881 = vmatpush3.msra.mxu0 %v4293_v19 }
 0x43a   : > { %v1956_v11 = vmul.f32 0.25, %v1914_v39  ;;  %v1929_v44 = vadd.f32 %v4847_v43, %v4259_v63 }
 0x43b   : > { %v1923_v48 = vpop.f32.mrf.mxu0 }
 0x43c   : > { %v1924_v50 = vadd.f32 %v4259_v63, %v1923_v48  ;;  %4936 = vmatprep.mubr.msk.f32.mxu1 %vm1320_vm2, %v1956_v11  ;;  %v1959_v38 = vmul.f32 0.25, %v1929_v44 }
 0x43d   : > { %v4850_v52 = vpop.f32.mrf.mxu0  ;;  %4937 = vmatmul.mubr.msk.f32.gmra.mxu1 %vm1320_vm2, %v1957_v22 }
 0x43e   : > { %v1958_v37 = vmul.f32 0.25, %v1924_v50  ;;  %v1939_v36 = vadd.f32 %v4850_v52, %v4259_v63 }
 0x43f   : > { %v1933_v9 = vpop.f32.mrf.mxu0 }
 0x440   : > { %v1934_v8 = vadd.f32 %v4259_v63, %v1933_v9  ;;  %4939 = vmatprep.mubr.msk.f32.mxu1 %vm1320_vm2, %v1958_v37  ;;  %v1961_v45 = vmul.f32 0.25, %v1939_v36 }
 0x441   : > { %v4853_v55 = vpop.f32.mrf.mxu0  ;;  %4940 = vmatmul.mubr.msk.f32.gmra.mxu1 %vm1320_vm2, %v1959_v38 }
 0x442   : > { %v1960_v60 = vmul.f32 0.25, %v1934_v8  ;;  %v1949_v49 = vadd.f32 %v4853_v55, %v4259_v63 }
 0x443   : > { %v1943_v53 = vpop.f32.mrf.mxu0 }
 0x444   : > { %v1944_v1 = vadd.f32 %v4259_v63, %v1943_v53  ;;  %4942 = vmatprep.mubr.msk.f32.mxu1 %vm1320_vm2, %v1960_v60  ;;  %v1963_v56 = vmul.f32 0.25, %v1949_v49  ;;  %v6098_v63 = vld [vmem:[#allocation2 + $0x50] sm:$0xff] }
 0x445   : > { %4943 = vmatmul.mubr.msk.f32.gmra.mxu1 %vm1320_vm2, %v1961_v45 }
 0x446   : > { %v1962_v4 = vmul.f32 0.25, %v1944_v1 }
 0x448   : > { %4945 = vmatprep.mubr.msk.f32.mxu1 %vm1320_vm2, %v1962_v4  ;;  %v4295_v4 = vld [vmem:[%s5429_s2 + $0x1] ss:$0 sm:$0xff]  ;;  %s6907_s2 = scalar_lea.vmem %s6859_s9, %s5397_s29  ;;  %s6910_s29 = sld [smem:[#allocation4_spill]] }
 0x449   : > { %4946 = vmatmul.mubr.msk.f32.gmra.mxu1 %vm1320_vm2, %v1963_v56 }
 0x44a   : > { %5016 = vmatprep.mubr.msk.f32.mxu1 %vm1320_vm2, %v5998_v23  ;;  %v4291_v23 = vld [vmem:[%s5424_s20 + $0x28] sm:$0xff] }
 0x44d   : > { %5017 = vmatmul.mubr.msk.f32.vlgmr.msra.gmra.mxu1 %vm1320_vm2, %v5996_v20  ;;  %v4292_v20 = vld [vmem:[%s5424_s20 + $0x30] sm:$0xff] }
 0x44e   : > { %5019 = vmatprep.mubr.msk.f32.mxu1 %vm1320_vm2, %v6002_v25  ;;  %4882 = vmatprep.subr.mxu0 %v4292_v20  ;;  %v6062_v25 = vld [vmem:[#allocation2 + $0x8] sm:$0xff]  ;;  %p4401_p5 = scmp.ne.s32.totalorder %s6910_s29, 1 }
 0x44f   : > { %4883 = vmatpush3.msra.mxu0 %v4292_v20  ;;  %s6911_s1 = sld [smem:[#allocation18_spill]] (!%p4401_p5) }
 0x450   : > { %4884 = vmatprep.subr.mxu0 %v4291_v23 }
 0x451   : > { %5020 = vmatmul.mubr.msk.f32.gmra.mxu1 %vm1320_vm2, %v6000_v24  ;;  %4885 = vmatpush3.msra.mxu0 %v4291_v23  ;;  %v4290_v24 = vld [vmem:[%s5424_s20 + $0x20] sm:$0xff] }
 0x452   : > { %5022 = vmatprep.mubr.msk.f32.mxu1 %vm1320_vm2, %v6006_v27  ;;  %4886 = vmatprep.subr.mxu0 %v4290_v24  ;;  %v6070_v27 = vld [vmem:[#allocation2 + $0x18] sm:$0xff] }
 0x453   : > { %4887 = vmatpush3.msra.mxu0 %v4290_v24 }
 0x454   : > { %4889 = vmatmul.mubr.msk.f32.vlgmr.msra.gmra.mxu0 %vm874_vm1, %v6062_v25 }
 0x455   : > { %5023 = vmatmul.mubr.msk.f32.gmra.mxu1 %vm1320_vm2, %v6004_v26  ;;  %v6066_v26 = vld [vmem:[#allocation2 + $0x10] sm:$0xff] }
 0x456   : > { %5025 = vmatprep.mubr.msk.f32.mxu1 %vm1320_vm2, %v6010_v29  ;;  %4891 = vmatprep.mubr.msk.f32.mxu0 %vm874_vm1, %v6066_v26  ;;  %v6078_v29 = vld [vmem:[#allocation2 + $0x28] sm:$0xff] }
 0x458   : > { %4892 = vmatmul.mubr.msk.f32.gmra.mxu0 %vm874_vm1, %v6070_v27 }
 0x459   : > { %5026 = vmatmul.mubr.msk.f32.gmra.mxu1 %vm1320_vm2, %v6008_v28  ;;  %v6074_v28 = vld [vmem:[#allocation2 + $0x20] sm:$0xff] }
 0x45a   : > { %5028 = vmatprep.mubr.msk.f32.mxu1 %vm1320_vm2, %v6014_v31  ;;  %4894 = vmatprep.mubr.msk.f32.mxu0 %vm874_vm1, %v6074_v28  ;;  %v6086_v31 = vld [vmem:[#allocation2 + $0x38] sm:$0xff] }
 0x45c   : > { %4895 = vmatmul.mubr.msk.f32.gmra.mxu0 %vm874_vm1, %v6078_v29 }
 0x45d   : > { %5029 = vmatmul.mubr.msk.f32.gmra.mxu1 %vm1320_vm2, %v6012_v30  ;;  %v6082_v30 = vld [vmem:[#allocation2 + $0x30] sm:$0xff] }
 0x45e   : > { %5031 = vmatprep.mubr.msk.f32.mxu1 %vm1320_vm2, %v6018_v61  ;;  %4897 = vmatprep.mubr.msk.f32.mxu0 %vm874_vm1, %v6082_v30  ;;  %v6094_v61 = vld [vmem:[#allocation2 + $0x48] sm:$0xff] }
 0x460   : > { %4898 = vmatmul.mubr.msk.f32.gmra.mxu0 %vm874_vm1, %v6086_v31 }
 0x461   : > { %5032 = vmatmul.mubr.msk.f32.gmra.mxu1 %vm1320_vm2, %v6016_v57  ;;  %v6090_v57 = vld [vmem:[#allocation2 + $0x40] sm:$0xff] }
 0x462   : > { %4900 = vmatprep.mubr.msk.f32.mxu0 %vm874_vm1, %v6090_v57 }
 0x464   : > { %4901 = vmatmul.mubr.msk.f32.gmra.mxu0 %vm874_vm1, %v6094_v61 }
 0x465   : > { %4903 = vmatprep.mubr.msk.f32.mxu0 %vm874_vm1, %v6098_v63 }
 0x468   : > { %4904 = vmatmul.mubr.msk.f32.gmra.mxu0 %vm874_vm1, %v6102_v5 }
 0x4f5   : > { %v4932_v0 = vpop.f32.mrf.mxu1 }
 0x4f6   : > { %v6107_v18 = vadd.f32 %v4932_v0, %v5694_v47 }
 0x4f7   : > { %v2378_v16 = vpop.f32.mrf.mxu1 }
 0x4f8   : > { %v6110_v3 = vadd.f32 %v2378_v16, %v5689_v46  ;;  %v2440_v32 = vsel %vm1518_vm3, %v6107_v18, -inf }
 0x4f9   : > { %2441 = vmax.xlane.f32.xlu1 %v2440_v32  ;;  %v4935_v33 = vpop.f32.mrf.mxu1 }
 0x4fa   : > { %v6115_v12 = vadd.f32 %v4935_v33, %v5712_v54  ;;  %v2437_v35 = vsel %vm1518_vm3, %v6110_v3, -inf }
 0x4fb   : > { %v2388_v59 = vpop.f32.mrf.mxu1  ;;  %2438 = vmax.xlane.f32.xlu0 %v2437_v35 }
 0x4fc   : > { %v6120_v47 = vadd.f32 %v2388_v59, %v5702_v51  ;;  %v2446_v46 = vsel %vm1518_vm3, %v6115_v12, -inf }
 0x4fd   : > { %2447 = vmax.xlane.f32.xlu1 %v2446_v46  ;;  %v4938_v17 = vpop.f32.mrf.mxu1 }
 0x4fe   : > { %v6125_v40 = vadd.f32 %v4938_v17, %v5732_v62  ;;  %v2443_v54 = vsel %vm1518_vm3, %v6120_v47, -inf }
 0x4ff   : > { %v2398_v13 = vpop.f32.mrf.mxu1  ;;  %2444 = vmax.xlane.f32.xlu0 %v2443_v54 }
 0x500   : > { %v6130_v41 = vadd.f32 %v2398_v13, %v5720_v58  ;;  %v2452_v51 = vsel %vm1518_vm3, %v6125_v40, -inf }
 0x501   : > { %2453 = vmax.xlane.f32.xlu1 %v2452_v51  ;;  %v4941_v42 = vpop.f32.mrf.mxu1 }
 0x502   : > { %v6135_v7 = vadd.f32 %v4941_v42, %v5752_v6  ;;  %v2449_v62 = vsel %vm1518_vm3, %v6130_v41, -inf }
 0x503   : > { %v2408_v39 = vpop.f32.mrf.mxu1  ;;  %2450 = vmax.xlane.f32.xlu0 %v2449_v62 }
 0x504   : > { %v6140_v43 = vadd.f32 %v2408_v39, %v5740_v2  ;;  %v2458_v58 = vsel %vm1518_vm3, %v6135_v7, -inf }
 0x505   : > { %2459 = vmax.xlane.f32.xlu1 %v2458_v58  ;;  %v4944_v11 = vpop.f32.mrf.mxu1 }
 0x506   : > { %v6145_v22 = vadd.f32 %v4944_v11, %v5772_v15  ;;  %v2455_v6 = vsel %vm1518_vm3, %v6140_v43, -inf }
 0x507   : > { %v2418_v44 = vpop.f32.mrf.mxu1  ;;  %2456 = vmax.xlane.f32.xlu0 %v2455_v6 }
 0x508   : > { %v6150_v48 = vadd.f32 %v2418_v44, %v5760_v10  ;;  %v2464_v2 = vsel %vm1518_vm3, %v6145_v22, -inf }
 0x509   : > { %2465 = vmax.xlane.f32.xlu1 %v2464_v2  ;;  %v4947_v50 = vpop.f32.mrf.mxu1 }
 0x50a   : > { %v6155_v52 = vadd.f32 %v4947_v50, %v5792_v34  ;;  %v2461_v15 = vsel %vm1518_vm3, %v6150_v48, -inf }
 0x50b   : > { %v2428_v37 = vpop.f32.mrf.mxu1  ;;  %2462 = vmax.xlane.f32.xlu0 %v2461_v15 }
 0x50c   : > { %v6160_v38 = vadd.f32 %v2428_v37, %v5780_v21  ;;  %v2470_v10 = vsel %vm1518_vm3, %v6155_v52, -inf }
 0x50d   : > { %2471 = vmax.xlane.f32.xlu1 %v2470_v10 }
 0x50e   : > { %v2467_v36 = vsel %vm1518_vm3, %v6160_v38, -inf }
 0x50f   : > { %2468 = vmax.xlane.f32.xlu0 %v2467_v36 }
 0x514   : > { %v4890_v9 = vpop.f32.mrf.mxu0 }
 0x515   : > { %v2187_v17 = vadd.f32 %v4890_v9, %v4295_v4 }
 0x516   : > { %v2181_v34 = vpop.f32.mrf.mxu0 }
 0x517   : > { %v2182_v54 = vadd.f32 %v4295_v4, %v2181_v34 }
 0x518   : > { %v4893_v8 = vpop.f32.mrf.mxu0 }
 0x519   : > { %v2197_v59 = vadd.f32 %v4893_v8, %v4295_v4 }
 0x51a   : > { %v2191_v55 = vpop.f32.mrf.mxu0 }
 0x51b   : > { %v2192_v46 = vadd.f32 %v4295_v4, %v2191_v55 }
 0x51c   : > { %v4896_v60 = vpop.f32.mrf.mxu0 }
 0x51d   : > { %v2207_v33 = vadd.f32 %v4896_v60, %v4295_v4 }
 0x51e   : > { %v2201_v45 = vpop.f32.mrf.mxu0 }
 0x51f   : > { %v2202_v35 = vadd.f32 %v4295_v4, %v2201_v45 }
 0x520   : > { %v4899_v49 = vpop.f32.mrf.mxu0 }
 0x521   : > { %v2217_v16 = vadd.f32 %v4899_v49, %v4295_v4 }
 0x522   : > { %v2211_v53 = vpop.f32.mrf.mxu0 }
 0x523   : > { %v2212_v32 = vadd.f32 %v4295_v4, %v2211_v53 }
 0x524   : > { %v4902_v1 = vpop.f32.mrf.mxu0 }
 0x525   : > { %v2227_v23 = vadd.f32 %v4902_v1, %v4295_v4 }
 0x526   : > { %v2221_v21 = vpop.f32.mrf.mxu0 }
 0x527   : > { %v2222_v0 = vadd.f32 %v4295_v4, %v2221_v21 }
 0x528   : > { %v4905_v56 = vpop.f32.mrf.mxu0 }
 0x529   : > { %v2237_v19 = vadd.f32 %v4905_v56, %v4295_v4 }
 0x52a   : > { %v2231_v20 = vpop.f32.mrf.mxu0 }
 0x52b   : > { %v2232_v24 = vadd.f32 %v4295_v4, %v2231_v20  ;;  %4948 = vmatprep.subr.mxu0 %v2237_v19 }
 0x52c   : > { %4949 = vmatpush3.msra.mxu0 %v2237_v19 }
 0x52d   : > { %4950 = vmatprep.subr.mxu0 %v2232_v24 }
 0x52e   : > { %4951 = vmatpush3.msra.mxu0 %v2232_v24 }
 0x52f   : > { %4952 = vmatprep.subr.mxu0 %v2227_v23 }
 0x530   : > { %4953 = vmatpush3.msra.mxu0 %v2227_v23 }
 0x531   : > { %4954 = vmatprep.subr.mxu0 %v2222_v0 }
 0x532   : > { %4955 = vmatpush3.msra.mxu0 %v2222_v0 }
 0x533   : > { %4956 = vmatprep.subr.mxu0 %v2217_v16 }
 0x534   : > { %4957 = vmatpush3.msra.mxu0 %v2217_v16 }
 0x535   : > { %4958 = vmatprep.subr.mxu0 %v2212_v32 }
 0x536   : > { %4959 = vmatpush3.msra.mxu0 %v2212_v32 }
 0x537   : > { %4960 = vmatprep.subr.mxu0 %v2207_v33 }
 0x538   : > { %4961 = vmatpush3.msra.mxu0 %v2207_v33 }
 0x539   : > { %4962 = vmatprep.subr.mxu0 %v2202_v35 }
 0x53a   : > { %4963 = vmatpush3.msra.mxu0 %v2202_v35 }
 0x53b   : > { %4964 = vmatprep.subr.mxu0 %v2197_v59 }
 0x53c   : > { %4965 = vmatpush3.msra.mxu0 %v2197_v59 }
 0x53d   : > { %4966 = vmatprep.subr.mxu0 %v2192_v46 }
 0x53e   : > { %4967 = vmatpush3.msra.mxu0 %v2192_v46 }
 0x53f   : > { %4968 = vmatprep.subr.mxu0 %v2187_v17 }
 0x540   : > { %4969 = vmatpush3.msra.mxu0 %v2187_v17 }
 0x541   : > { %4970 = vmatprep.subr.mxu0 %v2182_v54 }
 0x542   : > { %4971 = vmatpush3.msra.mxu0 %v2182_v54 }
 0x582   : > { %v2442_v13 = vpop.xlane.xlu1 %2441 }
 0x583   : > { %v2474_v51 = vsub.f32 %v6107_v18, %v2442_v13 }
 0x584   : > { %v2439_v42 = vpop.xlane.xlu0 %2438 }
 0x585   : > { %v2487_v62 = vmul.f32 1.442695, %v2474_v51  ;;  %v2473_v39 = vsub.f32 %v6110_v3, %v2439_v42 }
 0x586   : > { %v2448_v58 = vpop.xlane.xlu1 %2447 }
 0x587   : > { %5150 = vpow2.f32 %v2487_v62  ;;  %v2485_v11 = vmul.f32 1.442695, %v2473_v39  ;;  %v2476_v6 = vsub.f32 %v6115_v12, %v2448_v58 }
 0x588   : > { %v2445_v44 = vpop.xlane.xlu0 %2444 }
 0x589   : > { %5152 = vpow2.f32 %v2485_v11  ;;  %v2491_v2 = vmul.f32 1.442695, %v2476_v6  ;;  %v2475_v50 = vsub.f32 %v6120_v47, %v2445_v44  ;;  %v4345_v44 = vld [vmem:[%s5439_s18 + $0x18] sm:$0xff] }
 0x58a   : > { %v2454_v15 = vpop.xlane.xlu1 %2453  ;;  %4990 = vmatprep.subr.mxu0 %v4345_v44 }
 0x58b   : > { %5154 = vpow2.f32 %v2491_v2  ;;  %v2489_v18 = vmul.f32 1.442695, %v2475_v50  ;;  %v2478_v37 = vsub.f32 %v6125_v40, %v2454_v15 }
 0x58c   : > { %v2451_v10 = vpop.xlane.xlu0 %2450 }
 0x58d   : > { %5156 = vpow2.f32 %v2489_v18  ;;  %v2495_v3 = vmul.f32 1.442695, %v2478_v37  ;;  %v2477_v36 = vsub.f32 %v6130_v41, %v2451_v10 }
 0x58e   : > { %v2460_v9 = vpop.xlane.xlu1 %2459 }
 0x58f   : > { %5158 = vpow2.f32 %v2495_v3  ;;  %v2493_v34 = vmul.f32 1.442695, %v2477_v36  ;;  %v2480_v12 = vsub.f32 %v6135_v7, %v2460_v9 }
 0x590   : > { %v2457_v8 = vpop.xlane.xlu0 %2456 }
 0x591   : > { %5160 = vpow2.f32 %v2493_v34  ;;  %v2499_v55 = vmul.f32 1.442695, %v2480_v12  ;;  %v2479_v47 = vsub.f32 %v6140_v43, %v2457_v8 }
 0x592   : > { %v2466_v60 = vpop.xlane.xlu1 %2465 }
 0x593   : > { %5162 = vpow2.f32 %v2499_v55  ;;  %v2497_v45 = vmul.f32 1.442695, %v2479_v47  ;;  %v2482_v40 = vsub.f32 %v6145_v22, %v2466_v60 }
 0x594   : > { %v6176_v49 = vpop.eup %5150  ;;  %v2463_v53 = vpop.xlane.xlu0 %2462 }
 0x595   : > { %5164 = vpow2.f32 %v2497_v45  ;;  %v2503_v41 = vmul.f32 1.442695, %v2482_v40  ;;  %v2481_v1 = vsub.f32 %v6150_v48, %v2463_v53  ;;  %v2512_v7 = vsel %vm1518_vm3, %v6176_v49, 0.0  ;;  %v4344_v45 = vld [vmem:[%s5439_s18 + $0x10] sm:$0xff] }
 0x596   : > { %v6181_v4 = vpop.eup %5152  ;;  %2513 = vadd.xlane.f32.xlu1 %v2512_v7  ;;  %v2472_v21 = vpop.xlane.xlu1 %2471 }
 0x597   : > { %5166 = vpow2.f32 %v2503_v41  ;;  %v2501_v43 = vmul.f32 1.442695, %v2481_v1  ;;  %v2484_v56 = vsub.f32 %v6155_v52, %v2472_v21  ;;  %v2509_v22 = vsel %vm1518_vm3, %v6181_v4, 0.0 }
 0x598   : > { %v6186_v19 = vpop.eup %5154  ;;  %2510 = vadd.xlane.f32.xlu0 %v2509_v22  ;;  %v2469_v20 = vpop.xlane.xlu0 %2468 }
 0x599   : > { %5168 = vpow2.f32 %v2501_v43  ;;  %v2507_v48 = vmul.f32 1.442695, %v2484_v56  ;;  %v2483_v23 = vsub.f32 %v6160_v38, %v2469_v20  ;;  %v2518_v24 = vsel %vm1518_vm3, %v6186_v19, 0.0 }
 0x59a   : > { %v6191_v0 = vpop.eup %5156  ;;  %2519 = vadd.xlane.f32.xlu1 %v2518_v24 }
 0x59b   : > { %5170 = vpow2.f32 %v2507_v48  ;;  %v2505_v16 = vmul.f32 1.442695, %v2483_v23  ;;  %v2515_v52 = vsel %vm1518_vm3, %v6191_v0, 0.0 }
 0x59c   : > { %v6195_v32 = vpop.eup %5158  ;;  %2516 = vadd.xlane.f32.xlu0 %v2515_v52 }
 0x59d   : > { %5172 = vpow2.f32 %v2505_v16  ;;  %v2524_v33 = vsel %vm1518_vm3, %v6195_v32, 0.0 }
 0x59e   : > { %v6199_v35 = vpop.eup %5160  ;;  %2525 = vadd.xlane.f32.xlu1 %v2524_v33 }
 0x59f   : > { %v2521_v38 = vsel %vm1518_vm3, %v6199_v35, 0.0 }
 0x5a0   : > { %v6203_v59 = vpop.eup %5162  ;;  %2522 = vadd.xlane.f32.xlu0 %v2521_v38 }
 0x5a1   : > { %v2530_v46 = vsel %vm1518_vm3, %v6203_v59, 0.0 }
 0x5a2   : > { %v6207_v17 = vpop.eup %5164  ;;  %2531 = vadd.xlane.f32.xlu1 %v2530_v46 }
 0x5a3   : > { %v2527_v54 = vsel %vm1518_vm3, %v6207_v17, 0.0 }
 0x5a4   : > { %v6211_v13 = vpop.eup %5166  ;;  %2528 = vadd.xlane.f32.xlu0 %v2527_v54 }
 0x5a5   : > { %v2536_v51 = vsel %vm1518_vm3, %v6211_v13, 0.0 }
 0x5a6   : > { %v6215_v42 = vpop.eup %5168  ;;  %2537 = vadd.xlane.f32.xlu1 %v2536_v51 }
 0x5a7   : > { %v2533_v62 = vsel %vm1518_vm3, %v6215_v42, 0.0 }
 0x5a8   : > { %v6219_v39 = vpop.eup %5170  ;;  %2534 = vadd.xlane.f32.xlu0 %v2533_v62 }
 0x5a9   : > { %v2542_v58 = vsel %vm1518_vm3, %v6219_v39, 0.0 }
 0x5aa   : > { %v6223_v11 = vpop.eup %5172  ;;  %2543 = vadd.xlane.f32.xlu1 %v2542_v58 }
 0x5ab   : > { %v2539_v6 = vsel %vm1518_vm3, %v6223_v11, 0.0 }
 0x5ac   : > { %2540 = vadd.xlane.f32.xlu0 %v2539_v6 }
 0x61f   : > { %v2514_v2 = vpop.xlane.xlu1 %2513 }
 0x620   : > { %5174 = vrcp.f32 %v2514_v2 }
 0x621   : > { %v2511_v50 = vpop.xlane.xlu0 %2510 }
 0x622   : > { %5176 = vrcp.f32 %v2511_v50 }
 0x623   : > { %v2520_v15 = vpop.xlane.xlu1 %2519 }
 0x624   : > { %5178 = vrcp.f32 %v2520_v15 }
 0x625   : > { %v2517_v18 = vpop.xlane.xlu0 %2516 }
 0x626   : > { %5180 = vrcp.f32 %v2517_v18 }
 0x627   : > { %v2526_v37 = vpop.xlane.xlu1 %2525 }
 0x628   : > { %5182 = vrcp.f32 %v2526_v37  ;;  %v6270_v37 = vld [vmem:[%s6907_s2] ss:$0 sm:$0xff] }
 0x629   : > { %v2523_v10 = vpop.xlane.xlu0 %2522 }
 0x62a   : > { %5184 = vrcp.f32 %v2523_v10 }
 0x62b   : > { %v2532_v3 = vpop.xlane.xlu1 %2531 }
 0x62c   : > { %5186 = vrcp.f32 %v2532_v3 }
 0x62d   : > { %v2529_v36 = vpop.xlane.xlu0 %2528  ;;  %v5175_v9 = vpop.eup %5174 }
 0x62e   : > { %5188 = vrcp.f32 %v2529_v36  ;;  %v2548_v55 = vmul.f32 %v5175_v9, %v6176_v49 }
 0x62f   : > { %v5177_v34 = vpop.eup %5176  ;;  %v2538_v12 = vpop.xlane.xlu1 %2537 }
 0x630   : > { %v2546_v8 = vmul.f32 %v5177_v34, %v6181_v4  ;;  %5190 = vrcp.f32 %v2538_v12 }
 0x631   : > { %v2535_v47 = vpop.xlane.xlu0 %2534  ;;  %v5179_v60 = vpop.eup %5178 }
 0x632   : > { %5192 = vrcp.f32 %v2535_v47  ;;  %4972 = vmatprep.mubr.msk.f32.mxu0 %vm1518_vm3, %v2546_v8  ;;  %v2552_v7 = vmul.f32 %v5179_v60, %v6186_v19 }
 0x633   : > { %v5181_v40 = vpop.eup %5180  ;;  %v2544_v53 = vpop.xlane.xlu1 %2543  ;;  %4973 = vmatmul.mubr.msk.f32.vlgmr.msra.gmra.mxu0 %vm1518_vm3, %v2548_v55 }
 0x634   : > { %v2550_v41 = vmul.f32 %v5181_v40, %v6191_v0  ;;  %4991 = vmatpush3.msra.mxu0 %v4345_v44  ;;  %5194 = vrcp.f32 %v2544_v53 }
 0x635   : > { %v2541_v1 = vpop.xlane.xlu0 %2540  ;;  %4992 = vmatprep.subr.mxu0 %v4344_v45  ;;  %v5183_v49 = vpop.eup %5182 }
 0x636   : > { %5196 = vrcp.f32 %v2541_v1  ;;  %4975 = vmatprep.mubr.msk.f32.mxu0 %vm1518_vm3, %v2550_v41  ;;  %4993 = vmatpush3.msra.mxu0 %v4344_v45  ;;  %v2556_v43 = vmul.f32 %v5183_v49, %v6195_v32 }
 0x637   : > { %v5185_v4 = vpop.eup %5184  ;;  %4976 = vmatmul.mubr.msk.f32.gmra.mxu0 %vm1518_vm3, %v2552_v7 }
 0x638   : > { %v2554_v21 = vmul.f32 %v5185_v4, %v6199_v35 }
 0x639   : > { %v5187_v56 = vpop.eup %5186 }
 0x63a   : > { %4978 = vmatprep.mubr.msk.f32.mxu0 %vm1518_vm3, %v2554_v21  ;;  %v2560_v20 = vmul.f32 %v5187_v56, %v6203_v59 }
 0x63b   : > { %v5189_v22 = vpop.eup %5188  ;;  %4979 = vmatmul.mubr.msk.f32.gmra.mxu0 %vm1518_vm3, %v2556_v43 }
 0x63c   : > { %v2558_v19 = vmul.f32 %v5189_v22, %v6207_v17 }
 0x63d   : > { %v5191_v48 = vpop.eup %5190 }
 0x63e   : > { %4981 = vmatprep.mubr.msk.f32.mxu0 %vm1518_vm3, %v2558_v19  ;;  %v2564_v0 = vmul.f32 %v5191_v48, %v6211_v13 }
 0x63f   : > { %v5193_v23 = vpop.eup %5192  ;;  %4982 = vmatmul.mubr.msk.f32.gmra.mxu0 %vm1518_vm3, %v2560_v20 }
 0x640   : > { %v2562_v24 = vmul.f32 %v5193_v23, %v6215_v42 }
 0x641   : > { %v5195_v16 = vpop.eup %5194 }
 0x642   : > { %4984 = vmatprep.mubr.msk.f32.mxu0 %vm1518_vm3, %v2562_v24  ;;  %v2568_v33 = vmul.f32 %v5195_v16, %v6219_v39 }
 0x643   : > { %v5197_v52 = vpop.eup %5196  ;;  %4985 = vmatmul.mubr.msk.f32.gmra.mxu0 %vm1518_vm3, %v2564_v0 }
 0x644   : > { %v2566_v32 = vmul.f32 %v5197_v52, %v6223_v11  ;;  %v5018_v11 = vpop.f32.mrf.mxu1 }
 0x646   : > { %4987 = vmatprep.mubr.msk.f32.mxu0 %vm1518_vm3, %v2566_v32  ;;  %v2996_v6 = vpop.f32.mrf.mxu1 }
 0x647   : > { %4988 = vmatmul.mubr.msk.f32.gmra.mxu0 %vm1518_vm3, %v2568_v33 }
 0x648   : > { %v5021_v44 = vpop.f32.mrf.mxu1 }
 0x64a   : > { %v3006_v2 = vpop.f32.mrf.mxu1 }
 0x64c   : > { %v5024_v50 = vpop.f32.mrf.mxu1 }
 0x64e   : > { %v3016_v15 = vpop.f32.mrf.mxu1 }
 0x650   : > { %v5027_v3 = vpop.f32.mrf.mxu1 }
 0x652   : > { %v3026_v60 = vpop.f32.mrf.mxu1 }
 0x654   : > { %v5030_v43 = vpop.f32.mrf.mxu1 }
 0x656   : > { %v3036_v16 = vpop.f32.mrf.mxu1 }
 0x6f3   : > { %v4974_v35 = vpop.f32.mrf.mxu0 }
 0x6f5   : > { %v2671_v38 = vpop.f32.mrf.mxu0 }
 0x6f6   : > { %4994 = vmatprep.mubr.msk.f32.mxu0 %vm1320_vm2, %v2671_v38 }
 0x6f7   : > { %v4977_v59 = vpop.f32.mrf.mxu0  ;;  %4995 = vmatmul.mubr.msk.f32.vlgmr.msra.gmra.mxu0 %vm1320_vm2, %v4974_v35 }
 0x6f9   : > { %v2681_v46 = vpop.f32.mrf.mxu0 }
 0x6fa   : > { %4997 = vmatprep.mubr.msk.f32.mxu0 %vm1320_vm2, %v2681_v46 }
 0x6fb   : > { %v4980_v17 = vpop.f32.mrf.mxu0  ;;  %4998 = vmatmul.mubr.msk.f32.gmra.mxu0 %vm1320_vm2, %v4977_v59 }
 0x6fd   : > { %v2691_v54 = vpop.f32.mrf.mxu0 }
 0x6fe   : > { %5000 = vmatprep.mubr.msk.f32.mxu0 %vm1320_vm2, %v2691_v54  ;;  %v5033_v54 = vpop.f32.mrf.mxu1 }
 0x6ff   : > { %v4983_v13 = vpop.f32.mrf.mxu0  ;;  %5001 = vmatmul.mubr.msk.f32.gmra.mxu0 %vm1320_vm2, %v4980_v17 }
 0x701   : > { %v2701_v51 = vpop.f32.mrf.mxu0 }
 0x702   : > { %5003 = vmatprep.mubr.msk.f32.mxu0 %vm1320_vm2, %v2701_v51 }
 0x703   : > { %v4986_v42 = vpop.f32.mrf.mxu0  ;;  %5004 = vmatmul.mubr.msk.f32.gmra.mxu0 %vm1320_vm2, %v4983_v13 }
 0x705   : > { %v2711_v62 = vpop.f32.mrf.mxu0 }
 0x706   : > { %5006 = vmatprep.mubr.msk.f32.mxu0 %vm1320_vm2, %v2711_v62 }
 0x707   : > { %v4989_v39 = vpop.f32.mrf.mxu0  ;;  %5007 = vmatmul.mubr.msk.f32.gmra.mxu0 %vm1320_vm2, %v4986_v42 }
 0x709   : > { %v2721_v58 = vpop.f32.mrf.mxu0 }
 0x70a   : > { %5009 = vmatprep.mubr.msk.f32.mxu0 %vm1320_vm2, %v2721_v58 }
 0x70b   : > { %5010 = vmatmul.mubr.msk.f32.gmra.mxu0 %vm1320_vm2, %v4989_v39 }
 0x7b7   : > { %v4996_v18 = vpop.f32.mrf.mxu0 }
 0x7b8   : > { %v3002_v10 = vadd.f32 %v5018_v11, %v4996_v18 }
 0x7b9   : > { %v2835_v36 = vpop.f32.mrf.mxu0 }
 0x7ba   : > { %v3063_v9 = vadd.f32 %v6270_v37, %v3002_v10  ;;  %v2997_v34 = vadd.f32 %v2996_v6, %v2835_v36 }
 0x7bb   : > { %v4999_v12 = vpop.f32.mrf.mxu0 }
 0x7bc   : > { %v3062_v8 = vadd.f32 %v6270_v37, %v2997_v34  ;;  %v3012_v55 = vadd.f32 %v5021_v44, %v4999_v12  ;;  %v6275_v47 = vadd.f32 %v6062_v25, %v3063_v9  ;;  %v3046_v44 = vpop.f32.mrf.mxu1 }
 0x7bd   : > { %v2845_v45 = vpop.f32.mrf.mxu0 }
 0x7be   : > { %v3065_v40 = vadd.f32 %v6270_v37, %v3012_v55  ;;  %v3007_v53 = vadd.f32 %v3006_v2, %v2845_v45  ;;  %v3091_v41 = vsel %vm874_vm1, %v6275_v47, 0.0  ;;  %v6281_v1 = vadd.f32 %v5967_v14, %v3062_v8 }
 0x7bf   : > { %3092 = vadd.xlane.f32.xlu1 %v3091_v41  ;;  %v5002_v7 = vpop.f32.mrf.mxu0 }
 0x7c0   : > { %v3064_v49 = vadd.f32 %v6270_v37, %v3007_v53  ;;  %v3022_v4 = vadd.f32 %v5024_v50, %v5002_v7  ;;  %v3088_v25 = vsel %vm874_vm1, %v6281_v1, 0.0  ;;  %v6287_v21 = vadd.f32 %v6070_v27, %v3065_v40 }
 0x7c1   : > { %3089 = vadd.xlane.f32.xlu0 %v3088_v25  ;;  %v2855_v56 = vpop.f32.mrf.mxu0 }
 0x7c2   : > { %v3067_v22 = vadd.f32 %v6270_v37, %v3022_v4  ;;  %v3017_v19 = vadd.f32 %v3016_v15, %v2855_v56  ;;  %v3097_v14 = vsel %vm874_vm1, %v6287_v21, 0.0  ;;  %v6293_v20 = vadd.f32 %v6066_v26, %v3064_v49 }
 0x7c3   : > { %3098 = vadd.xlane.f32.xlu1 %v3097_v14  ;;  %v5005_v48 = vpop.f32.mrf.mxu0 }
 0x7c4   : > { %v3066_v23 = vadd.f32 %v6270_v37, %v3017_v19  ;;  %v3032_v24 = vadd.f32 %v5027_v3, %v5005_v48  ;;  %v3094_v27 = vsel %vm874_vm1, %v6293_v20, 0.0  ;;  %v6299_v0 = vadd.f32 %v6078_v29, %v3067_v22 }
 0x7c5   : > { %3095 = vadd.xlane.f32.xlu0 %v3094_v27  ;;  %v2865_v52 = vpop.f32.mrf.mxu0 }
 0x7c6   : > { %v3069_v32 = vadd.f32 %v6270_v37, %v3032_v24  ;;  %v3027_v33 = vadd.f32 %v3026_v60, %v2865_v52  ;;  %v3103_v26 = vsel %vm874_vm1, %v6299_v0, 0.0  ;;  %v6305_v35 = vadd.f32 %v6074_v28, %v3066_v23 }
 0x7c7   : > { %3104 = vadd.xlane.f32.xlu1 %v3103_v26  ;;  %v5008_v38 = vpop.f32.mrf.mxu0 }
 0x7c8   : > { %v3068_v59 = vadd.f32 %v6270_v37, %v3027_v33  ;;  %v3042_v46 = vadd.f32 %v5030_v43, %v5008_v38  ;;  %v3100_v29 = vsel %vm874_vm1, %v6305_v35, 0.0  ;;  %v6311_v17 = vadd.f32 %v6086_v31, %v3069_v32 }
 0x7c9   : > { %3101 = vadd.xlane.f32.xlu0 %v3100_v29  ;;  %v2875_v13 = vpop.f32.mrf.mxu0 }
 0x7ca   : > { %v3071_v51 = vadd.f32 %v6270_v37, %v3042_v46  ;;  %v3037_v42 = vadd.f32 %v3036_v16, %v2875_v13  ;;  %v3109_v28 = vsel %vm874_vm1, %v6311_v17, 0.0  ;;  %v6317_v62 = vadd.f32 %v6082_v30, %v3068_v59 }
 0x7cb   : > { %3110 = vadd.xlane.f32.xlu1 %v3109_v28  ;;  %v5011_v39 = vpop.f32.mrf.mxu0 }
 0x7cc   : > { %v3070_v58 = vadd.f32 %v6270_v37, %v3037_v42  ;;  %v3052_v11 = vadd.f32 %v5033_v54, %v5011_v39  ;;  %v3106_v31 = vsel %vm874_vm1, %v6317_v62, 0.0  ;;  %v6323_v6 = vadd.f32 %v6094_v61, %v3071_v51 }
 0x7cd   : > { %3107 = vadd.xlane.f32.xlu0 %v3106_v31  ;;  %v2885_v2 = vpop.f32.mrf.mxu0 }
 0x7ce   : > { %v3073_v50 = vadd.f32 %v6270_v37, %v3052_v11  ;;  %v3047_v15 = vadd.f32 %v3046_v44, %v2885_v2  ;;  %v3115_v30 = vsel %vm874_vm1, %v6323_v6, 0.0  ;;  %v6329_v18 = vadd.f32 %v6090_v57, %v3070_v58 }
 0x7cf   : > { %3116 = vadd.xlane.f32.xlu1 %v3115_v30 }
 0x7d0   : > { %v3072_v10 = vadd.f32 %v6270_v37, %v3047_v15  ;;  %v3112_v3 = vsel %vm874_vm1, %v6329_v18, 0.0  ;;  %v6335_v61 = vadd.f32 %v6102_v5, %v3073_v50 }
 0x7d1   : > { %3113 = vadd.xlane.f32.xlu0 %v3112_v3 }
 0x7d2   : > { %v3121_v36 = vsel %vm874_vm1, %v6335_v61, 0.0  ;;  %v6340_v9 = vadd.f32 %v6098_v63, %v3072_v10 }
 0x7d3   : > { %3122 = vadd.xlane.f32.xlu1 %v3121_v36  ;;  %v3283_v36 = vld [vmem:[%s5452_s7 + $0x10] sm:$0xff] }
 0x7d4   : > { %v3118_v57 = vsel %vm874_vm1, %v6340_v9, 0.0 }
 0x7d5   : > { %3119 = vadd.xlane.f32.xlu0 %v3118_v57  ;;  %v3281_v57 = vld [vmem:[%s5452_s7] sm:$0xff] }
 0x848   : > { %v3093_v34 = vpop.xlane.xlu1 %3092 }
 0x849   : > { %v3126_v37 = vmul.f32 0.03125, %v3093_v34 }
 0x84a   : > { %v3090_v12 = vpop.xlane.xlu0 %3089 }
 0x84b   : > { %v6345_v8 = vsub.f32 %v6275_v47, %v3126_v37  ;;  %v3125_v5 = vmul.f32 0.03125, %v3090_v12 }
 0x84c   : > { %v3099_v55 = vpop.xlane.xlu1 %3098 }
 0x84d   : > { %v6348_v60 = vsub.f32 %v6281_v1, %v3125_v5  ;;  %v3128_v45 = vmul.f32 0.03125, %v3099_v55  ;;  %v3150_v63 = vmul.f32 %v6345_v8, %v6345_v8 }
 0x84e   : > { %v3096_v40 = vpop.xlane.xlu0 %3095 }
 0x84f   : > { %v6353_v53 = vsub.f32 %v6287_v21, %v3128_v45  ;;  %v3127_v41 = vmul.f32 0.03125, %v3096_v40  ;;  %v3164_v7 = vsel %vm874_vm1, %v3150_v63, 0.0  ;;  %v3149_v47 = vmul.f32 %v6348_v60, %v6348_v60 }
 0x850   : > { %v3105_v49 = vpop.xlane.xlu1 %3104  ;;  %3165 = vadd.xlane.f32.xlu1 %v3164_v7 }
 0x851   : > { %v6359_v4 = vsub.f32 %v6293_v20, %v3127_v41  ;;  %v3130_v1 = vmul.f32 0.03125, %v3105_v49  ;;  %v3161_v25 = vsel %vm874_vm1, %v3149_v47, 0.0  ;;  %v3152_v43 = vmul.f32 %v6353_v53, %v6353_v53 }
 0x852   : > { %v3102_v56 = vpop.xlane.xlu0 %3101  ;;  %3162 = vadd.xlane.f32.xlu0 %v3161_v25 }
 0x853   : > { %v6365_v21 = vsub.f32 %v6299_v0, %v3130_v1  ;;  %v3129_v22 = vmul.f32 0.03125, %v3102_v56  ;;  %v3170_v19 = vsel %vm874_vm1, %v3152_v43, 0.0  ;;  %v3151_v14 = vmul.f32 %v6359_v4, %v6359_v4 }
 0x854   : > { %v3111_v48 = vpop.xlane.xlu1 %3110  ;;  %3171 = vadd.xlane.f32.xlu1 %v3170_v19 }
 0x855   : > { %v6371_v20 = vsub.f32 %v6305_v35, %v3129_v22  ;;  %v3132_v23 = vmul.f32 0.03125, %v3111_v48  ;;  %v3167_v24 = vsel %vm874_vm1, %v3151_v14, 0.0  ;;  %v3154_v27 = vmul.f32 %v6365_v21, %v6365_v21 }
 0x856   : > { %v3108_v16 = vpop.xlane.xlu0 %3107  ;;  %3168 = vadd.xlane.f32.xlu0 %v3167_v24 }
 0x857   : > { %v6377_v0 = vsub.f32 %v6311_v17, %v3132_v23  ;;  %v3131_v52 = vmul.f32 0.03125, %v3108_v16  ;;  %v3176_v32 = vsel %vm874_vm1, %v3154_v27, 0.0  ;;  %v3153_v33 = vmul.f32 %v6371_v20, %v6371_v20 }
 0x858   : > { %v3117_v26 = vpop.xlane.xlu1 %3116  ;;  %3177 = vadd.xlane.f32.xlu1 %v3176_v32 }
 0x859   : > { %v6383_v35 = vsub.f32 %v6317_v62, %v3131_v52  ;;  %v3134_v38 = vmul.f32 0.03125, %v3117_v26  ;;  %v3173_v59 = vsel %vm874_vm1, %v3153_v33, 0.0  ;;  %v3156_v46 = vmul.f32 %v6377_v0, %v6377_v0 }
 0x85a   : > { %v3114_v29 = vpop.xlane.xlu0 %3113  ;;  %3174 = vadd.xlane.f32.xlu0 %v3173_v59 }
 0x85b   : > { %v6389_v17 = vsub.f32 %v6323_v6, %v3134_v38  ;;  %v3133_v54 = vmul.f32 0.03125, %v3114_v29  ;;  %v3182_v13 = vsel %vm874_vm1, %v3156_v46, 0.0  ;;  %v3155_v51 = vmul.f32 %v6383_v35, %v6383_v35  ;;  %v6425_v38 = vld [vmem:[%s6908_s30] ss:$0 sm:$0xff] }
 0x85c   : > { %3183 = vadd.xlane.f32.xlu1 %v3182_v13  ;;  %v3123_v42 = vpop.xlane.xlu1 %3122 }
 0x85d   : > { %v6395_v28 = vsub.f32 %v6329_v18, %v3133_v54  ;;  %v3136_v62 = vmul.f32 0.03125, %v3123_v42  ;;  %v3179_v39 = vsel %vm874_vm1, %v3155_v51, 0.0  ;;  %v3158_v58 = vmul.f32 %v6389_v17, %v6389_v17 }
 0x85e   : > { %3180 = vadd.xlane.f32.xlu0 %v3179_v39  ;;  %v3120_v11 = vpop.xlane.xlu0 %3119 }
 0x85f   : > { %v6401_v31 = vsub.f32 %v6335_v61, %v3136_v62  ;;  %v3135_v6 = vmul.f32 0.03125, %v3120_v11  ;;  %v3188_v44 = vsel %vm874_vm1, %v3158_v58, 0.0  ;;  %v3157_v2 = vmul.f32 %v6395_v28, %v6395_v28  ;;  %v3284_v61 = vld [vmem:[%s5452_s7 + $0x18] sm:$0xff] }
 0x860   : > { %3189 = vadd.xlane.f32.xlu1 %v3188_v44  ;;  %5034 = vmatprep.subr.mxu0 %v3284_v61 }
 0x861   : > { %v6407_v50 = vsub.f32 %v6340_v9, %v3135_v6  ;;  %v3185_v15 = vsel %vm874_vm1, %v3157_v2, 0.0  ;;  %v3160_v30 = vmul.f32 %v6401_v31, %v6401_v31  ;;  %5035 = vmatpush3.msra.mxu0 %v3284_v61  ;;  %v3282_v9 = vld [vmem:[%s5452_s7 + $0x8] sm:$0xff] }
 0x862   : > { %3186 = vadd.xlane.f32.xlu0 %v3185_v15  ;;  %5036 = vmatprep.subr.mxu0 %v3283_v36 }
 0x863   : > { %v3194_v18 = vsel %vm874_vm1, %v3160_v30, 0.0  ;;  %v3159_v10 = vmul.f32 %v6407_v50, %v6407_v50  ;;  %5037 = vmatpush3.msra.mxu0 %v3283_v36 }
 0x864   : > { %3195 = vadd.xlane.f32.xlu1 %v3194_v18  ;;  %5038 = vmatprep.subr.mxu0 %v3282_v9 }
 0x865   : > { %v3191_v3 = vsel %vm874_vm1, %v3159_v10, 0.0  ;;  %5039 = vmatpush3.msra.mxu0 %v3282_v9 }
 0x866   : > { %3192 = vadd.xlane.f32.xlu0 %v3191_v3  ;;  %5040 = vmatprep.subr.mxu0 %v3281_v57 }
 0x867   : > { %5041 = vmatpush3.msra.mxu0 %v3281_v57 }
 0x8d9   : > { %v3166_v34 = vpop.xlane.xlu1 %3165 }
 0x8da   : > { %v3198_v37 = vmul.f32 0.03125, %v3166_v34 }
 0x8db   : > { %v3163_v12 = vpop.xlane.xlu0 %3162 }
 0x8dc   : > { %v3210_v5 = vadd.f32 1e-12, %v3198_v37  ;;  %v3197_v55 = vmul.f32 0.03125, %v3163_v12 }
 0x8dd   : > { %v3172_v45 = vpop.xlane.xlu1 %3171 }
 0x8de   : > { %5198 = vrsqrt.f32 %v3210_v5  ;;  %v3209_v63 = vadd.f32 1e-12, %v3197_v55  ;;  %v3200_v40 = vmul.f32 0.03125, %v3172_v45 }
 0x8df   : > { %v3169_v41 = vpop.xlane.xlu0 %3168 }
 0x8e0   : > { %5200 = vrsqrt.f32 %v3209_v63  ;;  %v3212_v7 = vadd.f32 1e-12, %v3200_v40  ;;  %v3199_v47 = vmul.f32 0.03125, %v3169_v41 }
 0x8e1   : > { %v3178_v49 = vpop.xlane.xlu1 %3177 }
 0x8e2   : > { %5202 = vrsqrt.f32 %v3212_v7  ;;  %v3211_v1 = vadd.f32 1e-12, %v3199_v47  ;;  %v3202_v25 = vmul.f32 0.03125, %v3178_v49 }
 0x8e3   : > { %v3175_v43 = vpop.xlane.xlu0 %3174 }
 0x8e4   : > { %5204 = vrsqrt.f32 %v3211_v1  ;;  %v3214_v56 = vadd.f32 1e-12, %v3202_v25  ;;  %v3201_v22 = vmul.f32 0.03125, %v3175_v43 }
 0x8e5   : > { %v3184_v19 = vpop.xlane.xlu1 %3183 }
 0x8e6   : > { %5206 = vrsqrt.f32 %v3214_v56  ;;  %v3213_v14 = vadd.f32 1e-12, %v3201_v22  ;;  %v3204_v48 = vmul.f32 0.03125, %v3184_v19 }
 0x8e7   : > { %v3181_v23 = vpop.xlane.xlu0 %3180 }
 0x8e8   : > { %5208 = vrsqrt.f32 %v3213_v14  ;;  %v3216_v24 = vadd.f32 1e-12, %v3204_v48  ;;  %v3203_v27 = vmul.f32 0.03125, %v3181_v23 }
 0x8e9   : > { %v3190_v16 = vpop.xlane.xlu1 %3189 }
 0x8ea   : > { %5210 = vrsqrt.f32 %v3216_v24  ;;  %v3215_v52 = vadd.f32 1e-12, %v3203_v27  ;;  %v3206_v32 = vmul.f32 0.03125, %v3190_v16  ;;  %v3568_v27 = vld [vmem:[%s5461_s8 + $0x38] sm:$0xff]  ;;  %v3567_v16 = vld [vmem:[%s5461_s8 + $0x30] sm:$0xff] }
 0x8eb   : > { %v5199_v33 = vpop.eup %5198  ;;  %v3187_v26 = vpop.xlane.xlu0 %3186  ;;  %5060 = vmatprep.subr.mxu1 %v3568_v27 }
 0x8ec   : > { %v3234_v59 = vmul.f32 %v5199_v33, %v6345_v8  ;;  %5212 = vrsqrt.f32 %v3215_v52  ;;  %v3218_v46 = vadd.f32 1e-12, %v3206_v32  ;;  %v3205_v29 = vmul.f32 0.03125, %v3187_v26  ;;  %v4372_v8 = vld [vmem:[%s6909_s0] ss:$0 sm:$0xff]  ;;  %5061 = vmatpush3.msra.mxu1 %v3568_v27  ;;  %v3566_v52 = vld [vmem:[%s5461_s8 + $0x28] sm:$0xff] }
 0x8ed   : > { %v5201_v54 = vpop.eup %5200  ;;  %v3196_v13 = vpop.xlane.xlu1 %3195  ;;  %5062 = vmatprep.subr.mxu1 %v3567_v16  ;;  %v3565_v32 = vld [vmem:[%s5461_s8 + $0x20] sm:$0xff]  ;;  %v3564_v33 = vld [vmem:[%s5461_s8 + $0x18] sm:$0xff]  ;;  %v3563_v26 = vld [vmem:[%s5461_s8 + $0x10] sm:$0xff] }
 0x8ee   : > { %5214 = vrsqrt.f32 %v3218_v46  ;;  %v3217_v51 = vadd.f32 1e-12, %v3205_v29  ;;  %v3208_v42 = vmul.f32 0.03125, %v3196_v13  ;;  %v3252_v39 = vmul.f32 %v6425_v38, %v3234_v59  ;;  %5063 = vmatpush3.msra.mxu1 %v3567_v16  ;;  %v3561_v59 = vld [vmem:[%s5461_s8] sm:$0xff] }
 0x8ef   : > { %v5203_v62 = vpop.eup %5202  ;;  %v3193_v58 = vpop.xlane.xlu0 %3192  ;;  %v3233_v11 = vmul.f32 %v5201_v54, %v6348_v60  ;;  %5064 = vmatprep.subr.mxu1 %v3566_v52  ;;  %v6517_v46 = vld [vmem:[%s795_s25] ss:$0 sm:$0xff] }
 0x8f0   : > { %5216 = vrsqrt.f32 %v3217_v51  ;;  %v3220_v6 = vadd.f32 1e-12, %v3208_v42  ;;  %v3207_v44 = vmul.f32 0.03125, %v3193_v58  ;;  %v3236_v30 = vmul.f32 %v5203_v62, %v6353_v53  ;;  %5065 = vmatpush3.msra.mxu1 %v3566_v52 }
 0x8f1   : > { %v5205_v2 = vpop.eup %5204  ;;  %v3251_v15 = vmul.f32 %v6425_v38, %v3233_v11  ;;  %v6440_v60 = vadd.f32 %v4372_v8, %v3252_v39  ;;  %5066 = vmatprep.subr.mxu1 %v3565_v32 }
 0x8f2   : > { %5218 = vrsqrt.f32 %v3220_v6  ;;  %v3219_v18 = vadd.f32 1e-12, %v3207_v44  ;;  %v3235_v10 = vmul.f32 %v5205_v2, %v6359_v4  ;;  %v3254_v9 = vmul.f32 %v6425_v38, %v3236_v30  ;;  %5067 = vmatpush3.msra.mxu1 %v3565_v32 }
 0x8f3   : > { %v5207_v3 = vpop.eup %5206  ;;  %v6438_v61 = vadd.f32 %v4372_v8, %v3251_v15  ;;  %5068 = vmatprep.subr.mxu1 %v3564_v33 }
 0x8f4   : > { %5220 = vrsqrt.f32 %v3219_v18  ;;  %v3253_v36 = vmul.f32 %v6425_v38, %v3235_v10  ;;  %v3238_v57 = vmul.f32 %v5207_v3, %v6365_v21  ;;  %v6454_v12 = vadd.f32 %v4372_v8, %v3254_v9  ;;  %5069 = vmatpush3.msra.mxu1 %v3564_v33 }
 0x8f5   : > { %v5209_v34 = vpop.eup %5208  ;;  %5042 = vmatprep.mubr.msk.f32.mxu0 %vm874_vm1, %v6438_v61  ;;  %5070 = vmatprep.subr.mxu1 %v3563_v26 }
 0x8f6   : > { %5043 = vmatmul.mubr.msk.f32.vlgmr.msra.gmra.mxu0 %vm874_vm1, %v6440_v60  ;;  %v6449_v53 = vadd.f32 %v4372_v8, %v3253_v36  ;;  %v3237_v4 = vmul.f32 %v5209_v34, %v6371_v20  ;;  %v3256_v21 = vmul.f32 %v6425_v38, %v3238_v57  ;;  %5071 = vmatpush3.msra.mxu1 %v3563_v26 }
 0x8f7   : > { %v5211_v37 = vpop.eup %5210 }
 0x8f8   : > { %5045 = vmatprep.mubr.msk.f32.mxu0 %vm874_vm1, %v6449_v53  ;;  %v3255_v5 = vmul.f32 %v6425_v38, %v3237_v4  ;;  %v3240_v55 = vmul.f32 %v5211_v37, %v6377_v0  ;;  %v6466_v41 = vadd.f32 %v4372_v8, %v3256_v21 }
 0x8f9   : > { %v5213_v45 = vpop.eup %5212 }
 0x8fa   : > { %5046 = vmatmul.mubr.msk.f32.gmra.mxu0 %vm874_vm1, %v6454_v12  ;;  %v6461_v63 = vadd.f32 %v4372_v8, %v3255_v5  ;;  %v3239_v20 = vmul.f32 %v5213_v45, %v6383_v35  ;;  %v3258_v47 = vmul.f32 %v6425_v38, %v3240_v55 }
 0x8fb   : > { %v5215_v40 = vpop.eup %5214 }
 0x8fc   : > { %5048 = vmatprep.mubr.msk.f32.mxu0 %vm874_vm1, %v6461_v63  ;;  %v3257_v7 = vmul.f32 %v6425_v38, %v3239_v20  ;;  %v3242_v0 = vmul.f32 %v5215_v40, %v6389_v17  ;;  %v6478_v43 = vadd.f32 %v4372_v8, %v3258_v47 }
 0x8fd   : > { %v5217_v49 = vpop.eup %5216 }
 0x8fe   : > { %5049 = vmatmul.mubr.msk.f32.gmra.mxu0 %vm874_vm1, %v6466_v41  ;;  %v6473_v1 = vadd.f32 %v4372_v8, %v3257_v7  ;;  %v3241_v35 = vmul.f32 %v5217_v49, %v6395_v28  ;;  %v3260_v22 = vmul.f32 %v6425_v38, %v3242_v0 }
 0x8ff   : > { %v5219_v25 = vpop.eup %5218 }
 0x900   : > { %5051 = vmatprep.mubr.msk.f32.mxu0 %vm874_vm1, %v6473_v1  ;;  %v3259_v56 = vmul.f32 %v6425_v38, %v3241_v35  ;;  %v3244_v17 = vmul.f32 %v5219_v25, %v6401_v31  ;;  %v6490_v48 = vadd.f32 %v4372_v8, %v3260_v22 }
 0x901   : > { %v5221_v19 = vpop.eup %5220 }
 0x902   : > { %5052 = vmatmul.mubr.msk.f32.gmra.mxu0 %vm874_vm1, %v6478_v43  ;;  %v6485_v14 = vadd.f32 %v4372_v8, %v3259_v56  ;;  %v3243_v28 = vmul.f32 %v5221_v19, %v6407_v50  ;;  %v3262_v31 = vmul.f32 %v6425_v38, %v3244_v17 }
 0x904   : > { %5054 = vmatprep.mubr.msk.f32.mxu0 %vm874_vm1, %v6485_v14  ;;  %v3261_v23 = vmul.f32 %v6425_v38, %v3243_v28  ;;  %v6500_v50 = vadd.f32 %v4372_v8, %v3262_v31  ;;  %v3562_v38 = vld [vmem:[%s5461_s8 + $0x8] sm:$0xff] }
 0x905   : > { %5072 = vmatprep.subr.mxu1 %v3562_v38 }
 0x906   : > { %5055 = vmatmul.mubr.msk.f32.gmra.mxu0 %vm874_vm1, %v6490_v48  ;;  %v6496_v24 = vadd.f32 %v4372_v8, %v3261_v23  ;;  %5073 = vmatpush3.msra.mxu1 %v3562_v38 }
 0x907   : > { %5074 = vmatprep.subr.mxu1 %v3561_v59 }
 0x908   : > { %5057 = vmatprep.mubr.msk.f32.mxu0 %vm874_vm1, %v6496_v24  ;;  %5075 = vmatpush3.msra.mxu1 %v3561_v59 }
 0x90a   : > { %5058 = vmatmul.mubr.msk.f32.gmra.mxu0 %vm874_vm1, %v6500_v50 }
 0x9b6   : > { %v5044_v29 = vpop.f32.mrf.mxu0 }
 0x9b7   : > { %v6520_v54 = vadd.f32 %v5044_v29, %v6517_v46 }
 0x9b8   : > { %v3394_v13 = vpop.f32.mrf.mxu0 }
 0x9b9   : > { %v3454_v51 = vmul.f32 %v6520_v54, %v6520_v54  ;;  %v6525_v42 = vadd.f32 %v6517_v46, %v3394_v13 }
 0x9ba   : > { %v5047_v62 = vpop.f32.mrf.mxu0 }
 0x9bb   : > { %v3466_v39 = vmul.f32 %v3454_v51, %v6520_v54  ;;  %v3453_v58 = vmul.f32 %v6525_v42, %v6525_v42  ;;  %v6531_v11 = vadd.f32 %v5047_v62, %v6517_v46 }
 0x9bc   : > { %v3404_v6 = vpop.f32.mrf.mxu0 }
 0x9bd   : > { %v3478_v44 = vmul.f32 0.044715, %v3466_v39  ;;  %v3465_v8 = vmul.f32 %v3453_v58, %v6525_v42  ;;  %v3456_v2 = vmul.f32 %v6531_v11, %v6531_v11  ;;  %v6537_v15 = vadd.f32 %v6517_v46, %v3404_v6 }
 0x9be   : > { %v5050_v30 = vpop.f32.mrf.mxu0 }
 0x9bf   : > { %v3490_v18 = vadd.f32 %v3478_v44, %v6520_v54  ;;  %v3477_v10 = vmul.f32 0.044715, %v3465_v8  ;;  %v3468_v3 = vmul.f32 %v3456_v2, %v6531_v11  ;;  %v3455_v36 = vmul.f32 %v6537_v15, %v6537_v15 }
 0x9c0   : > { %v6544_v9 = vadd.f32 %v5050_v30, %v6517_v46  ;;  %v3414_v57 = vpop.f32.mrf.mxu0 }
 0x9c1   : > { %v3502_v34 = vmul.f32 0.7978846, %v3490_v18  ;;  %v3489_v4 = vadd.f32 %v3477_v10, %v6525_v42  ;;  %v3480_v37 = vmul.f32 0.044715, %v3468_v3  ;;  %v3467_v5 = vmul.f32 %v3455_v36, %v6537_v15 }
 0x9c2   : > { %v3458_v21 = vmul.f32 %v6544_v9, %v6544_v9  ;;  %v6551_v55 = vadd.f32 %v6517_v46, %v3414_v57  ;;  %v5053_v45 = vpop.f32.mrf.mxu0 }
 0x9c3   : > { %5222 = vtanh.f32 %v3502_v34  ;;  %v3501_v20 = vmul.f32 0.7978846, %v3489_v4  ;;  %v3492_v40 = vadd.f32 %v3480_v37, %v6531_v11  ;;  %v3479_v7 = vmul.f32 0.044715, %v3467_v5 }
 0x9c4   : > { %v3470_v47 = vmul.f32 %v3458_v21, %v6544_v9  ;;  %v3457_v0 = vmul.f32 %v6551_v55, %v6551_v55  ;;  %v6558_v49 = vadd.f32 %v5053_v45, %v6517_v46  ;;  %v3424_v35 = vpop.f32.mrf.mxu0 }
 0x9c5   : > { %5224 = vtanh.f32 %v3501_v20  ;;  %v3504_v25 = vmul.f32 0.7978846, %v3492_v40  ;;  %v3491_v56 = vadd.f32 %v3479_v7, %v6537_v15  ;;  %v6562_v22 = vadd.f32 %v6517_v46, %v3424_v35 }
 0x9c6   : > { %v3482_v17 = vmul.f32 0.044715, %v3470_v47  ;;  %v3469_v19 = vmul.f32 %v3457_v0, %v6551_v55  ;;  %v3460_v28 = vmul.f32 %v6558_v49, %v6558_v49  ;;  %v5056_v23 = vpop.f32.mrf.mxu0 }
 0x9c7   : > { %5226 = vtanh.f32 %v3504_v25  ;;  %v3503_v31 = vmul.f32 0.7978846, %v3491_v56  ;;  %v3459_v27 = vmul.f32 %v6562_v22, %v6562_v22  ;;  %v6570_v16 = vadd.f32 %v5056_v23, %v6517_v46 }
 0x9c8   : > { %v3494_v52 = vadd.f32 %v3482_v17, %v6544_v9  ;;  %v3481_v32 = vmul.f32 0.044715, %v3469_v19  ;;  %v3472_v33 = vmul.f32 %v3460_v28, %v6558_v49  ;;  %v3434_v26 = vpop.f32.mrf.mxu0 }
 0x9c9   : > { %5228 = vtanh.f32 %v3503_v31  ;;  %v3471_v38 = vmul.f32 %v3459_v27, %v6562_v22  ;;  %v3462_v59 = vmul.f32 %v6570_v16, %v6570_v16  ;;  %v6578_v29 = vadd.f32 %v6517_v46, %v3434_v26 }
 0x9ca   : > { %v3506_v13 = vmul.f32 0.7978846, %v3494_v52  ;;  %v3493_v51 = vadd.f32 %v3481_v32, %v6551_v55  ;;  %v3484_v62 = vmul.f32 0.044715, %v3472_v33  ;;  %v5059_v39 = vpop.f32.mrf.mxu0 }
 0x9cb   : > { %v3483_v58 = vmul.f32 0.044715, %v3471_v38  ;;  %v3474_v6 = vmul.f32 %v3462_v59, %v6570_v16  ;;  %v3461_v44 = vmul.f32 %v6578_v29, %v6578_v29  ;;  %v6585_v8 = vadd.f32 %v5059_v39, %v6517_v46 }
 0x9cc   : > { %5230 = vtanh.f32 %v3506_v13  ;;  %v3505_v2 = vmul.f32 0.7978846, %v3493_v51  ;;  %v3496_v30 = vadd.f32 %v3484_v62, %v6558_v49  ;;  %v3444_v18 = vpop.f32.mrf.mxu0 }
 0x9cd   : > { %v3495_v10 = vadd.f32 %v3483_v58, %v6562_v22  ;;  %v3486_v3 = vmul.f32 0.044715, %v3474_v6  ;;  %v3473_v36 = vmul.f32 %v3461_v44, %v6578_v29  ;;  %v3464_v57 = vmul.f32 %v6585_v8, %v6585_v8 }
 0x9ce   : > { %5232 = vtanh.f32 %v3505_v2  ;;  %v3508_v34 = vmul.f32 0.7978846, %v3496_v30  ;;  %v6593_v4 = vadd.f32 %v6517_v46, %v3444_v18 }
 0x9cf   : > { %v3507_v37 = vmul.f32 0.7978846, %v3495_v10  ;;  %v3498_v5 = vadd.f32 %v3486_v3, %v6570_v16  ;;  %v3485_v21 = vmul.f32 0.044715, %v3473_v36  ;;  %v3476_v45 = vmul.f32 %v3464_v57, %v6585_v8 }
 0x9d0   : > { %v5223_v20 = vpop.eup %5222  ;;  %5234 = vtanh.f32 %v3508_v34  ;;  %v3463_v40 = vmul.f32 %v6593_v4, %v6593_v4 }
 0x9d1   : > { %v3526_v7 = vadd.f32 1.0, %v5223_v20  ;;  %5236 = vtanh.f32 %v3507_v37  ;;  %v3510_v47 = vmul.f32 0.7978846, %v3498_v5  ;;  %v3497_v0 = vadd.f32 %v3485_v21, %v6578_v29 }
 0x9d2   : > { %v5225_v35 = vpop.eup %5224  ;;  %v3488_v25 = vmul.f32 0.044715, %v3476_v45  ;;  %v3475_v46 = vmul.f32 %v3463_v40, %v6593_v4 }
 0x9d3   : > { %5238 = vtanh.f32 %v3510_v47  ;;  %v3509_v56 = vmul.f32 0.7978846, %v3497_v0  ;;  %v3525_v17 = vadd.f32 1.0, %v5225_v35  ;;  %v3538_v28 = vmul.f32 0.5, %v3526_v7 }
 0x9d4   : > { %v5227_v19 = vpop.eup %5226  ;;  %v3500_v23 = vadd.f32 %v3488_v25, %v6585_v8  ;;  %v3487_v31 = vmul.f32 0.044715, %v3475_v46 }
 0x9d5   : > { %5240 = vtanh.f32 %v3509_v56  ;;  %v3537_v27 = vmul.f32 0.5, %v3525_v17  ;;  %v3528_v52 = vadd.f32 1.0, %v5227_v19  ;;  %v3550_v13 = vmul.f32 %v3538_v28, %v6520_v54 }
 0x9d6   : > { %v5229_v32 = vpop.eup %5228  ;;  %v3512_v33 = vmul.f32 0.7978846, %v3500_v23  ;;  %v3499_v26 = vadd.f32 %v3487_v31, %v6593_v4 }
 0x9d7   : > { %v3549_v38 = vmul.f32 %v3537_v27, %v6525_v42  ;;  %v3527_v59 = vadd.f32 1.0, %v5229_v32  ;;  %v3540_v62 = vmul.f32 0.5, %v3528_v52 }
 0x9d8   : > { %5242 = vtanh.f32 %v3512_v33  ;;  %v3511_v51 = vmul.f32 0.7978846, %v3499_v26 }
 0x9d9   : > { %v5231_v39 = vpop.eup %5230  ;;  %5076 = vmatprep.mubr.msk.f32.mxu1 %vm3576_vm4, %v3549_v38  ;;  %v3539_v58 = vmul.f32 0.5, %v3527_v59  ;;  %v3552_v30 = vmul.f32 %v3540_v62, %v6531_v11 }
 0x9da   : > { %5244 = vtanh.f32 %v3511_v51  ;;  %5077 = vmatmul.mubr.msk.f32.vlgmr.msra.gmra.mxu1 %vm3576_vm4, %v3550_v13  ;;  %v3530_v6 = vadd.f32 1.0, %v5231_v39 }
 0x9db   : > { %v5233_v44 = vpop.eup %5232  ;;  %v3551_v2 = vmul.f32 %v3539_v58, %v6537_v15 }
 0x9dc   : > { %v3529_v42 = vadd.f32 1.0, %v5233_v44  ;;  %v3542_v54 = vmul.f32 0.5, %v3530_v6 }
 0x9dd   : > { %v5235_v18 = vpop.eup %5234  ;;  %5079 = vmatprep.mubr.msk.f32.mxu1 %vm3576_vm4, %v3551_v2 }
 0x9de   : > { %v5237_v10 = vpop.eup %5236  ;;  %5080 = vmatmul.mubr.msk.f32.gmra.mxu1 %vm3576_vm4, %v3552_v30  ;;  %v3541_v3 = vmul.f32 0.5, %v3529_v42  ;;  %v3532_v36 = vadd.f32 1.0, %v5235_v18  ;;  %v3554_v5 = vmul.f32 %v3542_v54, %v6544_v9 }
 0x9df   : > { %v3531_v57 = vadd.f32 1.0, %v5237_v10 }
 0x9e0   : > { %v5239_v34 = vpop.eup %5238  ;;  %v3553_v37 = vmul.f32 %v3541_v3, %v6551_v55  ;;  %v3544_v15 = vmul.f32 0.5, %v3532_v36 }
 0x9e1   : > { %v3543_v21 = vmul.f32 0.5, %v3531_v57  ;;  %v3534_v45 = vadd.f32 1.0, %v5239_v34 }
 0x9e2   : > { %v5241_v11 = vpop.eup %5240  ;;  %5082 = vmatprep.mubr.msk.f32.mxu1 %vm3576_vm4, %v3553_v37  ;;  %v3556_v47 = vmul.f32 %v3544_v15, %v6558_v49 }
 0x9e3   : > { %5083 = vmatmul.mubr.msk.f32.gmra.mxu1 %vm3576_vm4, %v3554_v5  ;;  %v3555_v20 = vmul.f32 %v3543_v21, %v6562_v22  ;;  %v3533_v40 = vadd.f32 1.0, %v5241_v11  ;;  %v3546_v55 = vmul.f32 0.5, %v3534_v45 }
 0x9e5   : > { %v5243_v7 = vpop.eup %5242  ;;  %5085 = vmatprep.mubr.msk.f32.mxu1 %vm3576_vm4, %v3555_v20  ;;  %v3545_v0 = vmul.f32 0.5, %v3533_v40  ;;  %v3558_v22 = vmul.f32 %v3546_v55, %v6570_v16 }
 0x9e6   : > { %v3536_v9 = vadd.f32 1.0, %v5243_v7 }
 0x9e7   : > { %v5245_v35 = vpop.eup %5244  ;;  %5086 = vmatmul.mubr.msk.f32.gmra.mxu1 %vm3576_vm4, %v3556_v47  ;;  %v3557_v25 = vmul.f32 %v3545_v0, %v6578_v29  ;;  %v4386_v29 = vld [vmem:[%s803_s19] ss:$0 sm:$0xff] }
 0x9e8   : > { %v3535_v46 = vadd.f32 1.0, %v5245_v35  ;;  %v3548_v56 = vmul.f32 0.5, %v3536_v9 }
 0x9e9   : > { %5088 = vmatprep.mubr.msk.f32.mxu1 %vm3576_vm4, %v3557_v25 }
 0x9ea   : > { %v3547_v17 = vmul.f32 0.5, %v3535_v46  ;;  %v3560_v19 = vmul.f32 %v3548_v56, %v6585_v8 }
 0x9eb   : > { %5089 = vmatmul.mubr.msk.f32.gmra.mxu1 %vm3576_vm4, %v3558_v22 }
 0x9ec   : > { %v3559_v49 = vmul.f32 %v3547_v17, %v6593_v4 }
 0x9ee   : > { %5091 = vmatprep.mubr.msk.f32.mxu1 %vm3576_vm4, %v3559_v49 }
 0x9ef   : > { %5092 = vmatmul.mubr.msk.f32.gmra.mxu1 %vm3576_vm4, %v3560_v19 }
 0xa9a   : > { %v5078_v28 = vpop.f32.mrf.mxu1 }
 0xa9b   : > { %v3685_v23 = vadd.f32 %v5078_v28, %v4386_v29 }
 0xa9c   : > { %v3679_v16 = vpop.f32.mrf.mxu1 }
 0xa9d   : > { %v3680_v31 = vadd.f32 %v4386_v29, %v3679_v16  ;;  %v3739_v27 = vadd.f32 %v3685_v23, %v6440_v60 }
 0xa9e   : > { %v5081_v52 = vpop.f32.mrf.mxu1 }
 0xa9f   : > { %v3695_v32 = vadd.f32 %v5081_v52, %v4386_v29  ;;  %v3755_v4 = vsel %vm874_vm1, %v3739_v27, 0.0  ;;  %v3738_v8 = vadd.f32 %v3680_v31, %v6438_v61 }
 0xaa0   : > { %3756 = vadd.xlane.f32.xlu1 %v3755_v4  ;;  %v3689_v33 = vpop.f32.mrf.mxu1 }
 0xaa1   : > { %v3690_v26 = vadd.f32 %v4386_v29, %v3689_v33  ;;  %v3752_v38 = vsel %vm874_vm1, %v3738_v8, 0.0  ;;  %v3741_v59 = vadd.f32 %v3695_v32, %v6454_v12 }
 0xaa2   : > { %3753 = vadd.xlane.f32.xlu0 %v3752_v38 }
 0xaa3   : > { %v5084_v13 = vpop.f32.mrf.mxu1  ;;  %v3761_v51 = vsel %vm874_vm1, %v3741_v59, 0.0  ;;  %v3740_v62 = vadd.f32 %v3690_v26, %v6449_v53 }
 0xaa4   : > { %v3705_v60 = vadd.f32 %v5084_v13, %v4386_v29  ;;  %3762 = vadd.xlane.f32.xlu1 %v3761_v51 }
 0xaa5   : > { %v3699_v39 = vpop.f32.mrf.mxu1  ;;  %v3758_v58 = vsel %vm874_vm1, %v3740_v62, 0.0 }
 0xaa6   : > { %v3700_v6 = vadd.f32 %v4386_v29, %v3699_v39  ;;  %3759 = vadd.xlane.f32.xlu0 %v3758_v58  ;;  %v3743_v61 = vadd.f32 %v3705_v60, %v6466_v41 }
 0xaa7   : > { %v5087_v44 = vpop.f32.mrf.mxu1 }
 0xaa8   : > { %v3715_v2 = vadd.f32 %v5087_v44, %v4386_v29  ;;  %v3767_v30 = vsel %vm874_vm1, %v3743_v61, 0.0  ;;  %v3742_v12 = vadd.f32 %v3700_v6, %v6461_v63 }
 0xaa9   : > { %3768 = vadd.xlane.f32.xlu1 %v3767_v30  ;;  %v3709_v42 = vpop.f32.mrf.mxu1 }
 0xaaa   : > { %v3710_v18 = vadd.f32 %v4386_v29, %v3709_v42  ;;  %v3764_v53 = vsel %vm874_vm1, %v3742_v12, 0.0  ;;  %v3745_v54 = vadd.f32 %v3715_v2, %v6478_v43 }
 0xaab   : > { %3765 = vadd.xlane.f32.xlu0 %v3764_v53  ;;  %v5090_v10 = vpop.f32.mrf.mxu1 }
 0xaac   : > { %v3725_v3 = vadd.f32 %v5090_v10, %v4386_v29  ;;  %v3773_v36 = vsel %vm874_vm1, %v3745_v54, 0.0  ;;  %v3744_v41 = vadd.f32 %v3710_v18, %v6473_v1 }
 0xaad   : > { %3774 = vadd.xlane.f32.xlu1 %v3773_v36  ;;  %v3719_v57 = vpop.f32.mrf.mxu1 }
 0xaae   : > { %v3720_v34 = vadd.f32 %v4386_v29, %v3719_v57  ;;  %v3770_v37 = vsel %vm874_vm1, %v3744_v41, 0.0  ;;  %v6649_v63 = vadd.f32 %v3725_v3, %v6490_v48 }
 0xaaf   : > { %3771 = vadd.xlane.f32.xlu0 %v3770_v37  ;;  %v5093_v5 = vpop.f32.mrf.mxu1 }
 0xab0   : > { %v3735_v21 = vadd.f32 %v5093_v5, %v4386_v29  ;;  %v3779_v43 = vsel %vm874_vm1, %v6649_v63, 0.0  ;;  %v6654_v15 = vadd.f32 %v3720_v34, %v6485_v14 }
 0xab1   : > { %3780 = vadd.xlane.f32.xlu1 %v3779_v43  ;;  %v3729_v45 = vpop.f32.mrf.mxu1 }
 0xab2   : > { %v3730_v1 = vadd.f32 %v4386_v29, %v3729_v45  ;;  %v3776_v11 = vsel %vm874_vm1, %v6654_v15, 0.0  ;;  %v6659_v20 = vadd.f32 %v3735_v21, %v6500_v50 }
 0xab3   : > { %3777 = vadd.xlane.f32.xlu0 %v3776_v11 }
 0xab4   : > { %v3785_v48 = vsel %vm874_vm1, %v6659_v20, 0.0  ;;  %v6664_v40 = vadd.f32 %v3730_v1, %v6496_v24 }
 0xab5   : > { %3786 = vadd.xlane.f32.xlu1 %v3785_v48 }
 0xab6   : > { %v3782_v14 = vsel %vm874_vm1, %v6664_v40, 0.0 }
 0xab7   : > { %3783 = vadd.xlane.f32.xlu0 %v3782_v14 }
 0xb29   : > { %v3757_v7 = vpop.xlane.xlu1 %3756 }
 0xb2a   : > { %v3789_v47 = vmul.f32 0.03125, %v3757_v7 }
 0xb2b   : > { %v3754_v0 = vpop.xlane.xlu0 %3753 }
 0xb2c   : > { %v6668_v55 = vsub.f32 %v3739_v27, %v3789_v47  ;;  %v3788_v9 = vmul.f32 0.03125, %v3754_v0 }
 0xb2d   : > { %v3763_v50 = vpop.xlane.xlu1 %3762 }
 0xb2e   : > { %v6670_v35 = vsub.f32 %v3738_v8, %v3788_v9  ;;  %v3791_v25 = vmul.f32 0.03125, %v3763_v50  ;;  %v3813_v46 = vmul.f32 %v6668_v55, %v6668_v55 }
 0xb2f   : > { %v3760_v24 = vpop.xlane.xlu0 %3759 }
 0xb30   : > { %v6674_v22 = vsub.f32 %v3741_v59, %v3791_v25  ;;  %v3790_v56 = vmul.f32 0.03125, %v3760_v24  ;;  %v3827_v17 = vsel %vm874_vm1, %v3813_v46, 0.0  ;;  %v3812_v49 = vmul.f32 %v6670_v35, %v6670_v35 }
 0xb31   : > { %3828 = vadd.xlane.f32.xlu1 %v3827_v17 }
 0xb32   : > { %v6679_v19 = vsub.f32 %v3740_v62, %v3790_v56  ;;  %v3769_v29 = vpop.xlane.xlu1 %3768  ;;  %v3824_v28 = vsel %vm874_vm1, %v3812_v49, 0.0  ;;  %v3815_v23 = vmul.f32 %v6674_v22, %v6674_v22 }
 0xb33   : > { %v3793_v16 = vmul.f32 0.03125, %v3769_v29  ;;  %3825 = vadd.xlane.f32.xlu0 %v3824_v28 }
 0xb34   : > { %v3766_v31 = vpop.xlane.xlu0 %3765  ;;  %v3833_v27 = vsel %vm874_vm1, %v3815_v23, 0.0  ;;  %v3814_v52 = vmul.f32 %v6679_v19, %v6679_v19 }
 0xb35   : > { %v6687_v32 = vsub.f32 %v3743_v61, %v3793_v16  ;;  %v3792_v4 = vmul.f32 0.03125, %v3766_v31  ;;  %3834 = vadd.xlane.f32.xlu1 %v3833_v27 }
 0xb36   : > { %v3775_v8 = vpop.xlane.xlu1 %3774  ;;  %v3830_v33 = vsel %vm874_vm1, %v3814_v52, 0.0 }
 0xb37   : > { %v6690_v26 = vsub.f32 %v3742_v12, %v3792_v4  ;;  %v3795_v38 = vmul.f32 0.03125, %v3775_v8  ;;  %3831 = vadd.xlane.f32.xlu0 %v3830_v33  ;;  %v3817_v59 = vmul.f32 %v6687_v32, %v6687_v32 }
 0xb38   : > { %v3772_v13 = vpop.xlane.xlu0 %3771 }
 0xb39   : > { %v6694_v51 = vsub.f32 %v3745_v54, %v3795_v38  ;;  %v3794_v62 = vmul.f32 0.03125, %v3772_v13  ;;  %v3839_v60 = vsel %vm874_vm1, %v3817_v59, 0.0  ;;  %v3816_v39 = vmul.f32 %v6690_v26, %v6690_v26  ;;  %v6737_v38 = vld [vmem:[%s806_s21] ss:$0 sm:$0xff] }
 0xb3a   : > { %v3781_v58 = vpop.xlane.xlu1 %3780  ;;  %3840 = vadd.xlane.f32.xlu1 %v3839_v60 }
 0xb3b   : > { %v6699_v6 = vsub.f32 %v3744_v41, %v3794_v62  ;;  %v3797_v61 = vmul.f32 0.03125, %v3781_v58  ;;  %v3836_v44 = vsel %vm874_vm1, %v3816_v39, 0.0  ;;  %v3819_v2 = vmul.f32 %v6694_v51, %v6694_v51  ;;  %v6745_v58 = vld [vmem:[%s809_s22] ss:$0 sm:$0xff] }
 0xb3c   : > { %3837 = vadd.xlane.f32.xlu0 %v3836_v44  ;;  %v3778_v30 = vpop.xlane.xlu0 %3777 }
 0xb3d   : > { %v6705_v12 = vsub.f32 %v6649_v63, %v3797_v61  ;;  %v3796_v42 = vmul.f32 0.03125, %v3778_v30  ;;  %v3845_v18 = vsel %vm874_vm1, %v3819_v2, 0.0  ;;  %v3818_v53 = vmul.f32 %v6699_v6, %v6699_v6 }
 0xb3e   : > { %3846 = vadd.xlane.f32.xlu1 %v3845_v18  ;;  %v3787_v54 = vpop.xlane.xlu1 %3786 }
 0xb3f   : > { %v6711_v10 = vsub.f32 %v6654_v15, %v3796_v42  ;;  %v3799_v3 = vmul.f32 0.03125, %v3787_v54  ;;  %v3842_v36 = vsel %vm874_vm1, %v3818_v53, 0.0  ;;  %v3821_v41 = vmul.f32 %v6705_v12, %v6705_v12 }
 0xb40   : > { %3843 = vadd.xlane.f32.xlu0 %v3842_v36  ;;  %v3784_v57 = vpop.xlane.xlu0 %3783 }
 0xb41   : > { %v6717_v34 = vsub.f32 %v6659_v20, %v3799_v3  ;;  %v3798_v37 = vmul.f32 0.03125, %v3784_v57  ;;  %v3851_v63 = vsel %vm874_vm1, %v3821_v41, 0.0  ;;  %v3820_v5 = vmul.f32 %v6711_v10, %v6711_v10 }
 0xb42   : > { %3852 = vadd.xlane.f32.xlu1 %v3851_v63 }
 0xb43   : > { %v6723_v21 = vsub.f32 %v6664_v40, %v3798_v37  ;;  %v3848_v43 = vsel %vm874_vm1, %v3820_v5, 0.0  ;;  %v3823_v15 = vmul.f32 %v6717_v34, %v6717_v34 }
 0xb44   : > { %3849 = vadd.xlane.f32.xlu0 %v3848_v43 }
 0xb45   : > { %v3857_v45 = vsel %vm874_vm1, %v3823_v15, 0.0  ;;  %v3822_v1 = vmul.f32 %v6723_v21, %v6723_v21 }
 0xb46   : > { %3858 = vadd.xlane.f32.xlu1 %v3857_v45 }
 0xb47   : > { %v3854_v11 = vsel %vm874_vm1, %v3822_v1, 0.0 }
 0xb48   : > { %3855 = vadd.xlane.f32.xlu0 %v3854_v11 }
 0xbba   : > { %v3829_v20 = vpop.xlane.xlu1 %3828 }
 0xbbb   : > { %v3861_v48 = vmul.f32 0.03125, %v3829_v20 }
 0xbbc   : > { %v3826_v14 = vpop.xlane.xlu0 %3825 }
 0xbbd   : > { %v3873_v40 = vadd.f32 1e-12, %v3861_v48  ;;  %v3860_v7 = vmul.f32 0.03125, %v3826_v14 }
 0xbbe   : > { %v3835_v47 = vpop.xlane.xlu1 %3834 }
 0xbbf   : > { %5246 = vrsqrt.f32 %v3873_v40  ;;  %v3872_v0 = vadd.f32 1e-12, %v3860_v7  ;;  %v3863_v9 = vmul.f32 0.03125, %v3835_v47 }
 0xbc0   : > { %v3832_v50 = vpop.xlane.xlu0 %3831 }
 0xbc1   : > { %5248 = vrsqrt.f32 %v3872_v0  ;;  %v3875_v25 = vadd.f32 1e-12, %v3863_v9  ;;  %v3862_v46 = vmul.f32 0.03125, %v3832_v50 }
 0xbc3   : > { %5250 = vrsqrt.f32 %v3875_v25  ;;  %v3874_v24 = vadd.f32 1e-12, %v3862_v46  ;;  %v3841_v56 = vpop.xlane.xlu1 %3840 }
 0xbc4   : > { %v3865_v17 = vmul.f32 0.03125, %v3841_v56 }
 0xbc5   : > { %5252 = vrsqrt.f32 %v3874_v24  ;;  %v3838_v49 = vpop.xlane.xlu0 %3837 }
 0xbc6   : > { %v3877_v29 = vadd.f32 1e-12, %v3865_v17  ;;  %v3864_v28 = vmul.f32 0.03125, %v3838_v49 }
 0xbc7   : > { %v3847_v23 = vpop.xlane.xlu1 %3846 }
 0xbc8   : > { %5254 = vrsqrt.f32 %v3877_v29  ;;  %v3876_v16 = vadd.f32 1e-12, %v3864_v28  ;;  %v3867_v31 = vmul.f32 0.03125, %v3847_v23 }
 0xbc9   : > { %v3844_v27 = vpop.xlane.xlu0 %3843 }
 0xbca   : > { %5256 = vrsqrt.f32 %v3876_v16  ;;  %v3879_v52 = vadd.f32 1e-12, %v3867_v31  ;;  %v3866_v4 = vmul.f32 0.03125, %v3844_v27 }
 0xbcb   : > { %v3853_v8 = vpop.xlane.xlu1 %3852 }
 0xbcc   : > { %v5247_v33 = vpop.eup %5246  ;;  %5258 = vrsqrt.f32 %v3879_v52  ;;  %v3878_v59 = vadd.f32 1e-12, %v3866_v4  ;;  %v3869_v13 = vmul.f32 0.03125, %v3853_v8 }
 0xbcd   : > { %v3897_v62 = vmul.f32 %v5247_v33, %v6668_v55  ;;  %v3850_v60 = vpop.xlane.xlu0 %3849 }
 0xbce   : > { %v5249_v39 = vpop.eup %5248  ;;  %5260 = vrsqrt.f32 %v3878_v59  ;;  %v3881_v61 = vadd.f32 1e-12, %v3869_v13  ;;  %v3868_v44 = vmul.f32 0.03125, %v3850_v60 }
 0xbcf   : > { %v3915_v2 = vmul.f32 %v6737_v38, %v3897_v62  ;;  %v3896_v30 = vmul.f32 %v5249_v39, %v6670_v35  ;;  %v3859_v42 = vpop.xlane.xlu1 %3858 }
 0xbd0   : > { %v5251_v18 = vpop.eup %5250  ;;  %5262 = vrsqrt.f32 %v3881_v61  ;;  %v3880_v53 = vadd.f32 1e-12, %v3868_v44  ;;  %v3871_v55 = vmul.f32 0.03125, %v3859_v42 }
 0xbd1   : > { %v6750_v54 = vadd.f32 %v6745_v58, %v3915_v2  ;;  %v3914_v3 = vmul.f32 %v6737_v38, %v3896_v30  ;;  %v3899_v36 = vmul.f32 %v5251_v18, %v6674_v22  ;;  %v3856_v41 = vpop.xlane.xlu0 %3855 }
 0xbd2   : > { %v5253_v57 = vpop.eup %5252  ;;  %5264 = vrsqrt.f32 %v3880_v53  ;;  %v3883_v37 = vadd.f32 1e-12, %v3871_v55  ;;  %v3870_v63 = vmul.f32 0.03125, %v3856_v41 }
 0xbd3   : > { %3945 = vst.msk [vmem:[#allocation2 + $0x8] sm:$0xff] %vm874_vm1, %v6750_v54  ;;  %v3932_v35 = vadd.f32 %v6745_v58, %v3914_v3  ;;  %v3917_v5 = vmul.f32 %v6737_v38, %v3899_v36  ;;  %v3898_v43 = vmul.f32 %v5253_v57, %v6679_v19 }
 0xbd4   : > { %5266 = vrsqrt.f32 %v3883_v37  ;;  %v3882_v15 = vadd.f32 1e-12, %v3870_v63 }
 0xbd5   : > { %v5255_v45 = vpop.eup %5254  ;;  %3944 = vst.msk [vmem:[#allocation2] sm:$0xff] %vm874_vm1, %v3932_v35  ;;  %v3935_v22 = vadd.f32 %v6745_v58, %v3917_v5  ;;  %v3916_v1 = vmul.f32 %v6737_v38, %v3898_v43 }
 0xbd6   : > { %v3901_v11 = vmul.f32 %v5255_v45, %v6687_v32  ;;  %5268 = vrsqrt.f32 %v3882_v15 }
 0xbd7   : > { %v5257_v20 = vpop.eup %5256  ;;  %3947 = vst.msk [vmem:[#allocation2 + $0x18] sm:$0xff] %vm874_vm1, %v3935_v22  ;;  %v3934_v48 = vadd.f32 %v6745_v58, %v3916_v1 }
 0xbd8   : > { %v3919_v14 = vmul.f32 %v6737_v38, %v3901_v11  ;;  %v3900_v19 = vmul.f32 %v5257_v20, %v6690_v26 }
 0xbd9   : > { %v5259_v40 = vpop.eup %5258  ;;  %3946 = vst.msk [vmem:[#allocation2 + $0x10] sm:$0xff] %vm874_vm1, %v3934_v48 }
 0xbda   : > { %v3937_v7 = vadd.f32 %v6745_v58, %v3919_v14  ;;  %v3918_v47 = vmul.f32 %v6737_v38, %v3900_v19  ;;  %v3903_v0 = vmul.f32 %v5259_v40, %v6694_v51 }
 0xbdb   : > { %v5261_v32 = vpop.eup %5260 }
 0xbdc   : > { %3949 = vst.msk [vmem:[#allocation2 + $0x28] sm:$0xff] %vm874_vm1, %v3937_v7  ;;  %v3936_v9 = vadd.f32 %v6745_v58, %v3918_v47  ;;  %v3921_v50 = vmul.f32 %v6737_v38, %v3903_v0  ;;  %v3902_v25 = vmul.f32 %v5261_v32, %v6699_v6 }
 0xbdd   : > { %v5263_v46 = vpop.eup %5262 }
 0xbde   : > { %3948 = vst.msk [vmem:[#allocation2 + $0x20] sm:$0xff] %vm874_vm1, %v3936_v9  ;;  %v3939_v26 = vadd.f32 %v6745_v58, %v3921_v50  ;;  %v3920_v24 = vmul.f32 %v6737_v38, %v3902_v25  ;;  %v3905_v56 = vmul.f32 %v5263_v46, %v6705_v12 }
 0xbdf   : > { %v5265_v17 = vpop.eup %5264 }
 0xbe0   : > { %3951 = vst.msk [vmem:[#allocation2 + $0x38] sm:$0xff] %vm874_vm1, %v3939_v26  ;;  %v3938_v51 = vadd.f32 %v6745_v58, %v3920_v24  ;;  %v3923_v49 = vmul.f32 %v6737_v38, %v3905_v56  ;;  %v3904_v29 = vmul.f32 %v5265_v17, %v6711_v10 }
 0xbe1   : > { %v5267_v28 = vpop.eup %5266 }
 0xbe2   : > { %3950 = vst.msk [vmem:[#allocation2 + $0x30] sm:$0xff] %vm874_vm1, %v3938_v51  ;;  %v3941_v6 = vadd.f32 %v6745_v58, %v3923_v49  ;;  %v3922_v23 = vmul.f32 %v6737_v38, %v3904_v29  ;;  %v3907_v16 = vmul.f32 %v5267_v28, %v6717_v34 }
 0xbe3   : > { %v5269_v31 = vpop.eup %5268 }
 0xbe4   : > { %3953 = vst.msk [vmem:[#allocation2 + $0x48] sm:$0xff] %vm874_vm1, %v3941_v6  ;;  %v3940_v12 = vadd.f32 %v6745_v58, %v3922_v23  ;;  %v3925_v27 = vmul.f32 %v6737_v38, %v3907_v16  ;;  %v3906_v52 = vmul.f32 %v5269_v31, %v6723_v21 }
 0xbe6   : > { %3952 = vst.msk [vmem:[#allocation2 + $0x40] sm:$0xff] %vm874_vm1, %v3940_v12  ;;  %v3943_v10 = vadd.f32 %v6745_v58, %v3925_v27  ;;  %v3924_v4 = vmul.f32 %v6737_v38, %v3906_v52  ;;  %3959 = sbr.rel (%p4401_p5) target bundleno = 3057 (0xbf1), region = 100 }
 0xbe8   : > { %3955 = vst.msk [vmem:[#allocation2 + $0x58] sm:$0xff] %vm874_vm1, %v3943_v10  ;;  %v3942_v8 = vadd.f32 %v6745_v58, %v3924_v4 }
 0xbea   : > { %3954 = vst.msk [vmem:[#allocation2 + $0x50] sm:$0xff] %vm874_vm1, %v3942_v8 }
 0xbeb   : > { %3960 = vst.msk [vmem:[%s6911_s1] sm:$0xff] %vm874_vm1, %v3932_v35  ;;  %3961 = vst.msk [vmem:[%s6911_s1 + $0x8] sm:$0xff] %vm874_vm1, %v6750_v54 }
 0xbec   : > { %3962 = vst.msk [vmem:[%s6911_s1 + $0x10] sm:$0xff] %vm874_vm1, %v3934_v48  ;;  %3963 = vst.msk [vmem:[%s6911_s1 + $0x18] sm:$0xff] %vm874_vm1, %v3935_v22 }
 0xbed   : > { %3964 = vst.msk [vmem:[%s6911_s1 + $0x20] sm:$0xff] %vm874_vm1, %v3936_v9  ;;  %3965 = vst.msk [vmem:[%s6911_s1 + $0x28] sm:$0xff] %vm874_vm1, %v3937_v7 }
 0xbee   : > { %3966 = vst.msk [vmem:[%s6911_s1 + $0x30] sm:$0xff] %vm874_vm1, %v3938_v51  ;;  %3967 = vst.msk [vmem:[%s6911_s1 + $0x38] sm:$0xff] %vm874_vm1, %v3939_v26 }
 0xbef   : > { %3968 = vst.msk [vmem:[%s6911_s1 + $0x40] sm:$0xff] %vm874_vm1, %v3940_v12  ;;  %3969 = vst.msk [vmem:[%s6911_s1 + $0x48] sm:$0xff] %vm874_vm1, %v3941_v6 }
 0xbf0   : > { %3970 = vst.msk [vmem:[%s6911_s1 + $0x50] sm:$0xff] %vm874_vm1, %v3942_v8  ;;  %3971 = vst.msk [vmem:[%s6911_s1 + $0x58] sm:$0xff] %vm874_vm1, %v3943_v10 }
 0xbf1 PF: > { %s6912_s2 = sld [smem:[#allocation3_spill]] }
 0xbf7   : > { %s28_s27 = sadd.s32 1, %s6912_s2  }
 0xbf8   : > { %p25_p6 = scmp.ge.s32.totalorder %s28_s27, 4  }
 0xbfa   :  { %27 = sbr.rel (!%p25_p6) target bundleno = 12 (0xc), region = 178 }

// kernel: belief_tracker_forward.3
= control target key start
LH: loop header
LB: loop body
LE: loop exit
PB: predicated region body
PF: predicated region fallthrough
CT: control target
= control target key end

     0   :  { %vm75_vm0 = vcmask 261120   ;;  %vm437_vm1 = vcmask 130048   ;;  %vm569_vm2 = vcmask 392192   ;;  %vm1937_vm3 = vcmask 523264   ;;  %s3716_s4 = inlined_call_operand.vmem [shape: f32[1,2,32,16], index: 4, kind: input, shape index: {}]   ;;  %s3717_s0 = inlined_call_operand.vmem [shape: f32[48,32], index: 0, kind: input, shape index: {}]   ;;  %s3718_s2 = inlined_call_operand.vmem [shape: f32[1,2,32,16], index: 2, kind: input, shape index: {}]   ;;  %s3719_s3 = inlined_call_operand.vmem [shape: f32[1,2,1,16], index: 3, kind: input, shape index: {}]   ;;  %s3720_s5 = inlined_call_operand.vmem [shape: f32[1,2,1,16], index: 5, kind: input, shape index: {}]   ;;  %s3721_s6 = inlined_call_operand.vmem [shape: f32[1,2,32,16], index: 6, kind: input, shape index: {}]   ;;  %s3722_s1 = inlined_call_operand.vmem [shape: f32[48,48], index: 1, kind: input, shape index: {}]   ;;  %s3723_s7 = inlined_call_operand.vmem [shape: f32[1,2,1,16], index: 7, kind: input, shape index: {}]   ;;  %s3724_s8 = inlined_call_operand.vmem [shape: f32[1,2,16,32], index: 8, kind: input, shape index: {}]   ;;  %s3725_s9 = inlined_call_operand.vmem [shape: f32[1,1,32], index: 9, kind: input, shape index: {}]   ;;  %s3726_s12 = inlined_call_operand.vmem [shape: f32[1,32,64], index: 12, kind: input, shape index: {}]   ;;  %s3727_s10 = inlined_call_operand.vmem [shape: f32[1,1,32], index: 10, kind: input, shape index: {}]   ;;  %s3728_s11 = inlined_call_operand.vmem [shape: f32[1,1,32], index: 11, kind: input, shape index: {}]   ;;  %s3729_s14 = inlined_call_operand.vmem [shape: f32[1,64,32], index: 14, kind: input, shape index: {}]   ;;  %s3730_s13 = inlined_call_operand.vmem [shape: f32[1,1,64], index: 13, kind: input, shape index: {}]   ;;  %s3731_s15 = inlined_call_operand.vmem [shape: f32[1,1,32], index: 15, kind: input, shape index: {}]   ;;  %s3732_s18 = inlined_call_operand.vmem [shape: f32[32,27], index: 18, kind: input, shape index: {}]   ;;  %s3733_s16 = inlined_call_operand.vmem [shape: f32[1,1,32], index: 16, kind: input, shape index: {}]   ;;  %s3734_s17 = inlined_call_operand.vmem [shape: f32[1,1,32], index: 17, kind: input, shape index: {}]   ;;  %s3735_s19 = inlined_call_operand.vmem [shape: f32[1,27], index: 19, kind: input, shape index: {}]   ;;  %s3736_s20 = inlined_call_operand.vmem [shape: f32[48,27], index: 20, kind: output, shape index: {}]  }
   0x1   :  { %3742 = sst [smem:[#allocation3_spill]] %s3716_s4  ;;  %v334_v52 = vld [vmem:[%s3721_s6 + $0x18] sm:$0xff]  ;;  %v333_v53 = vld [vmem:[%s3721_s6 + $0x10] sm:$0xff]  ;;  %v332_v54 = vld [vmem:[%s3721_s6 + $0x8] sm:$0xff]  ;;  %vm2294_vm4 = vcmask 220160  }
   0x2   :  { %3743 = sst [smem:[#allocation4_spill]] %s3717_s0  ;;  %v331_v55 = vld [vmem:[%s3721_s6] sm:$0xff]  ;;  %v3215_v58 = vld [vmem:[%s3722_s1 + $0x8] sm:$0xff]  ;;  %v3223_v62 = vld [vmem:[%s3722_s1 + $0x10] sm:$0xff] }
   0x3   :  { %3744 = sst [smem:[#allocation5_spill]] %s3718_s2  ;;  %v3210_v57 = vld [vmem:[%s3722_s1] sm:$0xff] }
   0x4   :  { %3745 = sst [smem:[#allocation6_spill]] %s3719_s3 }
   0x5   :  { %3746 = sst [smem:[#allocation7_spill]] %s3720_s5 }
   0x6   :  { %s3747_s23 = sld [smem:[#allocation3_spill]] }
   0x7   :  { %s3748_s28 = sld [smem:[#allocation4_spill]] }
   0x8   :  { %s3749_s27 = sld [smem:[#allocation5_spill]] }
   0x9   :  { %s3750_s25 = sld [smem:[#allocation6_spill]] }
   0xa   :  { %s3751_s5 = sld [smem:[#allocation7_spill]] }
   0xc   :  { %v228_v0 = vld [vmem:[%s3747_s23 + $0x18] sm:$0xff]  ;;  %v227_v1 = vld [vmem:[%s3747_s23 + $0x10] sm:$0xff]  ;;  %v226_v2 = vld [vmem:[%s3747_s23 + $0x8] sm:$0xff] }
   0xd   :  { %2613 = vmatprep.subr.mxu1 %v228_v0  ;;  %v69_v3 = vld [vmem:[%s3748_s28] sm:$0xff]  ;;  %v70_v4 = vld [vmem:[%s3748_s28 + $0x8] sm:$0xff]  ;;  %v71_v5 = vld [vmem:[%s3748_s28 + $0x10] sm:$0xff] }
   0xe   :  { %2614 = vmatpush3.msra.mxu1 %v228_v0  ;;  %76 = vst.msk [vmem:[#allocation2] sm:$0xff] %vm75_vm0, %v69_v3  ;;  %77 = vst.msk [vmem:[#allocation2 + $0x8] sm:$0xff] %vm75_vm0, %v70_v4  ;;  %v72_v6 = vld [vmem:[%s3748_s28 + $0x18] sm:$0xff]  ;;  %v73_v7 = vld [vmem:[%s3748_s28 + $0x20] sm:$0xff] }
   0xf   :  { %2615 = vmatprep.subr.mxu1 %v227_v1  ;;  %78 = vst.msk [vmem:[#allocation2 + $0x10] sm:$0xff] %vm75_vm0, %v71_v5  ;;  %79 = vst.msk [vmem:[#allocation2 + $0x18] sm:$0xff] %vm75_vm0, %v72_v6  ;;  %v74_v8 = vld [vmem:[%s3748_s28 + $0x28] sm:$0xff]  ;;  %v97_v9 = vld [vmem:[%s3749_s27 + $0x18] sm:$0xff] }
  0x10   :  { %80 = vst.msk [vmem:[#allocation2 + $0x20] sm:$0xff] %vm75_vm0, %v73_v7  ;;  %v96_v10 = vld [vmem:[%s3749_s27 + $0x10] sm:$0xff]  ;;  %2616 = vmatpush3.msra.mxu1 %v227_v1  ;;  %v225_v11 = vld [vmem:[%s3747_s23] sm:$0xff]  ;;  %81 = vst.msk [vmem:[#allocation2 + $0x28] sm:$0xff] %vm75_vm0, %v74_v8  ;;  %2596 = vmatprep.subr.mxu0 %v97_v9 }
  0x11   :  { %2617 = vmatprep.subr.mxu1 %v226_v2  ;;  %2597 = vmatpush3.msra.mxu0 %v97_v9  ;;  %v95_v12 = vld [vmem:[%s3749_s27 + $0x8] sm:$0xff]  ;;  %v94_v13 = vld [vmem:[%s3749_s27] sm:$0xff]  ;;  %v3233_v1 = vld [vmem:[%s3722_s1 + $0x18] sm:$0xff] }
  0x12   :  { %2618 = vmatpush3.msra.mxu1 %v226_v2  ;;  %2598 = vmatprep.subr.mxu0 %v96_v10  ;;  %v2305_v23 = vld [vmem:[%s3750_s25] ss:$0 sm:$0xff]  ;;  %v3253_v9 = vld [vmem:[%s3722_s1 + $0x28] sm:$0xff] }
  0x13   :  { %2619 = vmatprep.subr.mxu1 %v225_v11  ;;  %2599 = vmatpush3.msra.mxu0 %v96_v10  ;;  %v2312_v29 = vld [vmem:[%s3751_s5] ss:$0 sm:$0xff] }
  0x14   :  { %2620 = vmatpush3.msra.mxu1 %v225_v11  ;;  %2600 = vmatprep.subr.mxu0 %v95_v12  ;;  %v3241_v5 = vld [vmem:[%s3722_s1 + $0x20] sm:$0xff] }
  0x15   :  { %v3121_v14 = vld [vmem:[#allocation2] sm:$0xff]  ;;  %v3123_v15 = vld [vmem:[#allocation2 + $0x8] sm:$0xff]  ;;  %2601 = vmatpush3.msra.mxu0 %v95_v12 }
  0x16   :  { %2621 = vmatprep.mubr.msk.f32.mxu1 %vm75_vm0, %v3121_v14  ;;  %v3127_v16 = vld [vmem:[#allocation2 + $0x10] sm:$0xff]  ;;  %2602 = vmatprep.subr.mxu0 %v94_v13  ;;  %v3133_v17 = vld [vmem:[#allocation2 + $0x18] sm:$0xff] }
  0x17   :  { %2622 = vmatmul.mubr.msk.f32.vlgmr.msra.gmra.mxu1 %vm75_vm0, %v3123_v15  ;;  %2603 = vmatpush3.msra.mxu0 %v94_v13  ;;  %v3137_v18 = vld [vmem:[#allocation2 + $0x20] sm:$0xff]  ;;  %v3147_v19 = vld [vmem:[#allocation2 + $0x28] sm:$0xff] }
  0x18   :  { %2624 = vmatprep.mubr.msk.f32.mxu1 %vm75_vm0, %v3127_v16  ;;  %2604 = vmatprep.mubr.msk.f32.mxu0 %vm75_vm0, %v3121_v14 }
  0x19   :  { %2605 = vmatmul.mubr.msk.f32.vlgmr.msra.gmra.mxu0 %vm75_vm0, %v3123_v15  ;;  %2630 = vmatprep.subr.mxu0 %v334_v52 }
  0x1a   :  { %2607 = vmatprep.mubr.msk.f32.mxu0 %vm75_vm0, %v3127_v16  ;;  %2631 = vmatpush3.msra.mxu0 %v334_v52 }
  0x1b   :  { %2625 = vmatmul.mubr.msk.f32.gmra.mxu1 %vm75_vm0, %v3133_v17  ;;  %2632 = vmatprep.subr.mxu0 %v333_v53 }
  0x1c   :  { %2627 = vmatprep.mubr.msk.f32.mxu1 %vm75_vm0, %v3137_v18  ;;  %2633 = vmatpush3.msra.mxu0 %v333_v53 }
  0x1d   :  { %2608 = vmatmul.mubr.msk.f32.gmra.mxu0 %vm75_vm0, %v3133_v17  ;;  %2634 = vmatprep.subr.mxu0 %v332_v54 }
  0x1e   :  { %2610 = vmatprep.mubr.msk.f32.mxu0 %vm75_vm0, %v3137_v18  ;;  %2635 = vmatpush3.msra.mxu0 %v332_v54 }
  0x1f   :  { %2628 = vmatmul.mubr.msk.f32.gmra.mxu1 %vm75_vm0, %v3147_v19  ;;  %2636 = vmatprep.subr.mxu0 %v331_v55 }
  0x20   :  { %2637 = vmatpush3.msra.mxu0 %v331_v55 }
  0x21   :  { %2611 = vmatmul.mubr.msk.f32.gmra.mxu0 %vm75_vm0, %v3147_v19 }
  0x22   :  { %2638 = vmatprep.mubr.msk.f32.mxu0 %vm75_vm0, %v3121_v14 }
  0x25   :  { %2639 = vmatmul.mubr.msk.f32.vlgmr.msra.gmra.mxu0 %vm75_vm0, %v3123_v15 }
  0x26   :  { %2641 = vmatprep.mubr.msk.f32.mxu0 %vm75_vm0, %v3127_v16 }
  0x29   :  { %2642 = vmatmul.mubr.msk.f32.gmra.mxu0 %vm75_vm0, %v3133_v17 }
  0x2a   :  { %2644 = vmatprep.mubr.msk.f32.mxu0 %vm75_vm0, %v3137_v18 }
  0x2d   :  { %2645 = vmatmul.mubr.msk.f32.gmra.mxu0 %vm75_vm0, %v3147_v19 }
  0xd7   :  { %v2623_v20 = vpop.f32.mrf.mxu1 }
  0xd8   :  { %v308_v37 = vadd.f32 %v2623_v20, %v2312_v29 }
  0xd9   :  { %v302_v21 = vpop.f32.mrf.mxu1  ;;  %v2606_v22 = vpop.f32.mrf.mxu0 }
  0xda   :  { %v303_v40 = vadd.f32 %v2312_v29, %v302_v21  ;;  %v196_v42 = vadd.f32 %v2606_v22, %v2305_v23  ;;  %v2359_v22 = vld [vmem:[%s3747_s23 + $0x38] sm:$0xff] }
  0xdb   :  { %v2626_v24 = vpop.f32.mrf.mxu1  ;;  %v190_v25 = vpop.f32.mrf.mxu0 }
  0xdc   :  { %v191_v26 = vadd.f32 %v2305_v23, %v190_v25  ;;  %v318_v34 = vadd.f32 %v2626_v24, %v2312_v29  ;;  %v220_v46 = vmul.f32 0.25, %v196_v42  ;;  %v2357_v24 = vld [vmem:[%s3747_s23 + $0x28] sm:$0xff]  ;;  %v2356_v25 = vld [vmem:[%s3747_s23 + $0x20] sm:$0xff] }
  0xdd   :  { %v312_v27 = vpop.f32.mrf.mxu1  ;;  %v2609_v36 = vpop.f32.mrf.mxu0 }
  0xde   :  { %v219_v28 = vmul.f32 0.25, %v191_v26  ;;  %v313_v35 = vadd.f32 %v2312_v29, %v312_v27  ;;  %v206_v47 = vadd.f32 %v2609_v36, %v2305_v23 }
  0xdf   :  { %v2629_v30 = vpop.f32.mrf.mxu1  ;;  %v200_v38 = vpop.f32.mrf.mxu0 }
  0xe0   :  { %v328_v31 = vadd.f32 %v2629_v30, %v2312_v29  ;;  %2659 = vmatprep.mubr.msk.f32.mxu1 %vm437_vm1, %v219_v28  ;;  %v201_v41 = vadd.f32 %v2305_v23, %v200_v38  ;;  %v222_v50 = vmul.f32 0.25, %v206_v47 }
  0xe1   :  { %v322_v32 = vpop.f32.mrf.mxu1  ;;  %v2612_v39 = vpop.f32.mrf.mxu0 }
  0xe2   :  { %v323_v33 = vadd.f32 %v2312_v29, %v322_v32  ;;  %2647 = vmatprep.subr.msk.mxu1 %vm437_vm1, %v328_v31  ;;  %v221_v44 = vmul.f32 0.25, %v201_v41  ;;  %v216_v48 = vadd.f32 %v2612_v39, %v2305_v23  ;;  %v2319_v29 = vld [vmem:[%s3723_s7] ss:$0 sm:$0xff] }
  0xe3   :  { %2648 = vmatpush3.xpose.msk.msra.mxu1 %vm437_vm1, %v328_v31  ;;  %v210_v43 = vpop.f32.mrf.mxu0 }
  0xe4   :  { %2649 = vmatprep.subr.msk.mxu1 %vm437_vm1, %v323_v33  ;;  %v211_v45 = vadd.f32 %v2305_v23, %v210_v43  ;;  %v224_v51 = vmul.f32 0.25, %v216_v48  ;;  %v2358_v23 = vld [vmem:[%s3747_s23 + $0x30] sm:$0xff] }
  0xe5   :  { %v2640_v26 = vpop.f32.mrf.mxu0 }
  0xe6   :  { %v223_v49 = vmul.f32 0.25, %v211_v45 }
  0xe7   :  { %2650 = vmatpush3.xpose.msk.msra.mxu1 %vm437_vm1, %v323_v33  ;;  %v408_v27 = vpop.f32.mrf.mxu0 }
  0xe8   :  { %2651 = vmatprep.subr.msk.mxu1 %vm437_vm1, %v318_v34  ;;  %v409_v38 = vadd.f32 %v2319_v29, %v408_v27 }
  0xe9   :  { %v2643_v28 = vpop.f32.mrf.mxu0 }
  0xeb   :  { %2652 = vmatpush3.xpose.msk.msra.mxu1 %vm437_vm1, %v318_v34  ;;  %v418_v30 = vpop.f32.mrf.mxu0  ;;  %v424_v34 = vadd.f32 %v2643_v28, %v2319_v29 }
  0xec   :  { %2653 = vmatprep.subr.msk.mxu1 %vm437_vm1, %v313_v35  ;;  %v419_v36 = vadd.f32 %v2319_v29, %v418_v30 }
  0xed   :  { %v2646_v31 = vpop.f32.mrf.mxu0 }
  0xee   :  { %v434_v32 = vadd.f32 %v2646_v31, %v2319_v29 }
  0xef   :  { %2654 = vmatpush3.xpose.msk.msra.mxu1 %vm437_vm1, %v313_v35  ;;  %v428_v33 = vpop.f32.mrf.mxu0 }
  0xf0   :  { %2655 = vmatprep.subr.msk.mxu1 %vm437_vm1, %v308_v37  ;;  %v429_v35 = vadd.f32 %v2319_v29, %v428_v33  ;;  %2668 = vmatprep.subr.mxu0 %v434_v32 }
  0xf1   :  { %2669 = vmatpush3.msra.mxu0 %v434_v32 }
  0xf2   :  { %2670 = vmatprep.subr.mxu0 %v429_v35 }
  0xf3   :  { %2656 = vmatpush3.xpose.msk.msra.mxu1 %vm437_vm1, %v308_v37  ;;  %2671 = vmatpush3.msra.mxu0 %v429_v35  ;;  %v414_v37 = vadd.f32 %v2640_v26, %v2319_v29 }
  0xf4   :  { %2657 = vmatprep.subr.msk.mxu1 %vm437_vm1, %v303_v40  ;;  %2672 = vmatprep.subr.mxu0 %v424_v34 }
  0xf5   :  { %2673 = vmatpush3.msra.mxu0 %v424_v34 }
  0xf6   :  { %2674 = vmatprep.subr.mxu0 %v419_v36 }
  0xf7   :  { %2658 = vmatpush3.xpose.msk.msra.mxu1 %vm437_vm1, %v303_v40  ;;  %2675 = vmatpush3.msra.mxu0 %v419_v36 }
  0xf8   :  { %2706 = vmatprep.subr.mxu1 %v2359_v22  ;;  %2676 = vmatprep.subr.mxu0 %v414_v37 }
  0xf9   :  { %2677 = vmatpush3.msra.mxu0 %v414_v37 }
  0xfa   :  { %2660 = vmatmul.mubr.msk.f32.vlgmr.msra.gmra.mxu1 %vm437_vm1, %v220_v46  ;;  %2678 = vmatprep.subr.mxu0 %v409_v38 }
  0xfb   :  { %2662 = vmatprep.mubr.msk.f32.mxu1 %vm437_vm1, %v221_v44  ;;  %2707 = vmatpush3.msra.mxu1 %v2359_v22 }
  0xfc   :  { %2708 = vmatprep.subr.mxu1 %v2358_v23  ;;  %2679 = vmatpush3.msra.mxu0 %v409_v38 }
  0xfd   :  { %2709 = vmatpush3.msra.mxu1 %v2358_v23 }
  0xfe   :  { %2663 = vmatmul.mubr.msk.f32.gmra.mxu1 %vm437_vm1, %v222_v50  ;;  %2710 = vmatprep.subr.mxu1 %v2357_v24 }
  0xff   :  { %2665 = vmatprep.mubr.msk.f32.mxu1 %vm437_vm1, %v223_v49  ;;  %2711 = vmatpush3.msra.mxu1 %v2357_v24 }
 0x100   :  { %2712 = vmatprep.subr.mxu1 %v2356_v25 }
 0x101   :  { %2713 = vmatpush3.msra.mxu1 %v2356_v25 }
 0x102   :  { %2666 = vmatmul.mubr.msk.f32.gmra.mxu1 %vm437_vm1, %v224_v51 }
 0x103   :  { %2714 = vmatprep.mubr.msk.f32.mxu1 %vm75_vm0, %v3121_v14 }
 0x106   :  { %2715 = vmatmul.mubr.msk.f32.vlgmr.msra.gmra.mxu1 %vm75_vm0, %v3123_v15 }
 0x107   :  { %2717 = vmatprep.mubr.msk.f32.mxu1 %vm75_vm0, %v3127_v16 }
 0x10a   :  { %2718 = vmatmul.mubr.msk.f32.gmra.mxu1 %vm75_vm0, %v3133_v17 }
 0x10b   :  { %2720 = vmatprep.mubr.msk.f32.mxu1 %vm75_vm0, %v3137_v18 }
 0x10e   :  { %2721 = vmatmul.mubr.msk.f32.gmra.mxu1 %vm75_vm0, %v3147_v19 }
 0x1ba   :  { %v2661_v56 = vpop.f32.mrf.mxu1 }
 0x1bb   :  { %v3226_v63 = vadd.f32 %v2661_v56, %v3215_v58 }
 0x1bc   :  { %v540_v59 = vpop.f32.mrf.mxu1 }
 0x1bd   :  { %v3218_v60 = vadd.f32 %v540_v59, %v3210_v57  ;;  %v573_v8 = vsel %vm569_vm2, %v3226_v63, -inf }
 0x1be   :  { %v2664_v61 = vpop.f32.mrf.mxu1 }
 0x1bf   :  { %v570_v0 = vsel %vm569_vm2, %v3218_v60, -inf  ;;  %v3244_v6 = vadd.f32 %v2664_v61, %v3233_v1 }
 0x1c0   :  { %v550_v2 = vpop.f32.mrf.mxu1  ;;  %571 = vmax.xlane.f32.xlu0 %v570_v0 }
 0x1c1   :  { %v3236_v3 = vadd.f32 %v550_v2, %v3223_v62  ;;  %v579_v13 = vsel %vm569_vm2, %v3244_v6, -inf }
 0x1c2   :  { %v2667_v4 = vpop.f32.mrf.mxu1 }
 0x1c3   :  { %v576_v7 = vsel %vm569_vm2, %v3236_v3, -inf  ;;  %v3259_v12 = vadd.f32 %v2667_v4, %v3253_v9 }
 0x1c4   :  { %v560_v10 = vpop.f32.mrf.mxu1  ;;  %577 = vmax.xlane.f32.xlu1 %v576_v7  ;;  %574 = vmax.xlane.f32.xlu0 %v573_v8 }
 0x1c5   :  { %v3256_v11 = vadd.f32 %v560_v10, %v3241_v5  ;;  %v585_v21 = vsel %vm569_vm2, %v3259_v12, -inf }
 0x1c7   :  { %v582_v20 = vsel %vm569_vm2, %v3256_v11, -inf }
 0x1c8   :  { %580 = vmax.xlane.f32.xlu1 %v579_v13  ;;  %583 = vmax.xlane.f32.xlu0 %v582_v20 }
 0x1cc   :  { %586 = vmax.xlane.f32.xlu1 %v585_v21  ;;  %v2361_v21 = vld [vmem:[%s3751_s5 + $0x1] ss:$0 sm:$0xff] }
 0x249   :  { %v572_v39 = vpop.xlane.xlu0 %571 }
 0x24a   :  { %v588_v40 = vsub.f32 %v3218_v60, %v572_v39 }
 0x24c   :  { %v594_v41 = vmul.f32 1.442695, %v588_v40 }
 0x24d   :  { %v578_v42 = vpop.xlane.xlu1 %577  ;;  %v575_v43 = vpop.xlane.xlu0 %574 }
 0x24e   :  { %2879 = vpow2.f32 %v594_v41  ;;  %v590_v44 = vsub.f32 %v3236_v3, %v578_v42  ;;  %v589_v45 = vsub.f32 %v3226_v63, %v575_v43  ;;  %v2346_v43 = vld [vmem:[%s3749_s27 + $0x30] sm:$0xff] }
 0x250   :  { %v598_v46 = vmul.f32 1.442695, %v590_v44  ;;  %v596_v47 = vmul.f32 1.442695, %v589_v45  ;;  %v2345_v45 = vld [vmem:[%s3749_s27 + $0x28] sm:$0xff] }
 0x251   :  { %v581_v48 = vpop.xlane.xlu1 %580  ;;  %v584_v49 = vpop.xlane.xlu0 %583 }
 0x252   :  { %2881 = vpow2.f32 %v598_v46  ;;  %v591_v50 = vsub.f32 %v3244_v6, %v581_v48  ;;  %v592_v51 = vsub.f32 %v3256_v11, %v584_v49  ;;  %v2347_v11 = vld [vmem:[%s3749_s27 + $0x38] sm:$0xff]  ;;  %v2344_v49 = vld [vmem:[%s3749_s27 + $0x20] sm:$0xff] }
 0x253   :  { %2883 = vpow2.f32 %v596_v47  ;;  %2689 = vmatprep.subr.mxu0 %v2347_v11 }
 0x254   :  { %v600_v52 = vmul.f32 1.442695, %v591_v50  ;;  %v602_v53 = vmul.f32 1.442695, %v592_v51 }
 0x255   :  { %v587_v54 = vpop.xlane.xlu1 %586 }
 0x256   :  { %2885 = vpow2.f32 %v600_v52  ;;  %v593_v55 = vsub.f32 %v3259_v12, %v587_v54  ;;  %v2716_v12 = vpop.f32.mrf.mxu1 }
 0x257   :  { %2887 = vpow2.f32 %v602_v53  ;;  %v950_v29 = vadd.f32 %v2716_v12, %v2361_v21 }
 0x258   :  { %v604_v56 = vmul.f32 1.442695, %v593_v55  ;;  %v944_v13 = vpop.f32.mrf.mxu1 }
 0x259   :  { %v945_v30 = vadd.f32 %v2361_v21, %v944_v13 }
 0x25a   :  { %2889 = vpow2.f32 %v604_v56  ;;  %v2719_v20 = vpop.f32.mrf.mxu1 }
 0x25b   :  { %v2880_v59 = vpop.eup %2879  ;;  %v960_v27 = vadd.f32 %v2719_v20, %v2361_v21 }
 0x25c   :  { %v606_v60 = vsel %vm569_vm2, %v2880_v59, 0.0  ;;  %v954_v22 = vpop.f32.mrf.mxu1 }
 0x25d   :  { %607 = vadd.xlane.f32.xlu0 %v606_v60  ;;  %v955_v28 = vadd.f32 %v2361_v21, %v954_v22  ;;  %v2349_v60 = vld [vmem:[%s3750_s25 + $0x1] ss:$0 sm:$0xff] }
 0x25e   :  { %v2722_v23 = vpop.f32.mrf.mxu1 }
 0x25f   :  { %v2882_v61 = vpop.eup %2881  ;;  %v970_v24 = vadd.f32 %v2722_v23, %v2361_v21 }
 0x260   :  { %v2884_v63 = vpop.eup %2883  ;;  %v612_v0 = vsel %vm569_vm2, %v2882_v61, 0.0  ;;  %v964_v25 = vpop.f32.mrf.mxu1 }
 0x261   :  { %613 = vadd.xlane.f32.xlu0 %v612_v0  ;;  %v609_v2 = vsel %vm569_vm2, %v2884_v63, 0.0  ;;  %2740 = vmatprep.subr.msk.mxu1 %vm437_vm1, %v970_v24  ;;  %v965_v26 = vadd.f32 %v2361_v21, %v964_v25  ;;  %v2370_v25 = vld [vmem:[%s3721_s6 + $0x30] sm:$0xff] }
 0x262   :  { %610 = vadd.xlane.f32.xlu1 %v609_v2  ;;  %2741 = vmatpush3.xpose.msk.msra.mxu1 %vm437_vm1, %v970_v24  ;;  %v2371_v24 = vld [vmem:[%s3721_s6 + $0x38] sm:$0xff] }
 0x263   :  { %v3301_v3 = vpop.eup %2885  ;;  %2742 = vmatprep.subr.msk.mxu1 %vm437_vm1, %v965_v26 }
 0x264   :  { %v3303_v4 = vpop.eup %2887  ;;  %v615_v6 = vsel %vm569_vm2, %v3301_v3, 0.0 }
 0x265   :  { %v618_v7 = vsel %vm569_vm2, %v3303_v4, 0.0 }
 0x266   :  { %616 = vadd.xlane.f32.xlu1 %v615_v6  ;;  %619 = vadd.xlane.f32.xlu0 %v618_v7 }
 0x267   :  { %v3309_v8 = vpop.eup %2889  ;;  %2743 = vmatpush3.xpose.msk.msra.mxu1 %vm437_vm1, %v965_v26  ;;  %v2369_v26 = vld [vmem:[%s3721_s6 + $0x28] sm:$0xff] }
 0x268   :  { %v621_v10 = vsel %vm569_vm2, %v3309_v8, 0.0  ;;  %2744 = vmatprep.subr.msk.mxu1 %vm437_vm1, %v960_v27 }
 0x26a   :  { %622 = vadd.xlane.f32.xlu1 %v621_v10 }
 0x26b   :  { %2745 = vmatpush3.xpose.msk.msra.mxu1 %vm437_vm1, %v960_v27  ;;  %v2368_v27 = vld [vmem:[%s3721_s6 + $0x20] sm:$0xff] }
 0x26c   :  { %2746 = vmatprep.subr.msk.mxu1 %vm437_vm1, %v955_v28 }
 0x26f   :  { %2747 = vmatpush3.xpose.msk.msra.mxu1 %vm437_vm1, %v955_v28 }
 0x270   :  { %2748 = vmatprep.subr.msk.mxu1 %vm437_vm1, %v950_v29 }
 0x273   :  { %2749 = vmatpush3.xpose.msk.msra.mxu1 %vm437_vm1, %v950_v29 }
 0x274   :  { %2750 = vmatprep.subr.msk.mxu1 %vm437_vm1, %v945_v30 }
 0x277   :  { %2751 = vmatpush3.xpose.msk.msra.mxu1 %vm437_vm1, %v945_v30 }
 0x2e6   :  { %v608_v31 = vpop.xlane.xlu0 %607 }
 0x2e7   :  { %2891 = vrcp.f32 %v608_v31 }
 0x2ea   :  { %v614_v32 = vpop.xlane.xlu0 %613 }
 0x2eb   :  { %v611_v33 = vpop.xlane.xlu1 %610  ;;  %2893 = vrcp.f32 %v614_v32 }
 0x2ec   :  { %2895 = vrcp.f32 %v611_v33 }
 0x2ef   :  { %v617_v34 = vpop.xlane.xlu1 %616  ;;  %v620_v35 = vpop.xlane.xlu0 %619 }
 0x2f0   :  { %2897 = vrcp.f32 %v617_v34 }
 0x2f1   :  { %2899 = vrcp.f32 %v620_v35 }
 0x2f3   :  { %v623_v36 = vpop.xlane.xlu1 %622 }
 0x2f4   :  { %v2892_v37 = vpop.eup %2891  ;;  %2901 = vrcp.f32 %v623_v36 }
 0x2f5   :  { %v625_v38 = vmul.f32 %v2892_v37, %v2880_v59 }
 0x2f7   :  { %2680 = vmatprep.mubr.msk.f32.mxu0 %vm569_vm2, %v625_v38 }
 0x2f8   :  { %v2894_v39 = vpop.eup %2893 }
 0x2f9   :  { %v2896_v40 = vpop.eup %2895  ;;  %v629_v41 = vmul.f32 %v2894_v39, %v2882_v61 }
 0x2fa   :  { %v627_v42 = vmul.f32 %v2896_v40, %v2884_v63  ;;  %v2373_v40 = vld [vmem:[%s3723_s7 + $0x1] ss:$0 sm:$0xff] }
 0x2fc   :  { %2681 = vmatmul.mubr.msk.f32.vlgmr.msra.gmra.mxu0 %vm569_vm2, %v627_v42 }
 0x2fd   :  { %v2898_v44 = vpop.eup %2897  ;;  %2690 = vmatpush3.msra.mxu0 %v2347_v11  ;;  %2683 = vmatprep.mubr.msk.f32.mxu0 %vm569_vm2, %v629_v41 }
 0x2fe   :  { %v2900_v46 = vpop.eup %2899  ;;  %2691 = vmatprep.subr.mxu0 %v2346_v43  ;;  %v631_v47 = vmul.f32 %v2898_v44, %v3301_v3 }
 0x2ff   :  { %2692 = vmatpush3.msra.mxu0 %v2346_v43  ;;  %v633_v48 = vmul.f32 %v2900_v46, %v3303_v4 }
 0x300   :  { %2684 = vmatmul.mubr.msk.f32.gmra.mxu0 %vm569_vm2, %v631_v47  ;;  %2693 = vmatprep.subr.mxu0 %v2345_v45 }
 0x301   :  { %v2902_v50 = vpop.eup %2901  ;;  %2686 = vmatprep.mubr.msk.f32.mxu0 %vm569_vm2, %v633_v48  ;;  %2694 = vmatpush3.msra.mxu0 %v2345_v45 }
 0x302   :  { %v635_v51 = vmul.f32 %v2902_v50, %v3309_v8  ;;  %2695 = vmatprep.subr.mxu0 %v2344_v49 }
 0x303   :  { %2696 = vmatpush3.msra.mxu0 %v2344_v49 }
 0x304   :  { %2687 = vmatmul.mubr.msk.f32.gmra.mxu0 %vm569_vm2, %v635_v51  ;;  %2723 = vmatprep.subr.mxu0 %v2371_v24 }
 0x305   :  { %2697 = vmatprep.mubr.msk.f32.mxu0 %vm75_vm0, %v3121_v14 }
 0x308   :  { %2698 = vmatmul.mubr.msk.f32.vlgmr.msra.gmra.mxu0 %vm75_vm0, %v3123_v15 }
 0x309   :  { %2700 = vmatprep.mubr.msk.f32.mxu0 %vm75_vm0, %v3127_v16  ;;  %2724 = vmatpush3.msra.mxu0 %v2371_v24 }
 0x30a   :  { %2725 = vmatprep.subr.mxu0 %v2370_v25 }
 0x30b   :  { %2726 = vmatpush3.msra.mxu0 %v2370_v25 }
 0x30c   :  { %2701 = vmatmul.mubr.msk.f32.gmra.mxu0 %vm75_vm0, %v3133_v17  ;;  %2727 = vmatprep.subr.mxu0 %v2369_v26 }
 0x30d   :  { %2703 = vmatprep.mubr.msk.f32.mxu0 %vm75_vm0, %v3137_v18  ;;  %2728 = vmatpush3.msra.mxu0 %v2369_v26 }
 0x30e   :  { %2729 = vmatprep.subr.mxu0 %v2368_v27 }
 0x30f   :  { %2730 = vmatpush3.msra.mxu0 %v2368_v27 }
 0x310   :  { %2704 = vmatmul.mubr.msk.f32.gmra.mxu0 %vm75_vm0, %v3147_v19 }
 0x311   :  { %2731 = vmatprep.mubr.msk.f32.mxu0 %vm75_vm0, %v3121_v14 }
 0x314   :  { %2732 = vmatmul.mubr.msk.f32.vlgmr.msra.gmra.mxu0 %vm75_vm0, %v3123_v15 }
 0x315   :  { %2734 = vmatprep.mubr.msk.f32.mxu0 %vm75_vm0, %v3127_v16 }
 0x318   :  { %2735 = vmatmul.mubr.msk.f32.gmra.mxu0 %vm75_vm0, %v3133_v17 }
 0x319   :  { %2737 = vmatprep.mubr.msk.f32.mxu0 %vm75_vm0, %v3137_v18 }
 0x31c   :  { %2738 = vmatmul.mubr.msk.f32.gmra.mxu0 %vm75_vm0, %v3147_v19 }
 0x3bc   :  { %v3363_v52 = vpop.f32.mrf.mxu0 }
 0x3be   :  { %v3365_v53 = vpop.f32.mrf.mxu0 }
 0x3c0   :  { %v3367_v54 = vpop.f32.mrf.mxu0 }
 0x3c2   :  { %v3369_v55 = vpop.f32.mrf.mxu0 }
 0x3c4   :  { %v3371_v56 = vpop.f32.mrf.mxu0 }
 0x3c6   :  { %v3373_v59 = vpop.f32.mrf.mxu0 }
 0x3c8   :  { %v2699_v61 = vpop.f32.mrf.mxu0 }
 0x3c9   :  { %v836_v63 = vadd.f32 %v2699_v61, %v2349_v60 }
 0x3ca   :  { %v830_v0 = vpop.f32.mrf.mxu0 }
 0x3cb   :  { %v831_v14 = vadd.f32 %v2349_v60, %v830_v0  ;;  %v860_v4 = vmul.f32 0.25, %v836_v63 }
 0x3cc   :  { %v2702_v2 = vpop.f32.mrf.mxu0 }
 0x3cd   :  { %v859_v3 = vmul.f32 0.25, %v831_v14  ;;  %v846_v6 = vadd.f32 %v2702_v2, %v2349_v60 }
 0x3ce   :  { %v840_v7 = vpop.f32.mrf.mxu0 }
 0x3cf   :  { %v841_v8 = vadd.f32 %v2349_v60, %v840_v7  ;;  %2752 = vmatprep.mubr.msk.f32.mxu1 %vm437_vm1, %v859_v3  ;;  %v862_v12 = vmul.f32 0.25, %v846_v6 }
 0x3d0   :  { %v2705_v10 = vpop.f32.mrf.mxu0  ;;  %2753 = vmatmul.mubr.msk.f32.vlgmr.msra.gmra.mxu1 %vm437_vm1, %v860_v4 }
 0x3d1   :  { %v861_v11 = vmul.f32 0.25, %v841_v8  ;;  %v856_v13 = vadd.f32 %v2705_v10, %v2349_v60 }
 0x3d2   :  { %v850_v20 = vpop.f32.mrf.mxu0 }
 0x3d3   :  { %v851_v21 = vadd.f32 %v2349_v60, %v850_v20  ;;  %2755 = vmatprep.mubr.msk.f32.mxu1 %vm437_vm1, %v861_v11  ;;  %v864_v23 = vmul.f32 0.25, %v856_v13 }
 0x3d4   :  { %2756 = vmatmul.mubr.msk.f32.gmra.mxu1 %vm437_vm1, %v862_v12  ;;  %v2733_v38 = vpop.f32.mrf.mxu0 }
 0x3d5   :  { %v863_v22 = vmul.f32 0.25, %v851_v21  ;;  %v1058_v47 = vadd.f32 %v2733_v38, %v2373_v40 }
 0x3d6   :  { %v1052_v39 = vpop.f32.mrf.mxu0 }
 0x3d7   :  { %2758 = vmatprep.mubr.msk.f32.mxu1 %vm437_vm1, %v863_v22  ;;  %v1053_v48 = vadd.f32 %v2373_v40, %v1052_v39 }
 0x3d8   :  { %2759 = vmatmul.mubr.msk.f32.gmra.mxu1 %vm437_vm1, %v864_v23 }
 0x490   :  { %v2754_v28 = vpop.f32.mrf.mxu1 }
 0x491   :  { %v3407_v29 = vadd.f32 %v2754_v28, %v3215_v58 }
 0x492   :  { %v1183_v30 = vpop.f32.mrf.mxu1 }
 0x493   :  { %v3410_v31 = vadd.f32 %v1183_v30, %v3210_v57  ;;  %v1215_v16 = vsel %vm569_vm2, %v3407_v29, -inf }
 0x494   :  { %1216 = vmax.xlane.f32.xlu1 %v1215_v16  ;;  %v2757_v32 = vpop.f32.mrf.mxu1  ;;  %v750_v16 = vld [vmem:[%s3724_s8 + $0x8] sm:$0xff] }
 0x495   :  { %v3415_v17 = vadd.f32 %v2757_v32, %v3233_v1  ;;  %v1212_v18 = vsel %vm569_vm2, %v3410_v31, -inf  ;;  %v2399_v32 = vld [vmem:[%s3724_s8 + $0x18] sm:$0xff] }
 0x496   :  { %v1193_v19 = vpop.f32.mrf.mxu1  ;;  %1213 = vmax.xlane.f32.xlu0 %v1212_v18 }
 0x497   :  { %v3420_v58 = vadd.f32 %v1193_v19, %v3223_v62  ;;  %v1221_v57 = vsel %vm569_vm2, %v3415_v17, -inf }
 0x498   :  { %1222 = vmax.xlane.f32.xlu1 %v1221_v57  ;;  %v2760_v33 = vpop.f32.mrf.mxu1 }
 0x499   :  { %v3425_v34 = vadd.f32 %v2760_v33, %v3253_v9  ;;  %v1218_v1 = vsel %vm569_vm2, %v3420_v58, -inf  ;;  %v2736_v9 = vpop.f32.mrf.mxu0 }
 0x49a   :  { %v1203_v35 = vpop.f32.mrf.mxu1  ;;  %1219 = vmax.xlane.f32.xlu0 %v1218_v1  ;;  %v1068_v44 = vadd.f32 %v2736_v9, %v2373_v40 }
 0x49b   :  { %v3430_v36 = vadd.f32 %v1203_v35, %v3241_v5  ;;  %v1227_v62 = vsel %vm569_vm2, %v3425_v34, -inf  ;;  %v1062_v41 = vpop.f32.mrf.mxu0 }
 0x49c   :  { %1228 = vmax.xlane.f32.xlu1 %v1227_v62  ;;  %v1063_v46 = vadd.f32 %v2373_v40, %v1062_v41 }
 0x49d   :  { %v1224_v37 = vsel %vm569_vm2, %v3430_v36, -inf  ;;  %v2739_v42 = vpop.f32.mrf.mxu0 }
 0x49e   :  { %1225 = vmax.xlane.f32.xlu0 %v1224_v37  ;;  %v1078_v43 = vadd.f32 %v2739_v42, %v2373_v40  ;;  %v2398_v37 = vld [vmem:[%s3724_s8 + $0x10] sm:$0xff] }
 0x49f   :  { %v1072_v5 = vpop.f32.mrf.mxu0 }
 0x4a0   :  { %v1073_v45 = vadd.f32 %v2373_v40, %v1072_v5  ;;  %2761 = vmatprep.subr.mxu0 %v1078_v43  ;;  %2867 = vmatprep.subr.mxu1 %v1078_v43  ;;  %v749_v5 = vld [vmem:[%s3724_s8] sm:$0xff] }
 0x4a1   :  { %2762 = vmatpush3.msra.mxu0 %v1078_v43  ;;  %2873 = vmatpush3.msra.mxu1 %v1078_v43 }
 0x4a2   :  { %2763 = vmatprep.subr.mxu0 %v1073_v45  ;;  %2868 = vmatprep.subr.mxu1 %v1073_v45 }
 0x4a3   :  { %2764 = vmatpush3.msra.mxu0 %v1073_v45  ;;  %2874 = vmatpush3.msra.mxu1 %v1073_v45 }
 0x4a4   :  { %2765 = vmatprep.subr.mxu0 %v1068_v44  ;;  %2869 = vmatprep.subr.mxu1 %v1068_v44 }
 0x4a5   :  { %2766 = vmatpush3.msra.mxu0 %v1068_v44  ;;  %2875 = vmatpush3.msra.mxu1 %v1068_v44 }
 0x4a6   :  { %2767 = vmatprep.subr.mxu0 %v1063_v46  ;;  %2870 = vmatprep.subr.mxu1 %v1063_v46 }
 0x4a7   :  { %2768 = vmatpush3.msra.mxu0 %v1063_v46  ;;  %2876 = vmatpush3.msra.mxu1 %v1063_v46 }
 0x4a8   :  { %2769 = vmatprep.subr.mxu0 %v1058_v47  ;;  %2871 = vmatprep.subr.mxu1 %v1058_v47 }
 0x4a9   :  { %2770 = vmatpush3.msra.mxu0 %v1058_v47  ;;  %2877 = vmatpush3.msra.mxu1 %v1058_v47 }
 0x4aa   :  { %2771 = vmatprep.subr.mxu0 %v1053_v48  ;;  %2872 = vmatprep.subr.mxu1 %v1053_v48 }
 0x4ab   :  { %2772 = vmatpush3.msra.mxu0 %v1053_v48  ;;  %2878 = vmatpush3.msra.mxu1 %v1053_v48  ;;  %v2412_v48 = vld [vmem:[%s3725_s9] ss:$0 sm:$0xff] }
 0x4ac   :  { %2795 = vmatprep.subr.mxu1 %v750_v16  ;;  %2782 = vmatprep.subr.mxu0 %v2399_v32 }
 0x51d   :  { %v1217_v49 = vpop.xlane.xlu1 %1216 }
 0x51e   :  { %v1231_v50 = vsub.f32 %v3407_v29, %v1217_v49 }
 0x51f   :  { %v1214_v51 = vpop.xlane.xlu0 %1213 }
 0x520   :  { %v1238_v60 = vmul.f32 1.442695, %v1231_v50  ;;  %v1230_v61 = vsub.f32 %v3410_v31, %v1214_v51 }
 0x521   :  { %v1223_v63 = vpop.xlane.xlu1 %1222 }
 0x522   :  { %2903 = vpow2.f32 %v1238_v60  ;;  %v1236_v0 = vmul.f32 1.442695, %v1230_v61  ;;  %v1233_v14 = vsub.f32 %v3415_v17, %v1223_v63 }
 0x523   :  { %v1220_v2 = vpop.xlane.xlu0 %1219 }
 0x524   :  { %2905 = vpow2.f32 %v1236_v0  ;;  %v1242_v3 = vmul.f32 1.442695, %v1233_v14  ;;  %v1232_v4 = vsub.f32 %v3420_v58, %v1220_v2 }
 0x525   :  { %v1229_v6 = vpop.xlane.xlu1 %1228 }
 0x526   :  { %2907 = vpow2.f32 %v1242_v3  ;;  %v1240_v7 = vmul.f32 1.442695, %v1232_v4  ;;  %v1235_v8 = vsub.f32 %v3425_v34, %v1229_v6 }
 0x527   :  { %v1226_v10 = vpop.xlane.xlu0 %1225 }
 0x528   :  { %2909 = vpow2.f32 %v1240_v7  ;;  %v1246_v11 = vmul.f32 1.442695, %v1235_v8  ;;  %v1234_v12 = vsub.f32 %v3430_v36, %v1226_v10  ;;  %v2963_v10 = vld [vmem:[#allocation2] sm:$0xff] }
 0x52a   :  { %2911 = vpow2.f32 %v1246_v11  ;;  %v1244_v13 = vmul.f32 1.442695, %v1234_v12 }
 0x52c   :  { %2913 = vpow2.f32 %v1244_v13 }
 0x52f   :  { %v2904_v20 = vpop.eup %2903 }
 0x530   :  { %v1251_v21 = vsel %vm569_vm2, %v2904_v20, 0.0 }
 0x531   :  { %v2906_v22 = vpop.eup %2905  ;;  %1252 = vadd.xlane.f32.xlu1 %v1251_v21 }
 0x532   :  { %v1248_v23 = vsel %vm569_vm2, %v2906_v22, 0.0 }
 0x533   :  { %v2908_v24 = vpop.eup %2907  ;;  %1249 = vadd.xlane.f32.xlu0 %v1248_v23 }
 0x534   :  { %v1257_v25 = vsel %vm569_vm2, %v2908_v24, 0.0 }
 0x535   :  { %v2910_v26 = vpop.eup %2909  ;;  %1258 = vadd.xlane.f32.xlu1 %v1257_v25 }
 0x536   :  { %v1254_v27 = vsel %vm569_vm2, %v2910_v26, 0.0 }
 0x537   :  { %v2912_v28 = vpop.eup %2911  ;;  %1255 = vadd.xlane.f32.xlu0 %v1254_v27 }
 0x538   :  { %v1263_v29 = vsel %vm569_vm2, %v2912_v28, 0.0 }
 0x539   :  { %v2914_v30 = vpop.eup %2913  ;;  %1264 = vadd.xlane.f32.xlu1 %v1263_v29 }
 0x53a   :  { %v1260_v31 = vsel %vm569_vm2, %v2914_v30, 0.0 }
 0x53b   :  { %1261 = vadd.xlane.f32.xlu0 %v1260_v31 }
 0x5ba   :  { %v1253_v17 = vpop.xlane.xlu1 %1252 }
 0x5bb   :  { %2915 = vrcp.f32 %v1253_v17 }
 0x5bc   :  { %v1250_v18 = vpop.xlane.xlu0 %1249 }
 0x5bd   :  { %2917 = vrcp.f32 %v1250_v18  ;;  %v2967_v18 = vld [vmem:[#allocation2 + $0x20] sm:$0xff] }
 0x5be   :  { %v1259_v19 = vpop.xlane.xlu1 %1258 }
 0x5bf   :  { %2919 = vrcp.f32 %v1259_v19 }
 0x5c0   :  { %v1256_v58 = vpop.xlane.xlu0 %1255 }
 0x5c1   :  { %2921 = vrcp.f32 %v1256_v58 }
 0x5c2   :  { %v1265_v57 = vpop.xlane.xlu1 %1264 }
 0x5c3   :  { %2923 = vrcp.f32 %v1265_v57 }
 0x5c4   :  { %v1262_v33 = vpop.xlane.xlu0 %1261 }
 0x5c5   :  { %2925 = vrcp.f32 %v1262_v33 }
 0x5c8   :  { %v2916_v34 = vpop.eup %2915 }
 0x5c9   :  { %v1269_v36 = vmul.f32 %v2916_v34, %v2904_v20 }
 0x5ca   :  { %v2918_v1 = vpop.eup %2917 }
 0x5cb   :  { %v1267_v35 = vmul.f32 %v2918_v1, %v2906_v22  ;;  %v2964_v22 = vld [vmem:[#allocation2 + $0x18] sm:$0xff] }
 0x5cc   :  { %v2920_v62 = vpop.eup %2919 }
 0x5cd   :  { %2773 = vmatprep.mubr.msk.f32.mxu0 %vm569_vm2, %v1267_v35  ;;  %v1273_v9 = vmul.f32 %v2920_v62, %v2908_v24 }
 0x5ce   :  { %v2922_v38 = vpop.eup %2921  ;;  %2774 = vmatmul.mubr.msk.f32.vlgmr.msra.gmra.mxu0 %vm569_vm2, %v1269_v36 }
 0x5cf   :  { %v1271_v39 = vmul.f32 %v2922_v38, %v2910_v26  ;;  %2783 = vmatpush3.msra.mxu0 %v2399_v32 }
 0x5d0   :  { %2784 = vmatprep.subr.mxu0 %v2398_v37  ;;  %v2924_v40 = vpop.eup %2923 }
 0x5d1   :  { %2776 = vmatprep.mubr.msk.f32.mxu0 %vm569_vm2, %v1271_v39  ;;  %2785 = vmatpush3.msra.mxu0 %v2398_v37  ;;  %v1277_v43 = vmul.f32 %v2924_v40, %v2912_v28  ;;  %v2965_v28 = vld [vmem:[#allocation2 + $0x10] sm:$0xff] }
 0x5d2   :  { %v2926_v41 = vpop.eup %2925  ;;  %2777 = vmatmul.mubr.msk.f32.gmra.mxu0 %vm569_vm2, %v1273_v9 }
 0x5d3   :  { %v1275_v42 = vmul.f32 %v2926_v41, %v2914_v30 }
 0x5d5   :  { %2779 = vmatprep.mubr.msk.f32.mxu1 %vm569_vm2, %v1275_v42 }
 0x5d6   :  { %2780 = vmatmul.mubr.msk.f32.vlgmr.msra.gmra.mxu1 %vm569_vm2, %v1277_v43 }
 0x5d7   :  { %2796 = vmatpush3.msra.mxu1 %v750_v16  ;;  %2799 = vmatprep.mubr.msk.f32.mxu1 %vm437_vm1, %v3365_v53  ;;  %v2966_v16 = vld [vmem:[#allocation2 + $0x28] sm:$0xff] }
 0x5d8   :  { %2797 = vmatprep.subr.mxu1 %v749_v5 }
 0x5d9   :  { %2798 = vmatpush3.msra.mxu1 %v749_v5 }
 0x5da   :  { %2800 = vmatmul.mubr.msk.f32.vlgmr.msra.gmra.mxu1 %vm437_vm1, %v3363_v52 }
 0x5db   :  { %2802 = vmatprep.mubr.msk.f32.mxu1 %vm437_vm1, %v3369_v55 }
 0x5de   :  { %2803 = vmatmul.mubr.msk.f32.gmra.mxu1 %vm437_vm1, %v3367_v54 }
 0x5df   :  { %2805 = vmatprep.mubr.msk.f32.mxu1 %vm437_vm1, %v3373_v59 }
 0x5e2   :  { %2806 = vmatmul.mubr.msk.f32.gmra.mxu1 %vm437_vm1, %v3371_v56 }
 0x68e   :  { %v2775_v44 = vpop.f32.mrf.mxu0 }
 0x690   :  { %v1362_v45 = vpop.f32.mrf.mxu0 }
 0x691   :  { %2786 = vmatprep.mubr.msk.f32.mxu0 %vm437_vm1, %v1362_v45 }
 0x692   :  { %v2778_v53 = vpop.f32.mrf.mxu0  ;;  %2787 = vmatmul.mubr.msk.f32.vlgmr.msra.gmra.mxu0 %vm437_vm1, %v2775_v44 }
 0x694   :  { %v1372_v52 = vpop.f32.mrf.mxu0 }
 0x695   :  { %2789 = vmatprep.mubr.msk.f32.mxu0 %vm437_vm1, %v1372_v52 }
 0x696   :  { %v2781_v55 = vpop.f32.mrf.mxu1  ;;  %2790 = vmatmul.mubr.msk.f32.gmra.mxu0 %vm437_vm1, %v2778_v53 }
 0x698   :  { %v1382_v54 = vpop.f32.mrf.mxu1 }
 0x699   :  { %2792 = vmatprep.mubr.msk.f32.mxu0 %vm437_vm1, %v1382_v54 }
 0x69a   :  { %2793 = vmatmul.mubr.msk.f32.gmra.mxu0 %vm437_vm1, %v2781_v55  ;;  %v2801_v59 = vpop.f32.mrf.mxu1 }
 0x69c   :  { %v1591_v56 = vpop.f32.mrf.mxu1 }
 0x69e   :  { %v2804_v46 = vpop.f32.mrf.mxu1 }
 0x6a0   :  { %v1601_v50 = vpop.f32.mrf.mxu1 }
 0x6a2   :  { %v2807_v3 = vpop.f32.mrf.mxu1 }
 0x6a4   :  { %v1611_v24 = vpop.f32.mrf.mxu1 }
 0x752   :  { %v2788_v47 = vpop.f32.mrf.mxu0 }
 0x753   :  { %v1597_v49 = vadd.f32 %v2801_v59, %v2788_v47 }
 0x754   :  { %v1478_v51 = vpop.f32.mrf.mxu0 }
 0x755   :  { %v1628_v60 = vadd.f32 %v2412_v48, %v1597_v49  ;;  %v1592_v61 = vadd.f32 %v1591_v56, %v1478_v51 }
 0x756   :  { %v2791_v63 = vpop.f32.mrf.mxu0 }
 0x757   :  { %v1627_v0 = vadd.f32 %v2412_v48, %v1592_v61  ;;  %v1607_v14 = vadd.f32 %v2804_v46, %v2791_v63  ;;  %v1634_v2 = vadd.f32 %v1628_v60, %v3123_v15  ;;  %v1747_v60 = vld [vmem:[%s3726_s12 + $0x18] sm:$0xff]  ;;  %v1746_v61 = vld [vmem:[%s3726_s12 + $0x10] sm:$0xff]  ;;  %v1745_v63 = vld [vmem:[%s3726_s12 + $0x8] sm:$0xff] }
 0x758   :  { %v1488_v4 = vpop.f32.mrf.mxu0  ;;  %2808 = vmatprep.subr.mxu0 %v1747_v60 }
 0x759   :  { %v1630_v6 = vadd.f32 %v2412_v48, %v1607_v14  ;;  %v1602_v7 = vadd.f32 %v1601_v50, %v1488_v4  ;;  %v1644_v8 = vsel %vm75_vm0, %v1634_v2, 0.0  ;;  %v1633_v11 = vadd.f32 %v2963_v10, %v1627_v0  ;;  %2809 = vmatpush3.msra.mxu0 %v1747_v60  ;;  %v1744_v0 = vld [vmem:[%s3726_s12] sm:$0xff] }
 0x75a   :  { %1645 = vadd.xlane.f32.xlu1 %v1644_v8  ;;  %v2794_v12 = vpop.f32.mrf.mxu0  ;;  %2810 = vmatprep.subr.mxu0 %v1746_v61 }
 0x75b   :  { %v1629_v13 = vadd.f32 %v2412_v48, %v1602_v7  ;;  %v1617_v20 = vadd.f32 %v2807_v3, %v2794_v12  ;;  %v1641_v21 = vsel %vm75_vm0, %v1633_v11, 0.0  ;;  %v1636_v23 = vadd.f32 %v2964_v22, %v1630_v6  ;;  %2811 = vmatpush3.msra.mxu0 %v1746_v61 }
 0x75c   :  { %1642 = vadd.xlane.f32.xlu0 %v1641_v21  ;;  %v1498_v25 = vpop.f32.mrf.mxu0  ;;  %2812 = vmatprep.subr.mxu0 %v1745_v63 }
 0x75d   :  { %v1632_v15 = vadd.f32 %v2412_v48, %v1617_v20  ;;  %v1612_v26 = vadd.f32 %v1611_v24, %v1498_v25  ;;  %v1650_v27 = vsel %vm75_vm0, %v1636_v23, 0.0  ;;  %v1635_v29 = vadd.f32 %v2965_v28, %v1629_v13  ;;  %2813 = vmatpush3.msra.mxu0 %v1745_v63 }
 0x75e   :  { %1651 = vadd.xlane.f32.xlu1 %v1650_v27  ;;  %2814 = vmatprep.subr.mxu0 %v1744_v0  ;;  %v2413_v27 = vld [vmem:[%s3727_s10] ss:$0 sm:$0xff] }
 0x75f   :  { %v1631_v30 = vadd.f32 %v2412_v48, %v1612_v26  ;;  %v1647_v31 = vsel %vm75_vm0, %v1635_v29, 0.0  ;;  %v1638_v32 = vadd.f32 %v2966_v16, %v1632_v15  ;;  %2815 = vmatpush3.msra.mxu0 %v1744_v0 }
 0x760   :  { %1648 = vadd.xlane.f32.xlu0 %v1647_v31 }
 0x761   :  { %v1656_v17 = vsel %vm75_vm0, %v1638_v32, 0.0  ;;  %v1637_v19 = vadd.f32 %v2967_v18, %v1631_v30 }
 0x762   :  { %1657 = vadd.xlane.f32.xlu1 %v1656_v17 }
 0x763   :  { %v1653_v58 = vsel %vm75_vm0, %v1637_v19, 0.0 }
 0x764   :  { %1654 = vadd.xlane.f32.xlu0 %v1653_v58 }
 0x7e3   :  { %v1646_v57 = vpop.xlane.xlu1 %1645 }
 0x7e4   :  { %v1661_v33 = vmul.f32 0.03125, %v1646_v57 }
 0x7e5   :  { %v1643_v34 = vpop.xlane.xlu0 %1642 }
 0x7e6   :  { %v3497_v1 = vsub.f32 %v1634_v2, %v1661_v33  ;;  %v1660_v35 = vmul.f32 0.03125, %v1643_v34 }
 0x7e7   :  { %v1652_v36 = vpop.xlane.xlu1 %1651 }
 0x7e8   :  { %v3499_v62 = vsub.f32 %v1633_v11, %v1660_v35  ;;  %v1663_v37 = vmul.f32 0.03125, %v1652_v36  ;;  %v1673_v38 = vmul.f32 %v3497_v1, %v3497_v1 }
 0x7e9   :  { %v1649_v39 = vpop.xlane.xlu0 %1648 }
 0x7ea   :  { %v3503_v9 = vsub.f32 %v1636_v23, %v1663_v37  ;;  %v1662_v40 = vmul.f32 0.03125, %v1649_v39  ;;  %v1681_v41 = vsel %vm75_vm0, %v1673_v38, 0.0  ;;  %v1672_v42 = vmul.f32 %v3499_v62, %v3499_v62 }
 0x7eb   :  { %1682 = vadd.xlane.f32.xlu1 %v1681_v41  ;;  %v1658_v43 = vpop.xlane.xlu1 %1657 }
 0x7ec   :  { %v3508_v5 = vsub.f32 %v1635_v29, %v1662_v40  ;;  %v1665_v44 = vmul.f32 0.03125, %v1658_v43  ;;  %v1678_v45 = vsel %vm75_vm0, %v1672_v42, 0.0  ;;  %v1675_v53 = vmul.f32 %v3503_v9, %v3503_v9  ;;  %v1929_v43 = vld [vmem:[%s3729_s14 + $0x38] sm:$0xff] }
 0x7ed   :  { %1679 = vadd.xlane.f32.xlu0 %v1678_v45  ;;  %v1655_v52 = vpop.xlane.xlu0 %1654  ;;  %2825 = vmatprep.subr.mxu1 %v1929_v43  ;;  %v1926_v45 = vld [vmem:[%s3729_s14 + $0x20] sm:$0xff] }
 0x7ee   :  { %v3513_v55 = vsub.f32 %v1638_v32, %v1665_v44  ;;  %v1664_v54 = vmul.f32 0.03125, %v1655_v52  ;;  %v1687_v59 = vsel %vm75_vm0, %v1675_v53, 0.0  ;;  %v1674_v56 = vmul.f32 %v3508_v5, %v3508_v5  ;;  %v2414_v32 = vld [vmem:[%s3728_s11] ss:$0 sm:$0xff]  ;;  %2826 = vmatpush3.msra.mxu1 %v1929_v43  ;;  %v1927_v44 = vld [vmem:[%s3729_s14 + $0x28] sm:$0xff]  ;;  %v1925_v53 = vld [vmem:[%s3729_s14 + $0x18] sm:$0xff] }
 0x7ef   :  { %1688 = vadd.xlane.f32.xlu1 %v1687_v59  ;;  %v1924_v52 = vld [vmem:[%s3729_s14 + $0x10] sm:$0xff]  ;;  %v2415_v59 = vld [vmem:[%s3730_s13] ss:$0 sm:$0xff] }
 0x7f0   :  { %v3518_v46 = vsub.f32 %v1637_v19, %v1664_v54  ;;  %v1684_v47 = vsel %vm75_vm0, %v1674_v56, 0.0  ;;  %v1677_v48 = vmul.f32 %v3513_v55, %v3513_v55  ;;  %v1922_v54 = vld [vmem:[%s3729_s14] sm:$0xff] }
 0x7f1   :  { %1685 = vadd.xlane.f32.xlu0 %v1684_v47 }
 0x7f2   :  { %v1693_v49 = vsel %vm75_vm0, %v1677_v48, 0.0  ;;  %v1676_v50 = vmul.f32 %v3518_v46, %v3518_v46 }
 0x7f3   :  { %1694 = vadd.xlane.f32.xlu1 %v1693_v49 }
 0x7f4   :  { %v1690_v51 = vsel %vm75_vm0, %v1676_v50, 0.0 }
 0x7f5   :  { %1691 = vadd.xlane.f32.xlu0 %v1690_v51 }
 0x874   :  { %v1683_v14 = vpop.xlane.xlu1 %1682 }
 0x875   :  { %v1697_v2 = vmul.f32 0.03125, %v1683_v14 }
 0x876   :  { %v1680_v3 = vpop.xlane.xlu0 %1679 }
 0x877   :  { %v1703_v4 = vadd.f32 1e-12, %v1697_v2  ;;  %v1696_v6 = vmul.f32 0.03125, %v1680_v3 }
 0x878   :  { %v1689_v7 = vpop.xlane.xlu1 %1688 }
 0x879   :  { %2927 = vrsqrt.f32 %v1703_v4  ;;  %v1702_v8 = vadd.f32 1e-12, %v1696_v6  ;;  %v1699_v10 = vmul.f32 0.03125, %v1689_v7 }
 0x87a   :  { %v1686_v11 = vpop.xlane.xlu0 %1685 }
 0x87b   :  { %2929 = vrsqrt.f32 %v1702_v8  ;;  %v1705_v12 = vadd.f32 1e-12, %v1699_v10  ;;  %v1698_v13 = vmul.f32 0.03125, %v1686_v11 }
 0x87c   :  { %v1695_v20 = vpop.xlane.xlu1 %1694 }
 0x87d   :  { %2931 = vrsqrt.f32 %v1705_v12  ;;  %v1704_v21 = vadd.f32 1e-12, %v1698_v13  ;;  %v1701_v22 = vmul.f32 0.03125, %v1695_v20 }
 0x87e   :  { %v1692_v23 = vpop.xlane.xlu0 %1691 }
 0x87f   :  { %2933 = vrsqrt.f32 %v1704_v21  ;;  %v1707_v24 = vadd.f32 1e-12, %v1701_v22  ;;  %v1700_v25 = vmul.f32 0.03125, %v1692_v23 }
 0x881   :  { %2935 = vrsqrt.f32 %v1707_v24  ;;  %v1706_v15 = vadd.f32 1e-12, %v1700_v25 }
 0x883   :  { %2937 = vrsqrt.f32 %v1706_v15 }
 0x886   :  { %v2928_v26 = vpop.eup %2927 }
 0x887   :  { %v1715_v28 = vmul.f32 %v2928_v26, %v3497_v1 }
 0x888   :  { %v2930_v29 = vpop.eup %2929 }
 0x889   :  { %v1714_v30 = vmul.f32 %v2930_v29, %v3499_v62  ;;  %v1727_v16 = vmul.f32 %v2413_v27, %v1715_v28 }
 0x88a   :  { %v2932_v31 = vpop.eup %2931 }
 0x88b   :  { %v1726_v17 = vmul.f32 %v2413_v27, %v1714_v30  ;;  %v1717_v18 = vmul.f32 %v2932_v31, %v3503_v9  ;;  %v3551_v34 = vadd.f32 %v2414_v32, %v1727_v16 }
 0x88c   :  { %v2934_v19 = vpop.eup %2933 }
 0x88d   :  { %v3548_v58 = vadd.f32 %v2414_v32, %v1726_v17  ;;  %v1716_v57 = vmul.f32 %v2934_v19, %v3508_v5  ;;  %v1729_v1 = vmul.f32 %v2413_v27, %v1717_v18  ;;  %v1928_v5 = vld [vmem:[%s3729_s14 + $0x30] sm:$0xff] }
 0x88e   :  { %v2936_v33 = vpop.eup %2935  ;;  %2827 = vmatprep.subr.mxu1 %v1928_v5 }
 0x88f   :  { %2816 = vmatprep.mubr.msk.f32.mxu0 %vm75_vm0, %v3548_v58  ;;  %v1728_v35 = vmul.f32 %v2413_v27, %v1716_v57  ;;  %v1719_v36 = vmul.f32 %v2936_v33, %v3513_v55  ;;  %v3561_v39 = vadd.f32 %v2414_v32, %v1729_v1  ;;  %2828 = vmatpush3.msra.mxu1 %v1928_v5  ;;  %v1923_v55 = vld [vmem:[%s3729_s14 + $0x8] sm:$0xff] }
 0x890   :  { %v2938_v62 = vpop.eup %2937  ;;  %2817 = vmatmul.mubr.msk.f32.vlgmr.msra.gmra.mxu0 %vm75_vm0, %v3551_v34  ;;  %2829 = vmatprep.subr.mxu1 %v1927_v44 }
 0x891   :  { %v3558_v37 = vadd.f32 %v2414_v32, %v1728_v35  ;;  %v1718_v38 = vmul.f32 %v2938_v62, %v3518_v46  ;;  %v1731_v9 = vmul.f32 %v2413_v27, %v1719_v36  ;;  %2830 = vmatpush3.msra.mxu1 %v1927_v44 }
 0x892   :  { %2831 = vmatprep.subr.mxu1 %v1926_v45 }
 0x893   :  { %2819 = vmatprep.mubr.msk.f32.mxu0 %vm75_vm0, %v3558_v37  ;;  %v1730_v40 = vmul.f32 %v2413_v27, %v1718_v38  ;;  %v3569_v42 = vadd.f32 %v2414_v32, %v1731_v9  ;;  %2832 = vmatpush3.msra.mxu1 %v1926_v45 }
 0x894   :  { %2820 = vmatmul.mubr.msk.f32.gmra.mxu0 %vm75_vm0, %v3561_v39  ;;  %2833 = vmatprep.subr.mxu1 %v1925_v53 }
 0x895   :  { %v3567_v41 = vadd.f32 %v2414_v32, %v1730_v40  ;;  %2834 = vmatpush3.msra.mxu1 %v1925_v53 }
 0x896   :  { %2835 = vmatprep.subr.mxu1 %v1924_v52 }
 0x897   :  { %2822 = vmatprep.mubr.msk.f32.mxu0 %vm75_vm0, %v3567_v41  ;;  %2836 = vmatpush3.msra.mxu1 %v1924_v52 }
 0x898   :  { %2823 = vmatmul.mubr.msk.f32.gmra.mxu0 %vm75_vm0, %v3569_v42  ;;  %2837 = vmatprep.subr.mxu1 %v1923_v55 }
 0x899   :  { %2838 = vmatpush3.msra.mxu1 %v1923_v55 }
 0x89a   :  { %2839 = vmatprep.subr.mxu1 %v1922_v54 }
 0x89b   :  { %2840 = vmatpush3.msra.mxu1 %v1922_v54 }
 0x950   :  { %v2818_v56 = vpop.f32.mrf.mxu0 }
 0x951   :  { %v1845_v46 = vadd.f32 %v2818_v56, %v2415_v59 }
 0x952   :  { %v1839_v47 = vpop.f32.mrf.mxu0 }
 0x953   :  { %v1869_v48 = vmul.f32 %v1845_v46, %v1845_v46  ;;  %v1840_v49 = vadd.f32 %v2415_v59, %v1839_v47 }
 0x954   :  { %v2821_v50 = vpop.f32.mrf.mxu0 }
 0x955   :  { %v1875_v51 = vmul.f32 %v1869_v48, %v1845_v46  ;;  %v1868_v60 = vmul.f32 %v1840_v49, %v1840_v49  ;;  %v1855_v61 = vadd.f32 %v2821_v50, %v2415_v59 }
 0x956   :  { %v1849_v63 = vpop.f32.mrf.mxu0 }
 0x957   :  { %v1881_v0 = vmul.f32 0.044715, %v1875_v51  ;;  %v1874_v14 = vmul.f32 %v1868_v60, %v1840_v49  ;;  %v1871_v2 = vmul.f32 %v1855_v61, %v1855_v61  ;;  %v1850_v3 = vadd.f32 %v2415_v59, %v1849_v63  ;;  %v2422_v63 = vld [vmem:[%s3731_s15] ss:$0 sm:$0xff] }
 0x958   :  { %v2824_v4 = vpop.f32.mrf.mxu0 }
 0x959   :  { %v1887_v6 = vadd.f32 %v1881_v0, %v1845_v46  ;;  %v1880_v7 = vmul.f32 0.044715, %v1874_v14  ;;  %v1877_v8 = vmul.f32 %v1871_v2, %v1855_v61  ;;  %v1870_v10 = vmul.f32 %v1850_v3, %v1850_v3 }
 0x95a   :  { %v1865_v11 = vadd.f32 %v2824_v4, %v2415_v59  ;;  %v1859_v12 = vpop.f32.mrf.mxu0 }
 0x95b   :  { %v1893_v13 = vmul.f32 0.7978846, %v1887_v6  ;;  %v1886_v20 = vadd.f32 %v1880_v7, %v1840_v49  ;;  %v1883_v21 = vmul.f32 0.044715, %v1877_v8  ;;  %v1876_v22 = vmul.f32 %v1870_v10, %v1850_v3 }
 0x95c   :  { %v1873_v23 = vmul.f32 %v1865_v11, %v1865_v11  ;;  %v1860_v24 = vadd.f32 %v2415_v59, %v1859_v12 }
 0x95d   :  { %2939 = vtanh.f32 %v1893_v13  ;;  %v1892_v25 = vmul.f32 0.7978846, %v1886_v20  ;;  %v1889_v15 = vadd.f32 %v1883_v21, %v1855_v61  ;;  %v1882_v26 = vmul.f32 0.044715, %v1876_v22 }
 0x95e   :  { %v1879_v27 = vmul.f32 %v1873_v23, %v1865_v11  ;;  %v1872_v28 = vmul.f32 %v1860_v24, %v1860_v24 }
 0x95f   :  { %2941 = vtanh.f32 %v1892_v25  ;;  %v1895_v29 = vmul.f32 0.7978846, %v1889_v15  ;;  %v1888_v30 = vadd.f32 %v1882_v26, %v1850_v3 }
 0x960   :  { %v1885_v31 = vmul.f32 0.044715, %v1879_v27  ;;  %v1878_v16 = vmul.f32 %v1872_v28, %v1860_v24 }
 0x961   :  { %2943 = vtanh.f32 %v1895_v29  ;;  %v1894_v32 = vmul.f32 0.7978846, %v1888_v30 }
 0x962   :  { %v1891_v17 = vadd.f32 %v1885_v31, %v1865_v11  ;;  %v1884_v18 = vmul.f32 0.044715, %v1878_v16 }
 0x963   :  { %2945 = vtanh.f32 %v1894_v32 }
 0x964   :  { %v1897_v19 = vmul.f32 0.7978846, %v1891_v17  ;;  %v1890_v57 = vadd.f32 %v1884_v18, %v1860_v24 }
 0x966   :  { %2947 = vtanh.f32 %v1897_v19  ;;  %v1896_v33 = vmul.f32 0.7978846, %v1890_v57 }
 0x968   :  { %2949 = vtanh.f32 %v1896_v33 }
 0x96a   :  { %v2940_v1 = vpop.eup %2939 }
 0x96b   :  { %v1905_v35 = vadd.f32 1.0, %v2940_v1 }
 0x96c   :  { %v2942_v36 = vpop.eup %2941 }
 0x96d   :  { %v1904_v62 = vadd.f32 1.0, %v2942_v36  ;;  %v1911_v9 = vmul.f32 0.5, %v1905_v35 }
 0x96e   :  { %v2944_v38 = vpop.eup %2943 }
 0x96f   :  { %v1910_v40 = vmul.f32 0.5, %v1904_v62  ;;  %v1907_v43 = vadd.f32 1.0, %v2944_v38  ;;  %v1917_v53 = vmul.f32 %v1911_v9, %v1845_v46 }
 0x970   :  { %v2946_v5 = vpop.eup %2945 }
 0x971   :  { %v1916_v44 = vmul.f32 %v1910_v40, %v1840_v49  ;;  %v1906_v45 = vadd.f32 1.0, %v2946_v5  ;;  %v1913_v52 = vmul.f32 0.5, %v1907_v43 }
 0x973   :  { %v2948_v55 = vpop.eup %2947  ;;  %2841 = vmatprep.mubr.msk.f32.mxu1 %vm1937_vm3, %v1916_v44  ;;  %v1912_v54 = vmul.f32 0.5, %v1906_v45  ;;  %v1919_v48 = vmul.f32 %v1913_v52, %v1855_v61 }
 0x974   :  { %2842 = vmatmul.mubr.msk.f32.vlgmr.msra.gmra.mxu1 %vm1937_vm3, %v1917_v53  ;;  %v1909_v59 = vadd.f32 1.0, %v2948_v55 }
 0x975   :  { %v2950_v56 = vpop.eup %2949  ;;  %v1918_v47 = vmul.f32 %v1912_v54, %v1850_v3 }
 0x976   :  { %v1908_v50 = vadd.f32 1.0, %v2950_v56  ;;  %v1915_v51 = vmul.f32 0.5, %v1909_v59  ;;  %v2173_v59 = vld [vmem:[%s3732_s18 + $0x18] sm:$0xff]  ;;  %v2172_v56 = vld [vmem:[%s3732_s18 + $0x10] sm:$0xff] }
 0x977   :  { %2844 = vmatprep.mubr.msk.f32.mxu1 %vm1937_vm3, %v1918_v47  ;;  %2850 = vmatprep.subr.mxu0 %v2173_v59  ;;  %v2171_v47 = vld [vmem:[%s3732_s18 + $0x8] sm:$0xff] }
 0x978   :  { %2845 = vmatmul.mubr.msk.f32.gmra.mxu1 %vm1937_vm3, %v1919_v48  ;;  %v1914_v49 = vmul.f32 0.5, %v1908_v50  ;;  %v1921_v46 = vmul.f32 %v1915_v51, %v1865_v11  ;;  %2851 = vmatpush3.msra.mxu0 %v2173_v59  ;;  %v2170_v48 = vld [vmem:[%s3732_s18] sm:$0xff] }
 0x979   :  { %2852 = vmatprep.subr.mxu0 %v2172_v56 }
 0x97a   :  { %v1920_v60 = vmul.f32 %v1914_v49, %v1860_v24  ;;  %2853 = vmatpush3.msra.mxu0 %v2172_v56 }
 0x97b   :  { %2854 = vmatprep.subr.mxu0 %v2171_v47 }
 0x97c   :  { %2847 = vmatprep.mubr.msk.f32.mxu1 %vm1937_vm3, %v1920_v60  ;;  %2855 = vmatpush3.msra.mxu0 %v2171_v47 }
 0x97d   :  { %2848 = vmatmul.mubr.msk.f32.gmra.mxu1 %vm1937_vm3, %v1921_v46  ;;  %2856 = vmatprep.subr.mxu0 %v2170_v48 }
 0x97e   :  { %2857 = vmatpush3.msra.mxu0 %v2170_v48 }
 0xa34   :  { %v2843_v0 = vpop.f32.mrf.mxu1 }
 0xa35   :  { %v2028_v14 = vadd.f32 %v2843_v0, %v2422_v63 }
 0xa36   :  { %v2022_v61 = vpop.f32.mrf.mxu1 }
 0xa37   :  { %v2023_v2 = vadd.f32 %v2422_v63, %v2022_v61  ;;  %v2052_v3 = vadd.f32 %v2028_v14, %v3551_v34 }
 0xa38   :  { %v2846_v4 = vpop.f32.mrf.mxu1 }
 0xa39   :  { %v2038_v6 = vadd.f32 %v2846_v4, %v2422_v63  ;;  %v2062_v7 = vsel %vm75_vm0, %v2052_v3, 0.0  ;;  %v2051_v8 = vadd.f32 %v2023_v2, %v3548_v58 }
 0xa3a   :  { %2063 = vadd.xlane.f32.xlu1 %v2062_v7  ;;  %v2032_v10 = vpop.f32.mrf.mxu1 }
 0xa3b   :  { %v2033_v11 = vadd.f32 %v2422_v63, %v2032_v10  ;;  %v2059_v12 = vsel %vm75_vm0, %v2051_v8, 0.0  ;;  %v2054_v13 = vadd.f32 %v2038_v6, %v3561_v39 }
 0xa3c   :  { %2060 = vadd.xlane.f32.xlu0 %v2059_v12 }
 0xa3d   :  { %v2849_v20 = vpop.f32.mrf.mxu1  ;;  %v2068_v21 = vsel %vm75_vm0, %v2054_v13, 0.0  ;;  %v2053_v22 = vadd.f32 %v2033_v11, %v3558_v37 }
 0xa3e   :  { %v2048_v34 = vadd.f32 %v2849_v20, %v2422_v63  ;;  %2069 = vadd.xlane.f32.xlu1 %v2068_v21  ;;  %v2429_v20 = vld [vmem:[%s3733_s16] ss:$0 sm:$0xff] }
 0xa3f   :  { %v2042_v23 = vpop.f32.mrf.mxu1  ;;  %v2065_v24 = vsel %vm75_vm0, %v2053_v22, 0.0 }
 0xa40   :  { %v2043_v25 = vadd.f32 %v2422_v63, %v2042_v23  ;;  %2066 = vadd.xlane.f32.xlu0 %v2065_v24  ;;  %v2056_v58 = vadd.f32 %v2048_v34, %v3569_v42  ;;  %v2430_v34 = vld [vmem:[%s3734_s17] ss:$0 sm:$0xff] }
 0xa42   :  { %v2074_v15 = vsel %vm75_vm0, %v2056_v58, 0.0  ;;  %v2055_v26 = vadd.f32 %v2043_v25, %v3567_v41 }
 0xa43   :  { %2075 = vadd.xlane.f32.xlu1 %v2074_v15 }
 0xa44   :  { %v2071_v39 = vsel %vm75_vm0, %v2055_v26, 0.0 }
 0xa45   :  { %2072 = vadd.xlane.f32.xlu0 %v2071_v39 }
 0xac3   :  { %v2064_v27 = vpop.xlane.xlu1 %2063 }
 0xac4   :  { %v2078_v28 = vmul.f32 0.03125, %v2064_v27 }
 0xac5   :  { %v2061_v37 = vpop.xlane.xlu0 %2060 }
 0xac6   :  { %v3623_v29 = vsub.f32 %v2052_v3, %v2078_v28  ;;  %v2077_v30 = vmul.f32 0.03125, %v2061_v37 }
 0xac7   :  { %v2070_v31 = vpop.xlane.xlu1 %2069 }
 0xac8   :  { %v3625_v16 = vsub.f32 %v2051_v8, %v2077_v30  ;;  %v2080_v32 = vmul.f32 0.03125, %v2070_v31  ;;  %v2090_v42 = vmul.f32 %v3623_v29, %v3623_v29 }
 0xac9   :  { %v2067_v17 = vpop.xlane.xlu0 %2066 }
 0xaca   :  { %v3629_v18 = vsub.f32 %v2054_v13, %v2080_v32  ;;  %v2079_v41 = vmul.f32 0.03125, %v2067_v17  ;;  %v2098_v19 = vsel %vm75_vm0, %v2090_v42, 0.0  ;;  %v2089_v57 = vmul.f32 %v3625_v16, %v3625_v16 }
 0xacb   :  { %2099 = vadd.xlane.f32.xlu1 %v2098_v19 }
 0xacc   :  { %v3634_v33 = vsub.f32 %v2053_v22, %v2079_v41  ;;  %v2076_v1 = vpop.xlane.xlu1 %2075  ;;  %v2095_v35 = vsel %vm75_vm0, %v2089_v57, 0.0  ;;  %v2092_v36 = vmul.f32 %v3629_v18, %v3629_v18 }
 0xacd   :  { %v2082_v62 = vmul.f32 0.03125, %v2076_v1  ;;  %2096 = vadd.xlane.f32.xlu0 %v2095_v35 }
 0xace   :  { %v2073_v38 = vpop.xlane.xlu0 %2072  ;;  %v2104_v9 = vsel %vm75_vm0, %v2092_v36, 0.0  ;;  %v2091_v40 = vmul.f32 %v3634_v33, %v3634_v33 }
 0xacf   :  { %v3642_v43 = vsub.f32 %v2056_v58, %v2082_v62  ;;  %v2081_v5 = vmul.f32 0.03125, %v2073_v38  ;;  %2105 = vadd.xlane.f32.xlu1 %v2104_v9 }
 0xad0   :  { %v2101_v44 = vsel %vm75_vm0, %v2091_v40, 0.0 }
 0xad1   :  { %v3645_v45 = vsub.f32 %v2055_v26, %v2081_v5  ;;  %2102 = vadd.xlane.f32.xlu0 %v2101_v44  ;;  %v2094_v53 = vmul.f32 %v3642_v43, %v3642_v43 }
 0xad3   :  { %v2110_v52 = vsel %vm75_vm0, %v2094_v53, 0.0  ;;  %v2093_v55 = vmul.f32 %v3645_v45, %v3645_v45 }
 0xad4   :  { %2111 = vadd.xlane.f32.xlu1 %v2110_v52 }
 0xad5   :  { %v2107_v54 = vsel %vm75_vm0, %v2093_v55, 0.0 }
 0xad6   :  { %2108 = vadd.xlane.f32.xlu0 %v2107_v54 }
 0xb54   :  { %v2100_v50 = vpop.xlane.xlu1 %2099 }
 0xb55   :  { %v2114_v51 = vmul.f32 0.03125, %v2100_v50 }
 0xb56   :  { %v2097_v49 = vpop.xlane.xlu0 %2096 }
 0xb57   :  { %v2120_v60 = vadd.f32 1e-12, %v2114_v51  ;;  %v2113_v46 = vmul.f32 0.03125, %v2097_v49 }
 0xb58   :  { %v2106_v63 = vpop.xlane.xlu1 %2105 }
 0xb59   :  { %2951 = vrsqrt.f32 %v2120_v60  ;;  %v2119_v0 = vadd.f32 1e-12, %v2113_v46  ;;  %v2116_v14 = vmul.f32 0.03125, %v2106_v63 }
 0xb5a   :  { %v2103_v61 = vpop.xlane.xlu0 %2102 }
 0xb5b   :  { %2953 = vrsqrt.f32 %v2119_v0  ;;  %v2122_v2 = vadd.f32 1e-12, %v2116_v14  ;;  %v2115_v3 = vmul.f32 0.03125, %v2103_v61 }
 0xb5d   :  { %2955 = vrsqrt.f32 %v2122_v2  ;;  %v2121_v4 = vadd.f32 1e-12, %v2115_v3  ;;  %v2112_v6 = vpop.xlane.xlu1 %2111 }
 0xb5e   :  { %v2118_v7 = vmul.f32 0.03125, %v2112_v6 }
 0xb5f   :  { %2957 = vrsqrt.f32 %v2121_v4  ;;  %v2109_v8 = vpop.xlane.xlu0 %2108 }
 0xb60   :  { %v2124_v10 = vadd.f32 1e-12, %v2118_v7  ;;  %v2117_v11 = vmul.f32 0.03125, %v2109_v8 }
 0xb62   :  { %2959 = vrsqrt.f32 %v2124_v10  ;;  %v2123_v12 = vadd.f32 1e-12, %v2117_v11 }
 0xb64   :  { %2961 = vrsqrt.f32 %v2123_v12 }
 0xb66   :  { %v2952_v13 = vpop.eup %2951 }
 0xb67   :  { %v2132_v21 = vmul.f32 %v2952_v13, %v3623_v29 }
 0xb68   :  { %v2954_v22 = vpop.eup %2953 }
 0xb69   :  { %v2144_v23 = vmul.f32 %v2429_v20, %v2132_v21  ;;  %v2131_v24 = vmul.f32 %v2954_v22, %v3625_v16 }
 0xb6a   :  { %v2956_v25 = vpop.eup %2955 }
 0xb6b   :  { %v2143_v58 = vmul.f32 %v2429_v20, %v2131_v24  ;;  %v2156_v15 = vadd.f32 %v2430_v34, %v2144_v23  ;;  %v2134_v26 = vmul.f32 %v2956_v25, %v3629_v18 }
 0xb6c   :  { %v2958_v39 = vpop.eup %2957 }
 0xb6d   :  { %v2155_v27 = vadd.f32 %v2430_v34, %v2143_v58  ;;  %2162 = vst.msk [vmem:[#allocation2 + $0x8] sm:$0xff] %vm75_vm0, %v2156_v15  ;;  %v2133_v28 = vmul.f32 %v2958_v39, %v3634_v33  ;;  %v2146_v37 = vmul.f32 %v2429_v20, %v2134_v26  ;;  %v2431_v33 = vld [vmem:[%s3735_s19] ss:$0 sm:$0xff] }
 0xb6f   :  { %v2960_v29 = vpop.eup %2959  ;;  %2161 = vst.msk [vmem:[#allocation2] sm:$0xff] %vm75_vm0, %v2155_v27  ;;  %2858 = vmatprep.mubr.msk.f32.mxu0 %vm75_vm0, %v2155_v27  ;;  %v2145_v30 = vmul.f32 %v2429_v20, %v2133_v28  ;;  %v2158_v31 = vadd.f32 %v2430_v34, %v2146_v37 }
 0xb70   :  { %2859 = vmatmul.mubr.msk.f32.vlgmr.msra.gmra.mxu0 %vm75_vm0, %v2156_v15  ;;  %v2136_v16 = vmul.f32 %v2960_v29, %v3642_v43 }
 0xb71   :  { %v2962_v32 = vpop.eup %2961  ;;  %v2157_v42 = vadd.f32 %v2430_v34, %v2145_v30  ;;  %2164 = vst.msk [vmem:[#allocation2 + $0x18] sm:$0xff] %vm75_vm0, %v2158_v31 }
 0xb72   :  { %v2135_v17 = vmul.f32 %v2962_v32, %v3645_v45  ;;  %v2148_v18 = vmul.f32 %v2429_v20, %v2136_v16 }
 0xb73   :  { %2163 = vst.msk [vmem:[#allocation2 + $0x10] sm:$0xff] %vm75_vm0, %v2157_v42  ;;  %2861 = vmatprep.mubr.msk.f32.mxu0 %vm75_vm0, %v2157_v42 }
 0xb74   :  { %2862 = vmatmul.mubr.msk.f32.gmra.mxu0 %vm75_vm0, %v2158_v31  ;;  %v2147_v41 = vmul.f32 %v2429_v20, %v2135_v17  ;;  %v2160_v19 = vadd.f32 %v2430_v34, %v2148_v18 }
 0xb76   :  { %v2159_v57 = vadd.f32 %v2430_v34, %v2147_v41  ;;  %2166 = vst.msk [vmem:[#allocation2 + $0x28] sm:$0xff] %vm75_vm0, %v2160_v19 }
 0xb78   :  { %2165 = vst.msk [vmem:[#allocation2 + $0x20] sm:$0xff] %vm75_vm0, %v2159_v57  ;;  %2864 = vmatprep.mubr.msk.f32.mxu0 %vm75_vm0, %v2159_v57 }
 0xb79   :  { %2865 = vmatmul.mubr.msk.f32.gmra.mxu0 %vm75_vm0, %v2160_v19 }
 0xc30   :  { %v2860_v1 = vpop.f32.mrf.mxu0 }
 0xc31   :  { %v2271_v35 = vadd.f32 %v2860_v1, %v2431_v33 }
 0xc32   :  { %v2265_v36 = vpop.f32.mrf.mxu0 }
 0xc33   :  { %2296 = vst.msk [vmem:[%s3736_s20 + $0x8] sm:$0xff] %vm2294_vm4, %v2271_v35  ;;  %v2266_v62 = vadd.f32 %v2431_v33, %v2265_v36 }
 0xc34   :  { %v2863_v38 = vpop.f32.mrf.mxu0 }
 0xc35   :  { %2295 = vst.msk [vmem:[%s3736_s20] sm:$0xff] %vm2294_vm4, %v2266_v62  ;;  %v2281_v9 = vadd.f32 %v2863_v38, %v2431_v33 }
 0xc36   :  { %v2275_v40 = vpop.f32.mrf.mxu0 }
 0xc37   :  { %2298 = vst.msk [vmem:[%s3736_s20 + $0x18] sm:$0xff] %vm2294_vm4, %v2281_v9  ;;  %v2276_v43 = vadd.f32 %v2431_v33, %v2275_v40 }
 0xc39   :  { %2297 = vst.msk [vmem:[%s3736_s20 + $0x10] sm:$0xff] %vm2294_vm4, %v2276_v43  ;;  %v2866_v5 = vpop.f32.mrf.mxu0 }
 0xc3a   :  { %v2291_v44 = vadd.f32 %v2866_v5, %v2431_v33 }
 0xc3b   :  { %v2285_v45 = vpop.f32.mrf.mxu0 }
 0xc3c   :  { %2300 = vst.msk [vmem:[%s3736_s20 + $0x28] sm:$0xff] %vm2294_vm4, %v2291_v44  ;;  %v2286_v53 = vadd.f32 %v2431_v33, %v2285_v45 }
 0xc3e   :  { %2299 = vst.msk [vmem:[%s3736_s20 + $0x20] sm:$0xff] %vm2294_vm4, %v2286_v53 }

</bundles_post_ra>
